<compile_context>
chip_gen: v5e
topology: v5e:2x2
jax: 0.10.0
libtpu: 0.0.40
codegen_flags: <defaults>
</compile_context>

<pallas_src>
import functools
import math

import jax
import jax.numpy as jnp
from jax.experimental import pallas as pl
from jax.experimental.pallas import tpu as pltpu

LN_EPS = 1e-5


# --------------------------------------------------------------------------
# Hardware-aware sizing helpers
# --------------------------------------------------------------------------
@functools.lru_cache(maxsize=None)
def _tpu_vmem_bytes():
    try:
        return int(pltpu.get_tpu_info().vmem_capacity_bytes)
    except Exception:
        return 64 * 1024 * 1024          # conservative default (v7x-sized)


def _vmem_limit():
    return int(_tpu_vmem_bytes() * 3 // 4)


def _tile_targets():
    """(TM, TN, TK) targets: big tiles on 128 MiB VMEM parts (v5e/v6e),
    capped on v7x's 64 MiB so double-buffering never has to be dropped."""
    if _tpu_vmem_bytes() >= 100 * 1024 * 1024:
        return 512, 1024, 1024
    return 512, 512, 1024


def _round_up(x, m):
    return ((x + m - 1) // m) * m


def _pad_rows(x, mp):
    m = x.shape[0]
    if mp == m:
        return x
    return jnp.pad(x, ((0, mp - m), (0, 0)))


def _pick_tile(dim, target, quantum):
    """Largest tile <= target that divides `dim` exactly and is a multiple of
    `quantum`; falls back to full extent (always a legal block)."""
    if dim <= target:
        return dim
    t = (target // quantum) * quantum
    while t >= quantum:
        if dim % t == 0:
            return t
        t -= quantum
    return dim


# --------------------------------------------------------------------------
# In-kernel math helpers
# --------------------------------------------------------------------------
def _gelu(x):
    # tanh-form GELU: the transcendental goes to the EUP slot.
    # TODO(synk): open_clip's default nn.GELU is the exact erf form (and some
    # configs use QuickGELU); validate with an appropriate tolerance.
    c = math.sqrt(2.0 / math.pi)
    return 0.5 * x * (1.0 + jnp.tanh(c * (x + 0.044715 * (x * x * x))))


# --------------------------------------------------------------------------
# Pallas kernels
# --------------------------------------------------------------------------
def _linear_kernel(*refs, has_bias, has_residual, act, k_tiled):
    """y = act(x @ w + b) (+ residual). MXU in bf16, accumulation in f32,
    bias/GELU/residual fused into the epilogue, bf16 (or f32) store."""
    x_ref, w_ref = refs[0], refs[1]
    i = 2
    b_ref = r_ref = None
    if has_bias:
        b_ref = refs[i]; i += 1
    if has_residual:
        r_ref = refs[i]; i += 1
    o_ref = refs[i]

    def epilogue(y):
        if has_bias:
            y = y + b_ref[...].astype(jnp.float32)
        if act == "gelu":
            y = _gelu(y)
        if has_residual:
            y = y + r_ref[...].astype(jnp.float32)
        return y.astype(o_ref.dtype)

    if not k_tiled:
        # K fits in one tile: no accumulator scratch needed (frees VMEM).
        y = jnp.dot(x_ref[...].astype(jnp.bfloat16),
                    w_ref[...].astype(jnp.bfloat16),
                    preferred_element_type=jnp.float32)
        o_ref[...] = epilogue(y)
        return

    acc_ref = refs[i + 1]
    k = pl.program_id(2)

    @pl.when(k == 0)
    def _():
        acc_ref[...] = jnp.zeros_like(acc_ref)

    acc_ref[...] += jnp.dot(x_ref[...].astype(jnp.bfloat16),
                            w_ref[...].astype(jnp.bfloat16),
                            preferred_element_type=jnp.float32)

    @pl.when(k == pl.num_programs(2) - 1)
    def _():
        o_ref[...] = epilogue(acc_ref[...])


def _ln_linear_kernel(x_ref, g_ref, bln_ref, w_ref, b_ref, o_ref, h_ref, *, act):
    """LayerNorm fused into the following linear (+ optional GELU).
    The normalized row block is computed once per row tile (j == 0) into a
    persistent bf16 VMEM scratch and reused for every N tile."""
    @pl.when(pl.program_id(1) == 0)
    def _():
        x = x_ref[...].astype(jnp.float32)
        mu = jnp.mean(x, axis=-1, keepdims=True)
        xc = x - mu
        var = jnp.mean(xc * xc, axis=-1, keepdims=True)
        h = xc * jax.lax.rsqrt(var + LN_EPS) * g_ref[...] + bln_ref[...]
        h_ref[...] = h.astype(jnp.bfloat16)

    y = jnp.dot(h_ref[...], w_ref[...].astype(jnp.bfloat16),
                preferred_element_type=jnp.float32) + b_ref[...].astype(jnp.float32)
    if act == "gelu":
        y = _gelu(y)
    o_ref[...] = y.astype(o_ref.dtype)


def _layernorm_kernel(x_ref, g_ref, b_ref, o_ref):
    x = x_ref[...].astype(jnp.float32)
    mu = jnp.mean(x, axis=-1, keepdims=True)
    xc = x - mu
    var = jnp.mean(xc * xc, axis=-1, keepdims=True)
    y = xc * jax.lax.rsqrt(var + LN_EPS) * g_ref[...] + b_ref[...]
    o_ref[...] = y.astype(o_ref.dtype)


def _l2norm_kernel(x_ref, o_ref):
    # F.normalize(x, dim=-1): x / max(||x||_2, 1e-12)
    x = x_ref[...].astype(jnp.float32)
    ss = jnp.sum(x * x, axis=-1, keepdims=True)
    o_ref[...] = (x * jax.lax.rsqrt(jnp.maximum(ss, 1e-24))).astype(o_ref.dtype)


def _attention_group_kernel(q_ref, k_ref, v_ref, o_ref, *, heads_per_block, dh,
                            causal):
    """One (batch, head-group) tile per grid step. q/k/v refs are lane-aligned
    [1, S, heads_per_block*dh] bf16 slices of the packed QKV projection;
    output block is a lane-dense [1, S, heads_per_block*dh] bf16 store.
    TODO(synk): flash-style online softmax over K tiles once S >= 257."""
    S = q_ref.shape[1]
    scale = 1.0 / math.sqrt(dh)

    neg = None
    if causal:
        row = jax.lax.broadcasted_iota(jnp.int32, (S, S), 0)
        col = jax.lax.broadcasted_iota(jnp.int32, (S, S), 1)
        neg = jnp.where(col <= row, 0.0, -1e30).astype(jnp.float32)

    outs = []
    for h in range(heads_per_block):          # tiny static loop (<= 2 heads)
        q = q_ref[0, :, h * dh:(h + 1) * dh]
        k = k_ref[0, :, h * dh:(h + 1) * dh]
        v = v_ref[0, :, h * dh:(h + 1) * dh]
        s = jax.lax.dot_general(q, k, (((1,), (1,)), ((), ())),
                                preferred_element_type=jnp.float32) * scale
        if causal:
            s = s + neg
        m = jnp.max(s, axis=-1, keepdims=True)
        p = jnp.exp(s - m)
        a = p * pl.reciprocal(jnp.sum(p, axis=-1, keepdims=True), approx=True)
        outs.append(jnp.dot(a.astype(jnp.bfloat16), v,
                            preferred_element_type=jnp.float32))
    o_ref[0] = jnp.concatenate(outs, axis=-1).astype(o_ref.dtype)


def _attention_packed_kernel(qkv_ref, o_ref, *, heads, causal):
    """Fallback (head widths that cannot be grouped to 128 lanes): all heads of
    one batch element per grid step."""
    S = qkv_ref.shape[1]
    D = qkv_ref.shape[2] // 3
    dh = D // heads
    scale = 1.0 / math.sqrt(dh)

    neg = None
    if causal:
        row = jax.lax.broadcasted_iota(jnp.int32, (S, S), 0)
        col = jax.lax.broadcasted_iota(jnp.int32, (S, S), 1)
        neg = jnp.where(col <= row, 0.0, -1e30).astype(jnp.float32)

    outs = []
    for h in range(heads):
        q = qkv_ref[0, :, h * dh:(h + 1) * dh].astype(jnp.bfloat16)
        k = qkv_ref[0, :, D + h * dh:D + (h + 1) * dh].astype(jnp.bfloat16)
        v = qkv_ref[0, :, 2 * D + h * dh:2 * D + (h + 1) * dh].astype(jnp.bfloat16)
        s = jax.lax.dot_general(q, k, (((1,), (1,)), ((), ())),
                                preferred_element_type=jnp.float32) * scale
        if causal:
            s = s + neg
        m = jnp.max(s, axis=-1, keepdims=True)
        p = jnp.exp(s - m)
        a = p * pl.reciprocal(jnp.sum(p, axis=-1, keepdims=True), approx=True)
        outs.append(jnp.dot(a.astype(jnp.bfloat16), v,
                            preferred_element_type=jnp.float32))
    o_ref[0] = jnp.concatenate(outs, axis=-1).astype(o_ref.dtype)


# --------------------------------------------------------------------------
# pallas_call wrappers
# --------------------------------------------------------------------------
def linear_tiled(x, w, b=None, residual=None, activation=None,
                 out_dtype=jnp.bfloat16):
    """y = act(x @ w + b) (+ residual). Rows padded to the tile, f32 MXU
    accumulation, bf16 HBM output by default."""
    M, K = x.shape
    N = w.shape[1]
    TM, TN, TK = _tile_targets()
    tm = min(TM, _round_up(M, 8))
    Mp = _round_up(M, tm)
    tn = _pick_tile(N, TN, 128)
    tk = _pick_tile(K, TK, 128)
    nk = K // tk

    xp = _pad_rows(x, Mp)
    rp = _pad_rows(residual, Mp) if residual is not None else None
    has_bias = b is not None
    has_res = residual is not None

    cost = pl.CostEstimate(flops=2 * Mp * N * K, transcendentals=0,
                           bytes_accessed=2 * (Mp * K + K * N + Mp * N))

    if nk == 1:
        operands = [xp, w]
        in_specs = [pl.BlockSpec((tm, K), lambda i, j: (i, 0)),
                    pl.BlockSpec((K, tn), lambda i, j: (0, j))]
        if has_bias:
            operands.append(b.reshape(1, N).astype(jnp.float32))
            in_specs.append(pl.BlockSpec((1, tn), lambda i, j: (0, j)))
        if has_res:
            operands.append(rp)
            in_specs.append(pl.BlockSpec((tm, tn), lambda i, j: (i, j)))
        kernel = functools.partial(_linear_kernel, has_bias=has_bias,
                                   has_residual=has_res, act=activation,
                                   k_tiled=False)
        out = pl.pallas_call(
            kernel,
            grid=(Mp // tm, N // tn),
            in_specs=in_specs,
            out_specs=pl.BlockSpec((tm, tn), lambda i, j: (i, j)),
            out_shape=jax.ShapeDtypeStruct((Mp, N), out_dtype),
            cost_estimate=cost,
            compiler_params=pltpu.CompilerParams(
                dimension_semantics=("parallel", "parallel"),
                vmem_limit_bytes=_vmem_limit()),
        )(*operands)
    else:
        operands = [xp, w]
        in_specs = [pl.BlockSpec((tm, tk), lambda i, j, k: (i, k)),
                    pl.BlockSpec((tk, tn), lambda i, j, k: (k, j))]
        if has_bias:
            operands.append(b.reshape(1, N).astype(jnp.float32))
            in_specs.append(pl.BlockSpec((1, tn), lambda i, j, k: (0, j)))
        if has_res:
            operands.append(rp)
            in_specs.append(pl.BlockSpec((tm, tn), lambda i, j, k: (i, j)))
        kernel = functools.partial(_linear_kernel, has_bias=has_bias,
                                   has_residual=has_res, act=activation,
                                   k_tiled=True)
        out = pl.pallas_call(
            kernel,
            grid=(Mp // tm, N // tn, nk),
            in_specs=in_specs,
            out_specs=pl.BlockSpec((tm, tn), lambda i, j, k: (i, j)),
            out_shape=jax.ShapeDtypeStruct((Mp, N), out_dtype),
            scratch_shapes=[pltpu.VMEM((tm, tn), jnp.float32)],
            cost_estimate=cost,
            compiler_params=pltpu.CompilerParams(
                dimension_semantics=("parallel", "parallel", "arbitrary"),
                vmem_limit_bytes=_vmem_limit()),
        )(*operands)
    return out if Mp == M else out[:M]


def ln_linear(x, g, bln, w, b, activation=None, out_dtype=jnp.bfloat16):
    """y = act(LayerNorm(x) @ w + b); LN computed once per row tile."""
    M, K = x.shape
    N = w.shape[1]
    TM, TN, _ = _tile_targets()
    tm = min(TM, _round_up(M, 8))
    Mp = _round_up(M, tm)
    tn = _pick_tile(N, TN, 128)
    xp = _pad_rows(x, Mp)

    kernel = functools.partial(_ln_linear_kernel, act=activation)
    cost = pl.CostEstimate(flops=2 * Mp * N * K, transcendentals=Mp,
                           bytes_accessed=2 * (Mp * K + K * N + Mp * N))
    out = pl.pallas_call(
        kernel,
        grid=(Mp // tm, N // tn),
        in_specs=[pl.BlockSpec((tm, K), lambda i, j: (i, 0)),
                  pl.BlockSpec((1, K), lambda i, j: (0, 0)),
                  pl.BlockSpec((1, K), lambda i, j: (0, 0)),
                  pl.BlockSpec((K, tn), lambda i, j: (0, j)),
                  pl.BlockSpec((1, tn), lambda i, j: (0, j))],
        out_specs=pl.BlockSpec((tm, tn), lambda i, j: (i, j)),
        out_shape=jax.ShapeDtypeStruct((Mp, N), out_dtype),
        scratch_shapes=[pltpu.VMEM((tm, K), jnp.bfloat16)],
        cost_estimate=cost,
        compiler_params=pltpu.CompilerParams(
            dimension_semantics=("parallel", "arbitrary"),
            vmem_limit_bytes=_vmem_limit()),
    )(xp, g.reshape(1, K).astype(jnp.float32),
      bln.reshape(1, K).astype(jnp.float32), w,
      b.reshape(1, N).astype(jnp.float32))
    return out if Mp == M else out[:M]


def layernorm(x, g, b, out_dtype=jnp.bfloat16):
    M, D = x.shape
    TM, _, _ = _tile_targets()
    tm = min(TM, _round_up(M, 8))
    Mp = _round_up(M, tm)
    xp = _pad_rows(x, Mp)
    out = pl.pallas_call(
        _layernorm_kernel,
        grid=(Mp // tm,),
        in_specs=[pl.BlockSpec((tm, D), lambda i: (i, 0)),
                  pl.BlockSpec((1, D), lambda i: (0, 0)),
                  pl.BlockSpec((1, D), lambda i: (0, 0))],
        out_specs=pl.BlockSpec((tm, D), lambda i: (i, 0)),
        out_shape=jax.ShapeDtypeStruct((Mp, D), out_dtype),
        compiler_params=pltpu.CompilerParams(
            dimension_semantics=("parallel",),
            vmem_limit_bytes=_vmem_limit()),
    )(xp, g.reshape(1, D).astype(jnp.float32),
      b.reshape(1, D).astype(jnp.float32))
    return out if Mp == M else out[:M]


def l2_normalize(x):
    M, D = x.shape
    tm = min(256, _round_up(M, 8))
    Mp = _round_up(M, tm)
    xp = _pad_rows(x, Mp)
    out = pl.pallas_call(
        _l2norm_kernel,
        grid=(Mp // tm,),
        in_specs=[pl.BlockSpec((tm, D), lambda i: (i, 0))],
        out_specs=pl.BlockSpec((tm, D), lambda i: (i, 0)),
        out_shape=jax.ShapeDtypeStruct((Mp, D), x.dtype),
        compiler_params=pltpu.CompilerParams(
            dimension_semantics=("parallel",),
            vmem_limit_bytes=_vmem_limit()),
    )(xp)
    return out if Mp == M else out[:M]


def multihead_attention(qkv, heads, causal):
    """qkv: [B, S, 3*D] packed projection output (bf16); returns [B, S, D] bf16."""
    B, S, D3 = qkv.shape
    D = D3 // 3
    dh = D // heads

    # smallest head-group whose lane width is a multiple of 128 (dh=64 -> pairs)
    gh = 0
    for g in range(1, heads + 1):
        if heads % g == 0 and (g * dh) % 128 == 0:
            gh = g
            break

    if gh:
        blk = gh * dh
        koff = D // blk
        kernel = functools.partial(_attention_group_kernel,
                                   heads_per_block=gh, dh=dh, causal=causal)
        return pl.pallas_call(
            kernel,
            grid=(B, heads // gh),
            in_specs=[pl.BlockSpec((1, S, blk), lambda b, hp: (b, 0, hp)),
                      pl.BlockSpec((1, S, blk), lambda b, hp: (b, 0, hp + koff)),
                      pl.BlockSpec((1, S, blk), lambda b, hp: (b, 0, hp + 2 * koff))],
            out_specs=pl.BlockSpec((1, S, blk), lambda b, hp: (b, 0, hp)),
            out_shape=jax.ShapeDtypeStruct((B, S, D), jnp.bfloat16),
            compiler_params=pltpu.CompilerParams(
                dimension_semantics=("parallel", "parallel"),
                vmem_limit_bytes=_vmem_limit()),
        )(qkv, qkv, qkv)

    # TODO(synk): head widths not groupable to 128 lanes -> packed fallback.
    kernel = functools.partial(_attention_packed_kernel, heads=heads, causal=causal)
    return pl.pallas_call(
        kernel,
        grid=(B,),
        in_specs=[pl.BlockSpec((1, S, D3), lambda b: (b, 0, 0))],
        out_specs=pl.BlockSpec((1, S, D), lambda b: (b, 0, 0)),
        out_shape=jax.ShapeDtypeStruct((B, S, D), jnp.bfloat16),
        compiler_params=pltpu.CompilerParams(
            dimension_semantics=("parallel",),
            vmem_limit_bytes=_vmem_limit()),
    )(qkv)


# --------------------------------------------------------------------------
# Transformer building blocks (open_clip ResidualAttentionBlock semantics)
# --------------------------------------------------------------------------
def residual_attention_block(x, p, heads, causal):
    B, S, D = x.shape
    x2 = x.reshape(B * S, D)

    # attention branch: x = x + out_proj(attn(ln_1(x)))
    qkv = ln_linear(x2, p['ln1_g'], p['ln1_b'], p['attn_in_w'], p['attn_in_b'])
    attn = multihead_attention(qkv.reshape(B, S, 3 * D), heads, causal)
    x2 = linear_tiled(attn.reshape(B * S, D), p['attn_out_w'],
                      p['attn_out_b'], residual=x2)

    # MLP branch: x = x + c_proj(gelu(c_fc(ln_2(x))))
    h = ln_linear(x2, p['ln2_g'], p['ln2_b'], p['mlp_fc_w'], p['mlp_fc_b'],
                  activation='gelu')
    x2 = linear_tiled(h, p['mlp_proj_w'], p['mlp_proj_b'], residual=x2)
    return x2.reshape(B, S, D)


# --------------------------------------------------------------------------
# Vision tower (VisionTransformer) and text tower (TextTransformer)
# --------------------------------------------------------------------------
def vision_forward(image, vp, cfg):
    B, C, H, W = image.shape
    P, width = cfg['patch_size'], cfg['width']
    gh, gw = H // P, W // P
    # Conv2d(kernel=stride=P, no bias) == patchify + matmul
    patches = image.reshape(B, C, gh, P, gw, P).transpose(0, 2, 4, 1, 3, 5)
    patches = patches.reshape(B * gh * gw, C * P * P)
    x = linear_tiled(patches, vp['conv_w']).reshape(B, gh * gw, width)

    cls = jnp.broadcast_to(vp['class_embedding'][None, None, :].astype(x.dtype),
                           (B, 1, width))
    x = jnp.concatenate([cls, x], axis=1)
    x = x + vp['pos_embed'][None]                       # promoted to f32

    S = x.shape[1]
    x = layernorm(x.reshape(B * S, width), vp['ln_pre_g'], vp['ln_pre_b'])
    x = x.reshape(B, S, width)                           # bf16 activations

    for blk in vp['blocks']:
        x = residual_attention_block(x, blk, cfg['heads'], causal=False)

    pooled = x[:, 0]                                     # CLS pooling
    pooled = layernorm(pooled, vp['ln_post_g'], vp['ln_post_b'])
    return linear_tiled(pooled, vp['proj'], out_dtype=jnp.float32)


def text_forward(text, tp, cfg):
    B, S = text.shape
    width = cfg['width']
    # TODO(synk): token-embedding gather and eot-argmax pooling are plain-JAX
    # gathers (no clean dense Pallas equivalent at these shapes).
    x = tp['token_embedding'][text]                      # [B, S, width] f32
    x = (x + tp['pos_embed'][None]).astype(jnp.bfloat16)

    for blk in tp['blocks']:
        x = residual_attention_block(x, blk, cfg['heads'], causal=True)

    x = layernorm(x.reshape(B * S, width), tp['ln_final_g'], tp['ln_final_b'])
    x = x.reshape(B, S, width)
    eot = jnp.argmax(text, axis=-1)                      # highest token id = EOT
    pooled = x[jnp.arange(B), eot]
    return linear_tiled(pooled, tp['text_projection'], out_dtype=jnp.float32)


def custom_text_clip_forward(params, image, text, vision_cfg, text_cfg):
    img_f = l2_normalize(vision_forward(image, params['visual'], vision_cfg))
    txt_f = l2_normalize(text_forward(text, params['text'], text_cfg))
    return img_f, txt_f, jnp.exp(params['logit_scale'])


# --------------------------------------------------------------------------
# Deterministic parameter initialization (shapes follow the module __init__)
# Matmul weights stored bf16 (MXU-native); LN params / biases / tables f32.
# --------------------------------------------------------------------------
def _init_block(key, width, mlp_width):
    ks = jax.random.split(key, 4)
    s = width ** -0.5
    f32, bf16 = jnp.float32, jnp.bfloat16
    return {
        'ln1_g': jnp.ones((width,), f32), 'ln1_b': jnp.zeros((width,), f32),
        'attn_in_w': (jax.random.normal(ks[0], (width, 3 * width)) * s).astype(bf16),
        'attn_in_b': jnp.zeros((3 * width,), f32),
        'attn_out_w': (jax.random.normal(ks[1], (width, width)) * s).astype(bf16),
        'attn_out_b': jnp.zeros((width,), f32),
        'ln2_g': jnp.ones((width,), f32), 'ln2_b': jnp.zeros((width,), f32),
        'mlp_fc_w': (jax.random.normal(ks[2], (width, mlp_width)) * s).astype(bf16),
        'mlp_fc_b': jnp.zeros((mlp_width,), f32),
        'mlp_proj_w': (jax.random.normal(ks[3], (mlp_width, width)) * s).astype(bf16),
        'mlp_proj_b': jnp.zeros((width,), f32),
    }


def init_vision_params(key, embed_dim, cfg):
    width, P = cfg['width'], cfg['patch_size']
    grid = cfg['image_size'] // P
    n_tok = grid * grid + 1
    mlp_width = int(width * cfg['mlp_ratio'])
    keys = jax.random.split(key, cfg['layers'] + 4)
    s = width ** -0.5
    f32, bf16 = jnp.float32, jnp.bfloat16
    return {
        'conv_w': (jax.random.normal(keys[0], (3 * P * P, width)) * s).astype(bf16),
        'class_embedding': (jax.random.normal(keys[1], (width,)) * s).astype(f32),
        'pos_embed': (jax.random.normal(keys[2], (n_tok, width)) * s).astype(f32),
        'ln_pre_g': jnp.ones((width,), f32), 'ln_pre_b': jnp.zeros((width,), f32),
        'blocks': [_init_block(keys[4 + i], width, mlp_width)
                   for i in range(cfg['layers'])],
        'ln_post_g': jnp.ones((width,), f32), 'ln_post_b': jnp.zeros((width,), f32),
        'proj': (jax.random.normal(keys[3], (width, embed_dim)) * s).astype(bf16),
    }


def init_text_params(key, embed_dim, cfg):
    width = cfg['width']
    mlp_width = 4 * width
    keys = jax.random.split(key, cfg['layers'] + 3)
    f32, bf16 = jnp.float32, jnp.bfloat16
    return {
        'token_embedding': (jax.random.normal(
            keys[0], (cfg['vocab_size'], width)) * 0.02).astype(f32),
        'pos_embed': (jax.random.normal(
            keys[1], (cfg['context_length'], width)) * 0.01).astype(f32),
        'blocks': [_init_block(keys[3 + i], width, mlp_width)
                   for i in range(cfg['layers'])],
        'ln_final_g': jnp.ones((width,), f32),
        'ln_final_b': jnp.zeros((width,), f32),
        'text_projection': (jax.random.normal(
            keys[2], (width, embed_dim)) * width ** -0.5).astype(bf16),
    }


# --------------------------------------------------------------------------
if __name__ == "__main__":
    key = jax.random.PRNGKey(0)
    k_img, k_txt, k_v, k_t = jax.random.split(key, 4)

    embed_dim = 64
    vision_cfg = dict(image_size=32, patch_size=8, width=128, head_width=64,
                      mlp_ratio=4.0, layers=2)
    vision_cfg['heads'] = vision_cfg['width'] // vision_cfg['head_width']
    text_cfg = dict(context_length=16, vocab_size=256, width=128, heads=2,
                    layers=2)

    params = {
        'visual': init_vision_params(k_v, embed_dim, vision_cfg),
        'text': init_text_params(k_t, embed_dim, text_cfg),
        'logit_scale': jnp.asarray(math.log(1.0 / 0.07), jnp.float32),
    }

    image = jax.random.normal(k_img, (2, 3, 32, 32), jnp.float32)   # NCHW
    text = jax.random.randint(k_txt, (2, text_cfg['context_length']),
                              0, text_cfg['vocab_size'], jnp.int32)

    fwd = jax.jit(lambda p, im, tx: custom_text_clip_forward(
        p, im, tx, vision_cfg, text_cfg))
    img_f, txt_f, logit_scale = fwd(params, image, text)
    jax.block_until_ready((img_f, txt_f, logit_scale))

    assert img_f.shape == (2, embed_dim) and txt_f.shape == (2, embed_dim)
    assert logit_scale.shape == ()
    assert bool(jnp.all(jnp.isfinite(img_f))) and bool(jnp.all(jnp.isfinite(txt_f)))
    print("KERNEL_OK")
</pallas_src>

<mosaic_0001>
module attributes {stable_mosaic.version = 11 : i64} {
  func.func @_linear_kernel(%arg0: i32, %arg1: i32, %arg2: memref<32x192xf32, #tpu.memory_space<vmem>>, %arg3: memref<192x128xbf16, #tpu.memory_space<vmem>>, %arg4: memref<32x128xbf16, #tpu.memory_space<vmem>>) attributes {dimension_semantics = [#tpu.dimension_semantics<parallel>, #tpu.dimension_semantics<parallel>], iteration_bounds = array<i64: 1, 1>, scalar_prefetch = 0 : i64, scratch_operands = 0 : i64, tpu.core_type = #tpu.core_type<tc>, window_params = [{transform_indices = @transform_0, window_bounds = array<i64: 32, 192>}, {transform_indices = @transform_1, window_bounds = array<i64: 192, 128>}, {transform_indices = @transform_2, window_bounds = array<i64: 32, 128>}]} {
    %c0 = arith.constant 0 : index
    %c0_0 = arith.constant 0 : index
    %0 = vector.load %arg2[%c0, %c0_0] : memref<32x192xf32, #tpu.memory_space<vmem>>, vector<32x192xf32>
    %1 = arith.truncf %0 : vector<32x192xf32> to vector<32x192xbf16>
    %c0_1 = arith.constant 0 : index
    %c0_2 = arith.constant 0 : index
    %2 = vector.load %arg3[%c0_1, %c0_2] : memref<192x128xbf16, #tpu.memory_space<vmem>>, vector<192x128xbf16>
    %cst = arith.constant dense<0.000000e+00> : vector<32x128xf32>
    %3 = tpu.matmul %1, %2, %cst {dimension_numbers = #tpu.dot_dimension_numbers<[1], [0], [0], [1], [0, 0, 1, 1], [], []>} : vector<32x192xbf16>, vector<192x128xbf16>, vector<32x128xf32> -> vector<32x128xf32>
    %4 = arith.truncf %3 : vector<32x128xf32> to vector<32x128xbf16>
    %c0_3 = arith.constant 0 : index
    %c0_4 = arith.constant 0 : index
    %5 = vector.load %arg4[%c0_3, %c0_4] : memref<32x128xbf16, #tpu.memory_space<vmem>>, vector<32x128xbf16>
    tpu.vector_store %arg4[%c0_3, %c0_4], %4 {strides = array<i32>} : memref<32x128xbf16, #tpu.memory_space<vmem>>, vector<32x128xbf16>,
    return
  }
  func.func @transform_0(%arg0: i32, %arg1: i32) -> (i32, i32) {
    %c0_i32 = arith.constant 0 : i32
    %c0_i32_0 = arith.constant 0 : i32
    return %arg0, %c0_i32 : i32, i32
  }
  func.func @transform_1(%arg0: i32, %arg1: i32) -> (i32, i32) {
    %c0_i32 = arith.constant 0 : i32
    %c0_i32_0 = arith.constant 0 : i32
    return %c0_i32, %arg1 : i32, i32
  }
  func.func @transform_2(%arg0: i32, %arg1: i32) -> (i32, i32) {
    %c0_i32 = arith.constant 0 : i32
    return %arg0, %arg1 : i32, i32
  }
}

module attributes {stable_mosaic.version = 11 : i64} {
  func.func @_layernorm_kernel(%arg0: i32, %arg1: memref<40x128xf32, #tpu.memory_space<vmem>>, %arg2: memref<1x128xf32, #tpu.memory_space<vmem>>, %arg3: memref<1x128xf32, #tpu.memory_space<vmem>>, %arg4: memref<40x128xbf16, #tpu.memory_space<vmem>>) attributes {dimension_semantics = [#tpu.dimension_semantics<parallel>], iteration_bounds = array<i64: 1>, scalar_prefetch = 0 : i64, scratch_operands = 0 : i64, tpu.core_type = #tpu.core_type<tc>, window_params = [{transform_indices = @transform_0, window_bounds = array<i64: 40, 128>}, {pipeline_mode = #tpu.pipeline_mode<synchronous>, transform_indices = @transform_1, window_bounds = array<i64: 1, 128>}, {pipeline_mode = #tpu.pipeline_mode<synchronous>, transform_indices = @transform_2, window_bounds = array<i64: 1, 128>}, {transform_indices = @transform_3, window_bounds = array<i64: 40, 128>}]} {
    %c0 = arith.constant 0 : index
    %c0_0 = arith.constant 0 : index
    %0 = vector.load %arg1[%c0, %c0_0] : memref<40x128xf32, #tpu.memory_space<vmem>>, vector<40x128xf32>
    %cst = arith.constant dense<0.000000e+00> : vector<40xf32>
    %1 = vector.multi_reduction <add>, %0, %cst [1] : vector<40x128xf32> to vector<40xf32>
    %2 = vector.shape_cast %1 : vector<40xf32> to vector<40x1xf32>
    %cst_1 = arith.constant 1.280000e+02 : f32
    %3 = vector.broadcast %cst_1 : f32 to vector<40x1xf32>
    %4 = arith.divf %2, %3 : vector<40x1xf32>
    %5 = vector.broadcast %4 : vector<40x1xf32> to vector<40x128xf32>
    %6 = arith.subf %0, %5 : vector<40x128xf32>
    %7 = arith.mulf %6, %6 : vector<40x128xf32>
    %cst_2 = arith.constant dense<0.000000e+00> : vector<40xf32>
    %8 = vector.multi_reduction <add>, %7, %cst_2 [1] : vector<40x128xf32> to vector<40xf32>
    %9 = vector.shape_cast %8 : vector<40xf32> to vector<40x1xf32>
    %cst_3 = arith.constant 1.280000e+02 : f32
    %10 = vector.broadcast %cst_3 : f32 to vector<40x1xf32>
    %11 = arith.divf %9, %10 : vector<40x1xf32>
    %cst_4 = arith.constant 9.99999974E-6 : f32
    %12 = vector.broadcast %cst_4 : f32 to vector<40x1xf32>
    %13 = arith.addf %11, %12 : vector<40x1xf32>
    %14 = math.rsqrt %13 : vector<40x1xf32>
    %15 = vector.broadcast %14 : vector<40x1xf32> to vector<40x128xf32>
    %16 = arith.mulf %6, %15 : vector<40x128xf32>
    %c0_5 = arith.constant 0 : index
    %c0_6 = arith.constant 0 : index
    %17 = vector.load %arg2[%c0_5, %c0_6] : memref<1x128xf32, #tpu.memory_space<vmem>>, vector<1x128xf32>
    %18 = vector.broadcast %17 : vector<1x128xf32> to vector<40x128xf32>
    %19 = arith.mulf %16, %18 : vector<40x128xf32>
    %c0_7 = arith.constant 0 : index
    %c0_8 = arith.constant 0 : index
    %20 = vector.load %arg3[%c0_7, %c0_8] : memref<1x128xf32, #tpu.memory_space<vmem>>, vector<1x128xf32>
    %21 = vector.broadcast %20 : vector<1x128xf32> to vector<40x128xf32>
    %22 = arith.addf %19, %21 : vector<40x128xf32>
    %23 = arith.truncf %22 : vector<40x128xf32> to vector<40x128xbf16>
    %c0_9 = arith.constant 0 : index
    %c0_10 = arith.constant 0 : index
    %24 = vector.load %arg4[%c0_9, %c0_10] : memref<40x128xbf16, #tpu.memory_space<vmem>>, vector<40x128xbf16>
    tpu.vector_store %arg4[%c0_9, %c0_10], %23 {strides = array<i32>} : memref<40x128xbf16, #tpu.memory_space<vmem>>, vector<40x128xbf16>,
    return
  }
  func.func @transform_0(%arg0: i32) -> (i32, i32) {
    %c0_i32 = arith.constant 0 : i32
    %c0_i32_0 = arith.constant 0 : i32
    return %arg0, %c0_i32 : i32, i32
  }
  func.func @transform_1(%arg0: i32) -> (i32, i32) {
    %c0_i32 = arith.constant 0 : i32
    %c0_i32_0 = arith.constant 0 : i32
    %c0_i32_1 = arith.constant 0 : i32
    return %c0_i32, %c0_i32_0 : i32, i32
  }
  func.func @transform_2(%arg0: i32) -> (i32, i32) {
    %c0_i32 = arith.constant 0 : i32
    %c0_i32_0 = arith.constant 0 : i32
    %c0_i32_1 = arith.constant 0 : i32
    return %c0_i32, %c0_i32_0 : i32, i32
  }
  func.func @transform_3(%arg0: i32) -> (i32, i32) {
    %c0_i32 = arith.constant 0 : i32
    %c0_i32_0 = arith.constant 0 : i32
    return %arg0, %c0_i32 : i32, i32
  }
}

module attributes {stable_mosaic.version = 11 : i64} {
  func.func @_ln_linear_kernel(%arg0: i32, %arg1: i32, %arg2: memref<40x128xbf16, #tpu.memory_space<vmem>>, %arg3: memref<1x128xf32, #tpu.memory_space<vmem>>, %arg4: memref<1x128xf32, #tpu.memory_space<vmem>>, %arg5: memref<128x384xbf16, #tpu.memory_space<vmem>>, %arg6: memref<1x384xf32, #tpu.memory_space<vmem>>, %arg7: memref<40x384xbf16, #tpu.memory_space<vmem>>, %arg8: memref<40x128xbf16, #tpu.memory_space<vmem>>) attributes {dimension_semantics = [#tpu.dimension_semantics<parallel>, #tpu.dimension_semantics<arbitrary>], iteration_bounds = array<i64: 1, 1>, scalar_prefetch = 0 : i64, scratch_operands = 1 : i64, tpu.core_type = #tpu.core_type<tc>, window_params = [{transform_indices = @transform_0, window_bounds = array<i64: 40, 128>}, {pipeline_mode = #tpu.pipeline_mode<synchronous>, transform_indices = @transform_1, window_bounds = array<i64: 1, 128>}, {pipeline_mode = #tpu.pipeline_mode<synchronous>, transform_indices = @transform_2, window_bounds = array<i64: 1, 128>}, {transform_indices = @transform_3, window_bounds = array<i64: 128, 384>}, {transform_indices = @transform_4, window_bounds = array<i64: 1, 384>}, {transform_indices = @transform_5, window_bounds = array<i64: 40, 384>}]} {
    %c0_i32 = arith.constant 0 : i32
    %0 = arith.cmpi eq, %arg1, %c0_i32 : i32
    %1 = arith.extui %0 : i1 to i32
    %c0_i32_0 = arith.constant 0 : i32
    %2 = arith.cmpi ne, %1, %c0_i32_0 : i32
    scf.if %2 {
      %c0_8 = arith.constant 0 : index
      %c0_9 = arith.constant 0 : index
      %11 = vector.load %arg2[%c0_8, %c0_9] : memref<40x128xbf16, #tpu.memory_space<vmem>>, vector<40x128xbf16>
      %12 = arith.extf %11 : vector<40x128xbf16> to vector<40x128xf32>
      %cst_10 = arith.constant dense<0.000000e+00> : vector<40xf32>
      %13 = vector.multi_reduction <add>, %12, %cst_10 [1] : vector<40x128xf32> to vector<40xf32>
      %14 = vector.shape_cast %13 : vector<40xf32> to vector<40x1xf32>
      %cst_11 = arith.constant 1.280000e+02 : f32
      %15 = vector.broadcast %cst_11 : f32 to vector<40x1xf32>
      %16 = arith.divf %14, %15 : vector<40x1xf32>
      %17 = vector.broadcast %16 : vector<40x1xf32> to vector<40x128xf32>
      %18 = arith.subf %12, %17 : vector<40x128xf32>
      %19 = arith.mulf %18, %18 : vector<40x128xf32>
      %cst_12 = arith.constant dense<0.000000e+00> : vector<40xf32>
      %20 = vector.multi_reduction <add>, %19, %cst_12 [1] : vector<40x128xf32> to vector<40xf32>
      %21 = vector.shape_cast %20 : vector<40xf32> to vector<40x1xf32>
      %cst_13 = arith.constant 1.280000e+02 : f32
      %22 = vector.broadcast %cst_13 : f32 to vector<40x1xf32>
      %23 = arith.divf %21, %22 : vector<40x1xf32>
      %cst_14 = arith.constant 9.99999974E-6 : f32
      %24 = vector.broadcast %cst_14 : f32 to vector<40x1xf32>
      %25 = arith.addf %23, %24 : vector<40x1xf32>
      %26 = math.rsqrt %25 : vector<40x1xf32>
      %27 = vector.broadcast %26 : vector<40x1xf32> to vector<40x128xf32>
      %28 = arith.mulf %18, %27 : vector<40x128xf32>
      %c0_15 = arith.constant 0 : index
      %c0_16 = arith.constant 0 : index
      %29 = vector.load %arg3[%c0_15, %c0_16] : memref<1x128xf32, #tpu.memory_space<vmem>>, vector<1x128xf32>
      %30 = vector.broadcast %29 : vector<1x128xf32> to vector<40x128xf32>
      %31 = arith.mulf %28, %30 : vector<40x128xf32>
      %c0_17 = arith.constant 0 : index
      %c0_18 = arith.constant 0 : index
      %32 = vector.load %arg4[%c0_17, %c0_18] : memref<1x128xf32, #tpu.memory_space<vmem>>, vector<1x128xf32>
      %33 = vector.broadcast %32 : vector<1x128xf32> to vector<40x128xf32>
      %34 = arith.addf %31, %33 : vector<40x128xf32>
      %35 = arith.truncf %34 : vector<40x128xf32> to vector<40x128xbf16>
      %c0_19 = arith.constant 0 : index
      %c0_20 = arith.constant 0 : index
      %36 = vector.load %arg8[%c0_19, %c0_20] : memref<40x128xbf16, #tpu.memory_space<vmem>>, vector<40x128xbf16>
      tpu.vector_store %arg8[%c0_19, %c0_20], %35 {strides = array<i32>} : memref<40x128xbf16, #tpu.memory_space<vmem>>, vector<40x128xbf16>,
    } else {
    }
    %c0 = arith.constant 0 : index
    %c0_1 = arith.constant 0 : index
    %3 = vector.load %arg8[%c0, %c0_1] : memref<40x128xbf16, #tpu.memory_space<vmem>>, vector<40x128xbf16>
    %c0_2 = arith.constant 0 : index
    %c0_3 = arith.constant 0 : index
    %4 = vector.load %arg5[%c0_2, %c0_3] : memref<128x384xbf16, #tpu.memory_space<vmem>>, vector<128x384xbf16>
    %cst = arith.constant dense<0.000000e+00> : vector<40x384xf32>
    %5 = tpu.matmul %3, %4, %cst {dimension_numbers = #tpu.dot_dimension_numbers<[1], [0], [0], [1], [0, 0, 1, 1], [], []>} : vector<40x128xbf16>, vector<128x384xbf16>, vector<40x384xf32> -> vector<40x384xf32>
    %c0_4 = arith.constant 0 : index
    %c0_5 = arith.constant 0 : index
    %6 = vector.load %arg6[%c0_4, %c0_5] : memref<1x384xf32, #tpu.memory_space<vmem>>, vector<1x384xf32>
    %7 = vector.broadcast %6 : vector<1x384xf32> to vector<40x384xf32>
    %8 = arith.addf %5, %7 : vector<40x384xf32>
    %9 = arith.truncf %8 : vector<40x384xf32> to vector<40x384xbf16>
    %c0_6 = arith.constant 0 : index
    %c0_7 = arith.constant 0 : index
    %10 = vector.load %arg7[%c0_6, %c0_7] : memref<40x384xbf16, #tpu.memory_space<vmem>>, vector<40x384xbf16>
    tpu.vector_store %arg7[%c0_6, %c0_7], %9 {strides = array<i32>} : memref<40x384xbf16, #tpu.memory_space<vmem>>, vector<40x384xbf16>,
    return
  }
  func.func @transform_0(%arg0: i32, %arg1: i32) -> (i32, i32) {
    %c0_i32 = arith.constant 0 : i32
    %c0_i32_0 = arith.constant 0 : i32
    return %arg0, %c0_i32 : i32, i32
  }
  func.func @transform_1(%arg0: i32, %arg1: i32) -> (i32, i32) {
    %c0_i32 = arith.constant 0 : i32
    %c0_i32_0 = arith.constant 0 : i32
    %c0_i32_1 = arith.constant 0 : i32
    return %c0_i32, %c0_i32_0 : i32, i32
  }
  func.func @transform_2(%arg0: i32, %arg1: i32) -> (i32, i32) {
    %c0_i32 = arith.constant 0 : i32
    %c0_i32_0 = arith.constant 0 : i32
    %c0_i32_1 = arith.constant 0 : i32
    return %c0_i32, %c0_i32_0 : i32, i32
  }
  func.func @transform_3(%arg0: i32, %arg1: i32) -> (i32, i32) {
    %c0_i32 = arith.constant 0 : i32
    %c0_i32_0 = arith.constant 0 : i32
    return %c0_i32, %arg1 : i32, i32
  }
  func.func @transform_4(%arg0: i32, %arg1: i32) -> (i32, i32) {
    %c0_i32 = arith.constant 0 : i32
    %c0_i32_0 = arith.constant 0 : i32
    return %c0_i32, %arg1 : i32, i32
  }
  func.func @transform_5(%arg0: i32, %arg1: i32) -> (i32, i32) {
    %c0_i32 = arith.constant 0 : i32
    return %arg0, %arg1 : i32, i32
  }
}

module attributes {stable_mosaic.version = 11 : i64} {
  func.func @_attention_group_kernel(%arg0: i32, %arg1: i32, %arg2: memref<1x17x128xbf16, #tpu.memory_space<vmem>>, %arg3: memref<1x17x128xbf16, #tpu.memory_space<vmem>>, %arg4: memref<1x17x128xbf16, #tpu.memory_space<vmem>>, %arg5: memref<1x17x128xbf16, #tpu.memory_space<vmem>>) attributes {dimension_semantics = [#tpu.dimension_semantics<parallel>, #tpu.dimension_semantics<parallel>], iteration_bounds = array<i64: 2, 1>, scalar_prefetch = 0 : i64, scratch_operands = 0 : i64, tpu.core_type = #tpu.core_type<tc>, window_params = [{transform_indices = @transform_0, window_bounds = array<i64: 1, 17, 128>}, {transform_indices = @transform_1, window_bounds = array<i64: 1, 17, 128>}, {transform_indices = @transform_2, window_bounds = array<i64: 1, 17, 128>}, {transform_indices = @transform_3, window_bounds = array<i64: 1, 17, 128>}]} {
    %c0 = arith.constant 0 : index
    %c0_0 = arith.constant 0 : index
    %c0_1 = arith.constant 0 : index
    %0 = vector.load %arg2[%c0, %c0_0, %c0_1] : memref<1x17x128xbf16, #tpu.memory_space<vmem>>, vector<1x17x64xbf16>
    %1 = vector.shape_cast %0 : vector<1x17x64xbf16> to vector<17x64xbf16>
    %c0_2 = arith.constant 0 : index
    %c0_3 = arith.constant 0 : index
    %c0_4 = arith.constant 0 : index
    %2 = vector.load %arg3[%c0_2, %c0_3, %c0_4] : memref<1x17x128xbf16, #tpu.memory_space<vmem>>, vector<1x17x64xbf16>
    %3 = vector.shape_cast %2 : vector<1x17x64xbf16> to vector<17x64xbf16>
    %c0_5 = arith.constant 0 : index
    %c0_6 = arith.constant 0 : index
    %c0_7 = arith.constant 0 : index
    %4 = vector.load %arg4[%c0_5, %c0_6, %c0_7] : memref<1x17x128xbf16, #tpu.memory_space<vmem>>, vector<1x17x64xbf16>
    %5 = vector.shape_cast %4 : vector<1x17x64xbf16> to vector<17x64xbf16>
    %cst = arith.constant dense<0.000000e+00> : vector<17x17xf32>
    %6 = tpu.matmul %1, %3, %cst {dimension_numbers = #tpu.dot_dimension_numbers<[1], [1], [0], [0], [0, 0, 1, 0], [], []>} : vector<17x64xbf16>, vector<17x64xbf16>, vector<17x17xf32> -> vector<17x17xf32>
    %cst_8 = arith.constant 1.250000e-01 : f32
    %7 = vector.broadcast %cst_8 : f32 to vector<17x17xf32>
    %8 = arith.mulf %6, %7 : vector<17x17xf32>
    %cst_9 = arith.constant dense<0xFF800000> : vector<17xf32>
    %9 = vector.multi_reduction <maximumf>, %8, %cst_9 [1] : vector<17x17xf32> to vector<17xf32>
    %10 = vector.shape_cast %9 : vector<17xf32> to vector<17x1xf32>
    %11 = vector.broadcast %10 : vector<17x1xf32> to vector<17x17xf32>
    %12 = arith.subf %8, %11 : vector<17x17xf32>
    %13 = math.exp %12 : vector<17x17xf32>
    %cst_10 = arith.constant dense<0.000000e+00> : vector<17xf32>
    %14 = vector.multi_reduction <add>, %13, %cst_10 [1] : vector<17x17xf32> to vector<17xf32>
    %15 = vector.shape_cast %14 : vector<17xf32> to vector<17x1xf32>
    %16 = tpu.reciprocal %15 {approx = true} : vector<17x1xf32> -> vector<17x1xf32>
    %17 = vector.broadcast %16 : vector<17x1xf32> to vector<17x17xf32>
    %18 = arith.mulf %13, %17 : vector<17x17xf32>
    %19 = arith.truncf %18 : vector<17x17xf32> to vector<17x17xbf16>
    %cst_11 = arith.constant dense<0.000000e+00> : vector<17x64xf32>
    %20 = tpu.matmul %19, %5, %cst_11 {dimension_numbers = #tpu.dot_dimension_numbers<[1], [0], [0], [1], [0, 0, 1, 1], [], []>} : vector<17x17xbf16>, vector<17x64xbf16>, vector<17x64xf32> -> vector<17x64xf32>
    %c0_12 = arith.constant 0 : index
    %c0_13 = arith.constant 0 : index
    %c64 = arith.constant 64 : index
    %21 = vector.load %arg2[%c0_12, %c0_13, %c64] : memref<1x17x128xbf16, #tpu.memory_space<vmem>>, vector<1x17x64xbf16>
    %22 = vector.shape_cast %21 : vector<1x17x64xbf16> to vector<17x64xbf16>
    %c0_14 = arith.constant 0 : index
    %c0_15 = arith.constant 0 : index
    %c64_16 = arith.constant 64 : index
    %23 = vector.load %arg3[%c0_14, %c0_15, %c64_16] : memref<1x17x128xbf16, #tpu.memory_space<vmem>>, vector<1x17x64xbf16>
    %24 = vector.shape_cast %23 : vector<1x17x64xbf16> to vector<17x64xbf16>
    %c0_17 = arith.constant 0 : index
    %c0_18 = arith.constant 0 : index
    %c64_19 = arith.constant 64 : index
    %25 = vector.load %arg4[%c0_17, %c0_18, %c64_19] : memref<1x17x128xbf16, #tpu.memory_space<vmem>>, vector<1x17x64xbf16>
    %26 = vector.shape_cast %25 : vector<1x17x64xbf16> to vector<17x64xbf16>
    %cst_20 = arith.constant dense<0.000000e+00> : vector<17x17xf32>
    %27 = tpu.matmul %22, %24, %cst_20 {dimension_numbers = #tpu.dot_dimension_numbers<[1], [1], [0], [0], [0, 0, 1, 0], [], []>} : vector<17x64xbf16>, vector<17x64xbf16>, vector<17x17xf32> -> vector<17x17xf32>
    %cst_21 = arith.constant 1.250000e-01 : f32
    %28 = vector.broadcast %cst_21 : f32 to vector<17x17xf32>
    %29 = arith.mulf %27, %28 : vector<17x17xf32>
    %cst_22 = arith.constant dense<0xFF800000> : vector<17xf32>
    %30 = vector.multi_reduction <maximumf>, %29, %cst_22 [1] : vector<17x17xf32> to vector<17xf32>
    %31 = vector.shape_cast %30 : vector<17xf32> to vector<17x1xf32>
    %32 = vector.broadcast %31 : vector<17x1xf32> to vector<17x17xf32>
    %33 = arith.subf %29, %32 : vector<17x17xf32>
    %34 = math.exp %33 : vector<17x17xf32>
    %cst_23 = arith.constant dense<0.000000e+00> : vector<17xf32>
    %35 = vector.multi_reduction <add>, %34, %cst_23 [1] : vector<17x17xf32> to vector<17xf32>
    %36 = vector.shape_cast %35 : vector<17xf32> to vector<17x1xf32>
    %37 = tpu.reciprocal %36 {approx = true} : vector<17x1xf32> -> vector<17x1xf32>
    %38 = vector.broadcast %37 : vector<17x1xf32> to vector<17x17xf32>
    %39 = arith.mulf %34, %38 : vector<17x17xf32>
    %40 = arith.truncf %39 : vector<17x17xf32> to vector<17x17xbf16>
    %cst_24 = arith.constant dense<0.000000e+00> : vector<17x64xf32>
    %41 = tpu.matmul %40, %26, %cst_24 {dimension_numbers = #tpu.dot_dimension_numbers<[1], [0], [0], [1], [0, 0, 1, 1], [], []>} : vector<17x17xbf16>, vector<17x64xbf16>, vector<17x64xf32> -> vector<17x64xf32>
    %42 = tpu.concatenate %20, %41 in 1 : vector<17x64xf32>, vector<17x64xf32> -> vector<17x128xf32>
    %43 = arith.truncf %42 : vector<17x128xf32> to vector<17x128xbf16>
    %c0_25 = arith.constant 0 : index
    %c0_26 = arith.constant 0 : index
    %c0_27 = arith.constant 0 : index
    %44 = vector.load %arg5[%c0_25, %c0_26, %c0_27] : memref<1x17x128xbf16, #tpu.memory_space<vmem>>, vector<1x17x128xbf16>
    %45 = vector.shape_cast %44 : vector<1x17x128xbf16> to vector<17x128xbf16>
    %46 = vector.shape_cast %43 : vector<17x128xbf16> to vector<1x17x128xbf16>
    tpu.vector_store %arg5[%c0_25, %c0_26, %c0_27], %46 {strides = array<i32>} : memref<1x17x128xbf16, #tpu.memory_space<vmem>>, vector<1x17x128xbf16>,
    return
  }
  func.func @transform_0(%arg0: i32, %arg1: i32) -> (i32, i32, i32) {
    %c0_i32 = arith.constant 0 : i32
    %c0_i32_0 = arith.constant 0 : i32
    return %arg0, %c0_i32, %arg1 : i32, i32, i32
  }
  func.func @transform_1(%arg0: i32, %arg1: i32) -> (i32, i32, i32) {
    %c1_i32 = arith.constant 1 : i32
    %0 = arith.addi %arg1, %c1_i32 : i32
    %c0_i32 = arith.constant 0 : i32
    %c0_i32_0 = arith.constant 0 : i32
    return %arg0, %c0_i32, %0 : i32, i32, i32
  }
  func.func @transform_2(%arg0: i32, %arg1: i32) -> (i32, i32, i32) {
    %c2_i32 = arith.constant 2 : i32
    %0 = arith.addi %arg1, %c2_i32 : i32
    %c0_i32 = arith.constant 0 : i32
    %c0_i32_0 = arith.constant 0 : i32
    return %arg0, %c0_i32, %0 : i32, i32, i32
  }
  func.func @transform_3(%arg0: i32, %arg1: i32) -> (i32, i32, i32) {
    %c0_i32 = arith.constant 0 : i32
    %c0_i32_0 = arith.constant 0 : i32
    return %arg0, %c0_i32, %arg1 : i32, i32, i32
  }
}

module attributes {stable_mosaic.version = 11 : i64} {
  func.func @_linear_kernel(%arg0: i32, %arg1: i32, %arg2: memref<40x128xbf16, #tpu.memory_space<vmem>>, %arg3: memref<128x128xbf16, #tpu.memory_space<vmem>>, %arg4: memref<1x128xf32, #tpu.memory_space<vmem>>, %arg5: memref<40x128xbf16, #tpu.memory_space<vmem>>, %arg6: memref<40x128xbf16, #tpu.memory_space<vmem>>) attributes {dimension_semantics = [#tpu.dimension_semantics<parallel>, #tpu.dimension_semantics<parallel>], iteration_bounds = array<i64: 1, 1>, scalar_prefetch = 0 : i64, scratch_operands = 0 : i64, tpu.core_type = #tpu.core_type<tc>, window_params = [{transform_indices = @transform_0, window_bounds = array<i64: 40, 128>}, {transform_indices = @transform_1, window_bounds = array<i64: 128, 128>}, {transform_indices = @transform_2, window_bounds = array<i64: 1, 128>}, {transform_indices = @transform_3, window_bounds = array<i64: 40, 128>}, {transform_indices = @transform_4, window_bounds = array<i64: 40, 128>}]} {
    %c0 = arith.constant 0 : index
    %c0_0 = arith.constant 0 : index
    %0 = vector.load %arg2[%c0, %c0_0] : memref<40x128xbf16, #tpu.memory_space<vmem>>, vector<40x128xbf16>
    %c0_1 = arith.constant 0 : index
    %c0_2 = arith.constant 0 : index
    %1 = vector.load %arg3[%c0_1, %c0_2] : memref<128x128xbf16, #tpu.memory_space<vmem>>, vector<128x128xbf16>
    %cst = arith.constant dense<0.000000e+00> : vector<40x128xf32>
    %2 = tpu.matmul %0, %1, %cst {dimension_numbers = #tpu.dot_dimension_numbers<[1], [0], [0], [1], [0, 0, 1, 1], [], []>} : vector<40x128xbf16>, vector<128x128xbf16>, vector<40x128xf32> -> vector<40x128xf32>
    %c0_3 = arith.constant 0 : index
    %c0_4 = arith.constant 0 : index
    %3 = vector.load %arg4[%c0_3, %c0_4] : memref<1x128xf32, #tpu.memory_space<vmem>>, vector<1x128xf32>
    %4 = vector.broadcast %3 : vector<1x128xf32> to vector<40x128xf32>
    %5 = arith.addf %2, %4 : vector<40x128xf32>
    %c0_5 = arith.constant 0 : index
    %c0_6 = arith.constant 0 : index
    %6 = vector.load %arg5[%c0_5, %c0_6] : memref<40x128xbf16, #tpu.memory_space<vmem>>, vector<40x128xbf16>
    %7 = arith.extf %6 : vector<40x128xbf16> to vector<40x128xf32>
    %8 = arith.addf %5, %7 : vector<40x128xf32>
    %9 = arith.truncf %8 : vector<40x128xf32> to vector<40x128xbf16>
    %c0_7 = arith.constant 0 : index
    %c0_8 = arith.constant 0 : index
    %10 = vector.load %arg6[%c0_7, %c0_8] : memref<40x128xbf16, #tpu.memory_space<vmem>>, vector<40x128xbf16>
    tpu.vector_store %arg6[%c0_7, %c0_8], %9 {strides = array<i32>} : memref<40x128xbf16, #tpu.memory_space<vmem>>, vector<40x128xbf16>,
    return
  }
  func.func @transform_0(%arg0: i32, %arg1: i32) -> (i32, i32) {
    %c0_i32 = arith.constant 0 : i32
    %c0_i32_0 = arith.constant 0 : i32
    return %arg0, %c0_i32 : i32, i32
  }
  func.func @transform_1(%arg0: i32, %arg1: i32) -> (i32, i32) {
    %c0_i32 = arith.constant 0 : i32
    %c0_i32_0 = arith.constant 0 : i32
    return %c0_i32, %arg1 : i32, i32
  }
  func.func @transform_2(%arg0: i32, %arg1: i32) -> (i32, i32) {
    %c0_i32 = arith.constant 0 : i32
    %c0_i32_0 = arith.constant 0 : i32
    return %c0_i32, %arg1 : i32, i32
  }
  func.func @transform_3(%arg0: i32, %arg1: i32) -> (i32, i32) {
    %c0_i32 = arith.constant 0 : i32
    return %arg0, %arg1 : i32, i32
  }
  func.func @transform_4(%arg0: i32, %arg1: i32) -> (i32, i32) {
    %c0_i32 = arith.constant 0 : i32
    return %arg0, %arg1 : i32, i32
  }
}

module attributes {stable_mosaic.version = 11 : i64} {
  func.func @_ln_linear_kernel(%arg0: i32, %arg1: i32, %arg2: memref<40x128xbf16, #tpu.memory_space<vmem>>, %arg3: memref<1x128xf32, #tpu.memory_space<vmem>>, %arg4: memref<1x128xf32, #tpu.memory_space<vmem>>, %arg5: memref<128x512xbf16, #tpu.memory_space<vmem>>, %arg6: memref<1x512xf32, #tpu.memory_space<vmem>>, %arg7: memref<40x512xbf16, #tpu.memory_space<vmem>>, %arg8: memref<40x128xbf16, #tpu.memory_space<vmem>>) attributes {dimension_semantics = [#tpu.dimension_semantics<parallel>, #tpu.dimension_semantics<arbitrary>], iteration_bounds = array<i64: 1, 1>, scalar_prefetch = 0 : i64, scratch_operands = 1 : i64, tpu.core_type = #tpu.core_type<tc>, window_params = [{transform_indices = @transform_0, window_bounds = array<i64: 40, 128>}, {pipeline_mode = #tpu.pipeline_mode<synchronous>, transform_indices = @transform_1, window_bounds = array<i64: 1, 128>}, {pipeline_mode = #tpu.pipeline_mode<synchronous>, transform_indices = @transform_2, window_bounds = array<i64: 1, 128>}, {transform_indices = @transform_3, window_bounds = array<i64: 128, 512>}, {transform_indices = @transform_4, window_bounds = array<i64: 1, 512>}, {transform_indices = @transform_5, window_bounds = array<i64: 40, 512>}]} {
    %c0_i32 = arith.constant 0 : i32
    %0 = arith.cmpi eq, %arg1, %c0_i32 : i32
    %1 = arith.extui %0 : i1 to i32
    %c0_i32_0 = arith.constant 0 : i32
    %2 = arith.cmpi ne, %1, %c0_i32_0 : i32
    scf.if %2 {
      %c0_12 = arith.constant 0 : index
      %c0_13 = arith.constant 0 : index
      %24 = vector.load %arg2[%c0_12, %c0_13] : memref<40x128xbf16, #tpu.memory_space<vmem>>, vector<40x128xbf16>
      %25 = arith.extf %24 : vector<40x128xbf16> to vector<40x128xf32>
      %cst_14 = arith.constant dense<0.000000e+00> : vector<40xf32>
      %26 = vector.multi_reduction <add>, %25, %cst_14 [1] : vector<40x128xf32> to vector<40xf32>
      %27 = vector.shape_cast %26 : vector<40xf32> to vector<40x1xf32>
      %cst_15 = arith.constant 1.280000e+02 : f32
      %28 = vector.broadcast %cst_15 : f32 to vector<40x1xf32>
      %29 = arith.divf %27, %28 : vector<40x1xf32>
      %30 = vector.broadcast %29 : vector<40x1xf32> to vector<40x128xf32>
      %31 = arith.subf %25, %30 : vector<40x128xf32>
      %32 = arith.mulf %31, %31 : vector<40x128xf32>
      %cst_16 = arith.constant dense<0.000000e+00> : vector<40xf32>
      %33 = vector.multi_reduction <add>, %32, %cst_16 [1] : vector<40x128xf32> to vector<40xf32>
      %34 = vector.shape_cast %33 : vector<40xf32> to vector<40x1xf32>
      %cst_17 = arith.constant 1.280000e+02 : f32
      %35 = vector.broadcast %cst_17 : f32 to vector<40x1xf32>
      %36 = arith.divf %34, %35 : vector<40x1xf32>
      %cst_18 = arith.constant 9.99999974E-6 : f32
      %37 = vector.broadcast %cst_18 : f32 to vector<40x1xf32>
      %38 = arith.addf %36, %37 : vector<40x1xf32>
      %39 = math.rsqrt %38 : vector<40x1xf32>
      %40 = vector.broadcast %39 : vector<40x1xf32> to vector<40x128xf32>
      %41 = arith.mulf %31, %40 : vector<40x128xf32>
      %c0_19 = arith.constant 0 : index
      %c0_20 = arith.constant 0 : index
      %42 = vector.load %arg3[%c0_19, %c0_20] : memref<1x128xf32, #tpu.memory_space<vmem>>, vector<1x128xf32>
      %43 = vector.broadcast %42 : vector<1x128xf32> to vector<40x128xf32>
      %44 = arith.mulf %41, %43 : vector<40x128xf32>
      %c0_21 = arith.constant 0 : index
      %c0_22 = arith.constant 0 : index
      %45 = vector.load %arg4[%c0_21, %c0_22] : memref<1x128xf32, #tpu.memory_space<vmem>>, vector<1x128xf32>
      %46 = vector.broadcast %45 : vector<1x128xf32> to vector<40x128xf32>
      %47 = arith.addf %44, %46 : vector<40x128xf32>
      %48 = arith.truncf %47 : vector<40x128xf32> to vector<40x128xbf16>
      %c0_23 = arith.constant 0 : index
      %c0_24 = arith.constant 0 : index
      %49 = vector.load %arg8[%c0_23, %c0_24] : memref<40x128xbf16, #tpu.memory_space<vmem>>, vector<40x128xbf16>
      tpu.vector_store %arg8[%c0_23, %c0_24], %48 {strides = array<i32>} : memref<40x128xbf16, #tpu.memory_space<vmem>>, vector<40x128xbf16>,
    } else {
    }
    %c0 = arith.constant 0 : index
    %c0_1 = arith.constant 0 : index
    %3 = vector.load %arg8[%c0, %c0_1] : memref<40x128xbf16, #tpu.memory_space<vmem>>, vector<40x128xbf16>
    %c0_2 = arith.constant 0 : index
    %c0_3 = arith.constant 0 : index
    %4 = vector.load %arg5[%c0_2, %c0_3] : memref<128x512xbf16, #tpu.memory_space<vmem>>, vector<128x512xbf16>
    %cst = arith.constant dense<0.000000e+00> : vector<40x512xf32>
    %5 = tpu.matmul %3, %4, %cst {dimension_numbers = #tpu.dot_dimension_numbers<[1], [0], [0], [1], [0, 0, 1, 1], [], []>} : vector<40x128xbf16>, vector<128x512xbf16>, vector<40x512xf32> -> vector<40x512xf32>
    %c0_4 = arith.constant 0 : index
    %c0_5 = arith.constant 0 : index
    %6 = vector.load %arg6[%c0_4, %c0_5] : memref<1x512xf32, #tpu.memory_space<vmem>>, vector<1x512xf32>
    %7 = vector.broadcast %6 : vector<1x512xf32> to vector<40x512xf32>
    %8 = arith.addf %5, %7 : vector<40x512xf32>
    %cst_6 = arith.constant 5.000000e-01 : f32
    %9 = vector.broadcast %cst_6 : f32 to vector<40x512xf32>
    %10 = arith.mulf %9, %8 : vector<40x512xf32>
    %11 = arith.mulf %8, %8 : vector<40x512xf32>
    %12 = arith.mulf %11, %8 : vector<40x512xf32>
    %cst_7 = arith.constant 4.471500e-02 : f32
    %13 = vector.broadcast %cst_7 : f32 to vector<40x512xf32>
    %14 = arith.mulf %13, %12 : vector<40x512xf32>
    %15 = arith.addf %8, %14 : vector<40x512xf32>
    %cst_8 = arith.constant 0.797884583 : f32
    %16 = vector.broadcast %cst_8 : f32 to vector<40x512xf32>
    %17 = arith.mulf %16, %15 : vector<40x512xf32>
    %18 = math.tanh %17 : vector<40x512xf32>
    %cst_9 = arith.constant 1.000000e+00 : f32
    %19 = vector.broadcast %cst_9 : f32 to vector<40x512xf32>
    %20 = arith.addf %19, %18 : vector<40x512xf32>
    %21 = arith.mulf %10, %20 : vector<40x512xf32>
    %22 = arith.truncf %21 : vector<40x512xf32> to vector<40x512xbf16>
    %c0_10 = arith.constant 0 : index
    %c0_11 = arith.constant 0 : index
    %23 = vector.load %arg7[%c0_10, %c0_11] : memref<40x512xbf16, #tpu.memory_space<vmem>>, vector<40x512xbf16>
    tpu.vector_store %arg7[%c0_10, %c0_11], %22 {strides = array<i32>} : memref<40x512xbf16, #tpu.memory_space<vmem>>, vector<40x512xbf16>,
    return
  }
  func.func @transform_0(%arg0: i32, %arg1: i32) -> (i32, i32) {
    %c0_i32 = arith.constant 0 : i32
    %c0_i32_0 = arith.constant 0 : i32
    return %arg0, %c0_i32 : i32, i32
  }
  func.func @transform_1(%arg0: i32, %arg1: i32) -> (i32, i32) {
    %c0_i32 = arith.constant 0 : i32
    %c0_i32_0 = arith.constant 0 : i32
    %c0_i32_1 = arith.constant 0 : i32
    return %c0_i32, %c0_i32_0 : i32, i32
  }
  func.func @transform_2(%arg0: i32, %arg1: i32) -> (i32, i32) {
    %c0_i32 = arith.constant 0 : i32
    %c0_i32_0 = arith.constant 0 : i32
    %c0_i32_1 = arith.constant 0 : i32
    return %c0_i32, %c0_i32_0 : i32, i32
  }
  func.func @transform_3(%arg0: i32, %arg1: i32) -> (i32, i32) {
    %c0_i32 = arith.constant 0 : i32
    %c0_i32_0 = arith.constant 0 : i32
    return %c0_i32, %arg1 : i32, i32
  }
  func.func @transform_4(%arg0: i32, %arg1: i32) -> (i32, i32) {
    %c0_i32 = arith.constant 0 : i32
    %c0_i32_0 = arith.constant 0 : i32
    return %c0_i32, %arg1 : i32, i32
  }
  func.func @transform_5(%arg0: i32, %arg1: i32) -> (i32, i32) {
    %c0_i32 = arith.constant 0 : i32
    return %arg0, %arg1 : i32, i32
  }
}

module attributes {stable_mosaic.version = 11 : i64} {
  func.func @_linear_kernel(%arg0: i32, %arg1: i32, %arg2: memref<40x512xbf16, #tpu.memory_space<vmem>>, %arg3: memref<512x128xbf16, #tpu.memory_space<vmem>>, %arg4: memref<1x128xf32, #tpu.memory_space<vmem>>, %arg5: memref<40x128xbf16, #tpu.memory_space<vmem>>, %arg6: memref<40x128xbf16, #tpu.memory_space<vmem>>) attributes {dimension_semantics = [#tpu.dimension_semantics<parallel>, #tpu.dimension_semantics<parallel>], iteration_bounds = array<i64: 1, 1>, scalar_prefetch = 0 : i64, scratch_operands = 0 : i64, tpu.core_type = #tpu.core_type<tc>, window_params = [{transform_indices = @transform_0, window_bounds = array<i64: 40, 512>}, {transform_indices = @transform_1, window_bounds = array<i64: 512, 128>}, {transform_indices = @transform_2, window_bounds = array<i64: 1, 128>}, {transform_indices = @transform_3, window_bounds = array<i64: 40, 128>}, {transform_indices = @transform_4, window_bounds = array<i64: 40, 128>}]} {
    %c0 = arith.constant 0 : index
    %c0_0 = arith.constant 0 : index
    %0 = vector.load %arg2[%c0, %c0_0] : memref<40x512xbf16, #tpu.memory_space<vmem>>, vector<40x512xbf16>
    %c0_1 = arith.constant 0 : index
    %c0_2 = arith.constant 0 : index
    %1 = vector.load %arg3[%c0_1, %c0_2] : memref<512x128xbf16, #tpu.memory_space<vmem>>, vector<512x128xbf16>
    %cst = arith.constant dense<0.000000e+00> : vector<40x128xf32>
    %2 = tpu.matmul %0, %1, %cst {dimension_numbers = #tpu.dot_dimension_numbers<[1], [0], [0], [1], [0, 0, 1, 1], [], []>} : vector<40x512xbf16>, vector<512x128xbf16>, vector<40x128xf32> -> vector<40x128xf32>
    %c0_3 = arith.constant 0 : index
    %c0_4 = arith.constant 0 : index
    %3 = vector.load %arg4[%c0_3, %c0_4] : memref<1x128xf32, #tpu.memory_space<vmem>>, vector<1x128xf32>
    %4 = vector.broadcast %3 : vector<1x128xf32> to vector<40x128xf32>
    %5 = arith.addf %2, %4 : vector<40x128xf32>
    %c0_5 = arith.constant 0 : index
    %c0_6 = arith.constant 0 : index
    %6 = vector.load %arg5[%c0_5, %c0_6] : memref<40x128xbf16, #tpu.memory_space<vmem>>, vector<40x128xbf16>
    %7 = arith.extf %6 : vector<40x128xbf16> to vector<40x128xf32>
    %8 = arith.addf %5, %7 : vector<40x128xf32>
    %9 = arith.truncf %8 : vector<40x128xf32> to vector<40x128xbf16>
    %c0_7 = arith.constant 0 : index
    %c0_8 = arith.constant 0 : index
    %10 = vector.load %arg6[%c0_7, %c0_8] : memref<40x128xbf16, #tpu.memory_space<vmem>>, vector<40x128xbf16>
    tpu.vector_store %arg6[%c0_7, %c0_8], %9 {strides = array<i32>} : memref<40x128xbf16, #tpu.memory_space<vmem>>, vector<40x128xbf16>,
    return
  }
  func.func @transform_0(%arg0: i32, %arg1: i32) -> (i32, i32) {
    %c0_i32 = arith.constant 0 : i32
    %c0_i32_0 = arith.constant 0 : i32
    return %arg0, %c0_i32 : i32, i32
  }
  func.func @transform_1(%arg0: i32, %arg1: i32) -> (i32, i32) {
    %c0_i32 = arith.constant 0 : i32
    %c0_i32_0 = arith.constant 0 : i32
    return %c0_i32, %arg1 : i32, i32
  }
  func.func @transform_2(%arg0: i32, %arg1: i32) -> (i32, i32) {
    %c0_i32 = arith.constant 0 : i32
    %c0_i32_0 = arith.constant 0 : i32
    return %c0_i32, %arg1 : i32, i32
  }
  func.func @transform_3(%arg0: i32, %arg1: i32) -> (i32, i32) {
    %c0_i32 = arith.constant 0 : i32
    return %arg0, %arg1 : i32, i32
  }
  func.func @transform_4(%arg0: i32, %arg1: i32) -> (i32, i32) {
    %c0_i32 = arith.constant 0 : i32
    return %arg0, %arg1 : i32, i32
  }
}

module attributes {stable_mosaic.version = 11 : i64} {
  func.func @_layernorm_kernel(%arg0: i32, %arg1: memref<8x128xbf16, #tpu.memory_space<vmem>>, %arg2: memref<1x128xf32, #tpu.memory_space<vmem>>, %arg3: memref<1x128xf32, #tpu.memory_space<vmem>>, %arg4: memref<8x128xbf16, #tpu.memory_space<vmem>>) attributes {dimension_semantics = [#tpu.dimension_semantics<parallel>], iteration_bounds = array<i64: 1>, scalar_prefetch = 0 : i64, scratch_operands = 0 : i64, tpu.core_type = #tpu.core_type<tc>, window_params = [{transform_indices = @transform_0, window_bounds = array<i64: 8, 128>}, {pipeline_mode = #tpu.pipeline_mode<synchronous>, transform_indices = @transform_1, window_bounds = array<i64: 1, 128>}, {pipeline_mode = #tpu.pipeline_mode<synchronous>, transform_indices = @transform_2, window_bounds = array<i64: 1, 128>}, {transform_indices = @transform_3, window_bounds = array<i64: 8, 128>}]} {
    %c0 = arith.constant 0 : index
    %c0_0 = arith.constant 0 : index
    %0 = vector.load %arg1[%c0, %c0_0] : memref<8x128xbf16, #tpu.memory_space<vmem>>, vector<8x128xbf16>
    %1 = arith.extf %0 : vector<8x128xbf16> to vector<8x128xf32>
    %cst = arith.constant dense<0.000000e+00> : vector<8xf32>
    %2 = vector.multi_reduction <add>, %1, %cst [1] : vector<8x128xf32> to vector<8xf32>
    %3 = vector.shape_cast %2 : vector<8xf32> to vector<8x1xf32>
    %cst_1 = arith.constant 1.280000e+02 : f32
    %4 = vector.broadcast %cst_1 : f32 to vector<8x1xf32>
    %5 = arith.divf %3, %4 : vector<8x1xf32>
    %6 = vector.broadcast %5 : vector<8x1xf32> to vector<8x128xf32>
    %7 = arith.subf %1, %6 : vector<8x128xf32>
    %8 = arith.mulf %7, %7 : vector<8x128xf32>
    %cst_2 = arith.constant dense<0.000000e+00> : vector<8xf32>
    %9 = vector.multi_reduction <add>, %8, %cst_2 [1] : vector<8x128xf32> to vector<8xf32>
    %10 = vector.shape_cast %9 : vector<8xf32> to vector<8x1xf32>
    %cst_3 = arith.constant 1.280000e+02 : f32
    %11 = vector.broadcast %cst_3 : f32 to vector<8x1xf32>
    %12 = arith.divf %10, %11 : vector<8x1xf32>
    %cst_4 = arith.constant 9.99999974E-6 : f32
    %13 = vector.broadcast %cst_4 : f32 to vector<8x1xf32>
    %14 = arith.addf %12, %13 : vector<8x1xf32>
    %15 = math.rsqrt %14 : vector<8x1xf32>
    %16 = vector.broadcast %15 : vector<8x1xf32> to vector<8x128xf32>
    %17 = arith.mulf %7, %16 : vector<8x128xf32>
    %c0_5 = arith.constant 0 : index
    %c0_6 = arith.constant 0 : index
    %18 = vector.load %arg2[%c0_5, %c0_6] : memref<1x128xf32, #tpu.memory_space<vmem>>, vector<1x128xf32>
    %19 = vector.broadcast %18 : vector<1x128xf32> to vector<8x128xf32>
    %20 = arith.mulf %17, %19 : vector<8x128xf32>
    %c0_7 = arith.constant 0 : index
    %c0_8 = arith.constant 0 : index
    %21 = vector.load %arg3[%c0_7, %c0_8] : memref<1x128xf32, #tpu.memory_space<vmem>>, vector<1x128xf32>
    %22 = vector.broadcast %21 : vector<1x128xf32> to vector<8x128xf32>
    %23 = arith.addf %20, %22 : vector<8x128xf32>
    %24 = arith.truncf %23 : vector<8x128xf32> to vector<8x128xbf16>
    %c0_9 = arith.constant 0 : index
    %c0_10 = arith.constant 0 : index
    %25 = vector.load %arg4[%c0_9, %c0_10] : memref<8x128xbf16, #tpu.memory_space<vmem>>, vector<8x128xbf16>
    tpu.vector_store %arg4[%c0_9, %c0_10], %24 {strides = array<i32>} : memref<8x128xbf16, #tpu.memory_space<vmem>>, vector<8x128xbf16>,
    return
  }
  func.func @transform_0(%arg0: i32) -> (i32, i32) {
    %c0_i32 = arith.constant 0 : i32
    %c0_i32_0 = arith.constant 0 : i32
    return %arg0, %c0_i32 : i32, i32
  }
  func.func @transform_1(%arg0: i32) -> (i32, i32) {
    %c0_i32 = arith.constant 0 : i32
    %c0_i32_0 = arith.constant 0 : i32
    %c0_i32_1 = arith.constant 0 : i32
    return %c0_i32, %c0_i32_0 : i32, i32
  }
  func.func @transform_2(%arg0: i32) -> (i32, i32) {
    %c0_i32 = arith.constant 0 : i32
    %c0_i32_0 = arith.constant 0 : i32
    %c0_i32_1 = arith.constant 0 : i32
    return %c0_i32, %c0_i32_0 : i32, i32
  }
  func.func @transform_3(%arg0: i32) -> (i32, i32) {
    %c0_i32 = arith.constant 0 : i32
    %c0_i32_0 = arith.constant 0 : i32
    return %arg0, %c0_i32 : i32, i32
  }
}

module attributes {stable_mosaic.version = 11 : i64} {
  func.func @_linear_kernel(%arg0: i32, %arg1: i32, %arg2: memref<8x128xbf16, #tpu.memory_space<vmem>>, %arg3: memref<128x64xbf16, #tpu.memory_space<vmem>>, %arg4: memref<8x64xf32, #tpu.memory_space<vmem>>) attributes {dimension_semantics = [#tpu.dimension_semantics<parallel>, #tpu.dimension_semantics<parallel>], iteration_bounds = array<i64: 1, 1>, scalar_prefetch = 0 : i64, scratch_operands = 0 : i64, tpu.core_type = #tpu.core_type<tc>, window_params = [{transform_indices = @transform_0, window_bounds = array<i64: 8, 128>}, {transform_indices = @transform_1, window_bounds = array<i64: 128, 64>}, {transform_indices = @transform_2, window_bounds = array<i64: 8, 64>}]} {
    %c0 = arith.constant 0 : index
    %c0_0 = arith.constant 0 : index
    %0 = vector.load %arg2[%c0, %c0_0] : memref<8x128xbf16, #tpu.memory_space<vmem>>, vector<8x128xbf16>
    %c0_1 = arith.constant 0 : index
    %c0_2 = arith.constant 0 : index
    %1 = vector.load %arg3[%c0_1, %c0_2] : memref<128x64xbf16, #tpu.memory_space<vmem>>, vector<128x64xbf16>
    %cst = arith.constant dense<0.000000e+00> : vector<8x64xf32>
    %2 = tpu.matmul %0, %1, %cst {dimension_numbers = #tpu.dot_dimension_numbers<[1], [0], [0], [1], [0, 0, 1, 1], [], []>} : vector<8x128xbf16>, vector<128x64xbf16>, vector<8x64xf32> -> vector<8x64xf32>
    %c0_3 = arith.constant 0 : index
    %c0_4 = arith.constant 0 : index
    %3 = vector.load %arg4[%c0_3, %c0_4] : memref<8x64xf32, #tpu.memory_space<vmem>>, vector<8x64xf32>
    tpu.vector_store %arg4[%c0_3, %c0_4], %2 {strides = array<i32>} : memref<8x64xf32, #tpu.memory_space<vmem>>, vector<8x64xf32>,
    return
  }
  func.func @transform_0(%arg0: i32, %arg1: i32) -> (i32, i32) {
    %c0_i32 = arith.constant 0 : i32
    %c0_i32_0 = arith.constant 0 : i32
    return %arg0, %c0_i32 : i32, i32
  }
  func.func @transform_1(%arg0: i32, %arg1: i32) -> (i32, i32) {
    %c0_i32 = arith.constant 0 : i32
    %c0_i32_0 = arith.constant 0 : i32
    return %c0_i32, %arg1 : i32, i32
  }
  func.func @transform_2(%arg0: i32, %arg1: i32) -> (i32, i32) {
    %c0_i32 = arith.constant 0 : i32
    return %arg0, %arg1 : i32, i32
  }
}

module attributes {stable_mosaic.version = 11 : i64} {
  func.func @_attention_group_kernel(%arg0: i32, %arg1: i32, %arg2: memref<1x16x128xbf16, #tpu.memory_space<vmem>>, %arg3: memref<1x16x128xbf16, #tpu.memory_space<vmem>>, %arg4: memref<1x16x128xbf16, #tpu.memory_space<vmem>>, %arg5: memref<1x16x128xbf16, #tpu.memory_space<vmem>>) attributes {dimension_semantics = [#tpu.dimension_semantics<parallel>, #tpu.dimension_semantics<parallel>], iteration_bounds = array<i64: 2, 1>, scalar_prefetch = 0 : i64, scratch_operands = 0 : i64, tpu.core_type = #tpu.core_type<tc>, window_params = [{transform_indices = @transform_0, window_bounds = array<i64: 1, 16, 128>}, {transform_indices = @transform_1, window_bounds = array<i64: 1, 16, 128>}, {transform_indices = @transform_2, window_bounds = array<i64: 1, 16, 128>}, {transform_indices = @transform_3, window_bounds = array<i64: 1, 16, 128>}]} {
    %0 = tpu.iota {dimensions = array<i32: 0>} : vector<16x16xi32>
    %1 = tpu.iota {dimensions = array<i32: 1>} : vector<16x16xi32>
    %2 = arith.cmpi sle, %1, %0 : vector<16x16xi32>
    %cst = arith.constant 0.000000e+00 : f32
    %cst_0 = arith.constant -1.000000e+30 : f32
    %3 = vector.broadcast %cst : f32 to vector<16x16xf32>
    %4 = vector.broadcast %cst_0 : f32 to vector<16x16xf32>
    %5 = arith.select %2, %3, %4 : vector<16x16xi1>, vector<16x16xf32>
    %c0 = arith.constant 0 : index
    %c0_1 = arith.constant 0 : index
    %c0_2 = arith.constant 0 : index
    %6 = vector.load %arg2[%c0, %c0_1, %c0_2] : memref<1x16x128xbf16, #tpu.memory_space<vmem>>, vector<1x16x64xbf16>
    %7 = vector.shape_cast %6 : vector<1x16x64xbf16> to vector<16x64xbf16>
    %c0_3 = arith.constant 0 : index
    %c0_4 = arith.constant 0 : index
    %c0_5 = arith.constant 0 : index
    %8 = vector.load %arg3[%c0_3, %c0_4, %c0_5] : memref<1x16x128xbf16, #tpu.memory_space<vmem>>, vector<1x16x64xbf16>
    %9 = vector.shape_cast %8 : vector<1x16x64xbf16> to vector<16x64xbf16>
    %c0_6 = arith.constant 0 : index
    %c0_7 = arith.constant 0 : index
    %c0_8 = arith.constant 0 : index
    %10 = vector.load %arg4[%c0_6, %c0_7, %c0_8] : memref<1x16x128xbf16, #tpu.memory_space<vmem>>, vector<1x16x64xbf16>
    %11 = vector.shape_cast %10 : vector<1x16x64xbf16> to vector<16x64xbf16>
    %cst_9 = arith.constant dense<0.000000e+00> : vector<16x16xf32>
    %12 = tpu.matmul %7, %9, %cst_9 {dimension_numbers = #tpu.dot_dimension_numbers<[1], [1], [0], [0], [0, 0, 1, 0], [], []>} : vector<16x64xbf16>, vector<16x64xbf16>, vector<16x16xf32> -> vector<16x16xf32>
    %cst_10 = arith.constant 1.250000e-01 : f32
    %13 = vector.broadcast %cst_10 : f32 to vector<16x16xf32>
    %14 = arith.mulf %12, %13 : vector<16x16xf32>
    %15 = arith.addf %14, %5 : vector<16x16xf32>
    %cst_11 = arith.constant dense<0xFF800000> : vector<16xf32>
    %16 = vector.multi_reduction <maximumf>, %15, %cst_11 [1] : vector<16x16xf32> to vector<16xf32>
    %17 = vector.shape_cast %16 : vector<16xf32> to vector<16x1xf32>
    %18 = vector.broadcast %17 : vector<16x1xf32> to vector<16x16xf32>
    %19 = arith.subf %15, %18 : vector<16x16xf32>
    %20 = math.exp %19 : vector<16x16xf32>
    %cst_12 = arith.constant dense<0.000000e+00> : vector<16xf32>
    %21 = vector.multi_reduction <add>, %20, %cst_12 [1] : vector<16x16xf32> to vector<16xf32>
    %22 = vector.shape_cast %21 : vector<16xf32> to vector<16x1xf32>
    %23 = tpu.reciprocal %22 {approx = true} : vector<16x1xf32> -> vector<16x1xf32>
    %24 = vector.broadcast %23 : vector<16x1xf32> to vector<16x16xf32>
    %25 = arith.mulf %20, %24 : vector<16x16xf32>
    %26 = arith.truncf %25 : vector<16x16xf32> to vector<16x16xbf16>
    %cst_13 = arith.constant dense<0.000000e+00> : vector<16x64xf32>
    %27 = tpu.matmul %26, %11, %cst_13 {dimension_numbers = #tpu.dot_dimension_numbers<[1], [0], [0], [1], [0, 0, 1, 1], [], []>} : vector<16x16xbf16>, vector<16x64xbf16>, vector<16x64xf32> -> vector<16x64xf32>
    %c0_14 = arith.constant 0 : index
    %c0_15 = arith.constant 0 : index
    %c64 = arith.constant 64 : index
    %28 = vector.load %arg2[%c0_14, %c0_15, %c64] : memref<1x16x128xbf16, #tpu.memory_space<vmem>>, vector<1x16x64xbf16>
    %29 = vector.shape_cast %28 : vector<1x16x64xbf16> to vector<16x64xbf16>
    %c0_16 = arith.constant 0 : index
    %c0_17 = arith.constant 0 : index
    %c64_18 = arith.constant 64 : index
    %30 = vector.load %arg3[%c0_16, %c0_17, %c64_18] : memref<1x16x128xbf16, #tpu.memory_space<vmem>>, vector<1x16x64xbf16>
    %31 = vector.shape_cast %30 : vector<1x16x64xbf16> to vector<16x64xbf16>
    %c0_19 = arith.constant 0 : index
    %c0_20 = arith.constant 0 : index
    %c64_21 = arith.constant 64 : index
    %32 = vector.load %arg4[%c0_19, %c0_20, %c64_21] : memref<1x16x128xbf16, #tpu.memory_space<vmem>>, vector<1x16x64xbf16>
    %33 = vector.shape_cast %32 : vector<1x16x64xbf16> to vector<16x64xbf16>
    %cst_22 = arith.constant dense<0.000000e+00> : vector<16x16xf32>
    %34 = tpu.matmul %29, %31, %cst_22 {dimension_numbers = #tpu.dot_dimension_numbers<[1], [1], [0], [0], [0, 0, 1, 0], [], []>} : vector<16x64xbf16>, vector<16x64xbf16>, vector<16x16xf32> -> vector<16x16xf32>
    %cst_23 = arith.constant 1.250000e-01 : f32
    %35 = vector.broadcast %cst_23 : f32 to vector<16x16xf32>
    %36 = arith.mulf %34, %35 : vector<16x16xf32>
    %37 = arith.addf %36, %5 : vector<16x16xf32>
    %cst_24 = arith.constant dense<0xFF800000> : vector<16xf32>
    %38 = vector.multi_reduction <maximumf>, %37, %cst_24 [1] : vector<16x16xf32> to vector<16xf32>
    %39 = vector.shape_cast %38 : vector<16xf32> to vector<16x1xf32>
    %40 = vector.broadcast %39 : vector<16x1xf32> to vector<16x16xf32>
    %41 = arith.subf %37, %40 : vector<16x16xf32>
    %42 = math.exp %41 : vector<16x16xf32>
    %cst_25 = arith.constant dense<0.000000e+00> : vector<16xf32>
    %43 = vector.multi_reduction <add>, %42, %cst_25 [1] : vector<16x16xf32> to vector<16xf32>
    %44 = vector.shape_cast %43 : vector<16xf32> to vector<16x1xf32>
    %45 = tpu.reciprocal %44 {approx = true} : vector<16x1xf32> -> vector<16x1xf32>
    %46 = vector.broadcast %45 : vector<16x1xf32> to vector<16x16xf32>
    %47 = arith.mulf %42, %46 : vector<16x16xf32>
    %48 = arith.truncf %47 : vector<16x16xf32> to vector<16x16xbf16>
    %cst_26 = arith.constant dense<0.000000e+00> : vector<16x64xf32>
    %49 = tpu.matmul %48, %33, %cst_26 {dimension_numbers = #tpu.dot_dimension_numbers<[1], [0], [0], [1], [0, 0, 1, 1], [], []>} : vector<16x16xbf16>, vector<16x64xbf16>, vector<16x64xf32> -> vector<16x64xf32>
    %50 = tpu.concatenate %27, %49 in 1 : vector<16x64xf32>, vector<16x64xf32> -> vector<16x128xf32>
    %51 = arith.truncf %50 : vector<16x128xf32> to vector<16x128xbf16>
    %c0_27 = arith.constant 0 : index
    %c0_28 = arith.constant 0 : index
    %c0_29 = arith.constant 0 : index
    %52 = vector.load %arg5[%c0_27, %c0_28, %c0_29] : memref<1x16x128xbf16, #tpu.memory_space<vmem>>, vector<1x16x128xbf16>
    %53 = vector.shape_cast %52 : vector<1x16x128xbf16> to vector<16x128xbf16>
    %54 = vector.shape_cast %51 : vector<16x128xbf16> to vector<1x16x128xbf16>
    tpu.vector_store %arg5[%c0_27, %c0_28, %c0_29], %54 {strides = array<i32>} : memref<1x16x128xbf16, #tpu.memory_space<vmem>>, vector<1x16x128xbf16>,
    return
  }
  func.func @transform_0(%arg0: i32, %arg1: i32) -> (i32, i32, i32) {
    %c0_i32 = arith.constant 0 : i32
    %c0_i32_0 = arith.constant 0 : i32
    return %arg0, %c0_i32, %arg1 : i32, i32, i32
  }
  func.func @transform_1(%arg0: i32, %arg1: i32) -> (i32, i32, i32) {
    %c1_i32 = arith.constant 1 : i32
    %0 = arith.addi %arg1, %c1_i32 : i32
    %c0_i32 = arith.constant 0 : i32
    %c0_i32_0 = arith.constant 0 : i32
    return %arg0, %c0_i32, %0 : i32, i32, i32
  }
  func.func @transform_2(%arg0: i32, %arg1: i32) -> (i32, i32, i32) {
    %c2_i32 = arith.constant 2 : i32
    %0 = arith.addi %arg1, %c2_i32 : i32
    %c0_i32 = arith.constant 0 : i32
    %c0_i32_0 = arith.constant 0 : i32
    return %arg0, %c0_i32, %0 : i32, i32, i32
  }
  func.func @transform_3(%arg0: i32, %arg1: i32) -> (i32, i32, i32) {
    %c0_i32 = arith.constant 0 : i32
    %c0_i32_0 = arith.constant 0 : i32
    return %arg0, %c0_i32, %arg1 : i32, i32, i32
  }
}

module attributes {stable_mosaic.version = 11 : i64} {
  func.func @_ln_linear_kernel(%arg0: i32, %arg1: i32, %arg2: memref<32x128xbf16, #tpu.memory_space<vmem>>, %arg3: memref<1x128xf32, #tpu.memory_space<vmem>>, %arg4: memref<1x128xf32, #tpu.memory_space<vmem>>, %arg5: memref<128x384xbf16, #tpu.memory_space<vmem>>, %arg6: memref<1x384xf32, #tpu.memory_space<vmem>>, %arg7: memref<32x384xbf16, #tpu.memory_space<vmem>>, %arg8: memref<32x128xbf16, #tpu.memory_space<vmem>>) attributes {dimension_semantics = [#tpu.dimension_semantics<parallel>, #tpu.dimension_semantics<arbitrary>], iteration_bounds = array<i64: 1, 1>, scalar_prefetch = 0 : i64, scratch_operands = 1 : i64, tpu.core_type = #tpu.core_type<tc>, window_params = [{transform_indices = @transform_0, window_bounds = array<i64: 32, 128>}, {pipeline_mode = #tpu.pipeline_mode<synchronous>, transform_indices = @transform_1, window_bounds = array<i64: 1, 128>}, {pipeline_mode = #tpu.pipeline_mode<synchronous>, transform_indices = @transform_2, window_bounds = array<i64: 1, 128>}, {transform_indices = @transform_3, window_bounds = array<i64: 128, 384>}, {transform_indices = @transform_4, window_bounds = array<i64: 1, 384>}, {transform_indices = @transform_5, window_bounds = array<i64: 32, 384>}]} {
    %c0_i32 = arith.constant 0 : i32
    %0 = arith.cmpi eq, %arg1, %c0_i32 : i32
    %1 = arith.extui %0 : i1 to i32
    %c0_i32_0 = arith.constant 0 : i32
    %2 = arith.cmpi ne, %1, %c0_i32_0 : i32
    scf.if %2 {
      %c0_8 = arith.constant 0 : index
      %c0_9 = arith.constant 0 : index
      %11 = vector.load %arg2[%c0_8, %c0_9] : memref<32x128xbf16, #tpu.memory_space<vmem>>, vector<32x128xbf16>
      %12 = arith.extf %11 : vector<32x128xbf16> to vector<32x128xf32>
      %cst_10 = arith.constant dense<0.000000e+00> : vector<32xf32>
      %13 = vector.multi_reduction <add>, %12, %cst_10 [1] : vector<32x128xf32> to vector<32xf32>
      %14 = vector.shape_cast %13 : vector<32xf32> to vector<32x1xf32>
      %cst_11 = arith.constant 1.280000e+02 : f32
      %15 = vector.broadcast %cst_11 : f32 to vector<32x1xf32>
      %16 = arith.divf %14, %15 : vector<32x1xf32>
      %17 = vector.broadcast %16 : vector<32x1xf32> to vector<32x128xf32>
      %18 = arith.subf %12, %17 : vector<32x128xf32>
      %19 = arith.mulf %18, %18 : vector<32x128xf32>
      %cst_12 = arith.constant dense<0.000000e+00> : vector<32xf32>
      %20 = vector.multi_reduction <add>, %19, %cst_12 [1] : vector<32x128xf32> to vector<32xf32>
      %21 = vector.shape_cast %20 : vector<32xf32> to vector<32x1xf32>
      %cst_13 = arith.constant 1.280000e+02 : f32
      %22 = vector.broadcast %cst_13 : f32 to vector<32x1xf32>
      %23 = arith.divf %21, %22 : vector<32x1xf32>
      %cst_14 = arith.constant 9.99999974E-6 : f32
      %24 = vector.broadcast %cst_14 : f32 to vector<32x1xf32>
      %25 = arith.addf %23, %24 : vector<32x1xf32>
      %26 = math.rsqrt %25 : vector<32x1xf32>
      %27 = vector.broadcast %26 : vector<32x1xf32> to vector<32x128xf32>
      %28 = arith.mulf %18, %27 : vector<32x128xf32>
      %c0_15 = arith.constant 0 : index
      %c0_16 = arith.constant 0 : index
      %29 = vector.load %arg3[%c0_15, %c0_16] : memref<1x128xf32, #tpu.memory_space<vmem>>, vector<1x128xf32>
      %30 = vector.broadcast %29 : vector<1x128xf32> to vector<32x128xf32>
      %31 = arith.mulf %28, %30 : vector<32x128xf32>
      %c0_17 = arith.constant 0 : index
      %c0_18 = arith.constant 0 : index
      %32 = vector.load %arg4[%c0_17, %c0_18] : memref<1x128xf32, #tpu.memory_space<vmem>>, vector<1x128xf32>
      %33 = vector.broadcast %32 : vector<1x128xf32> to vector<32x128xf32>
      %34 = arith.addf %31, %33 : vector<32x128xf32>
      %35 = arith.truncf %34 : vector<32x128xf32> to vector<32x128xbf16>
      %c0_19 = arith.constant 0 : index
      %c0_20 = arith.constant 0 : index
      %36 = vector.load %arg8[%c0_19, %c0_20] : memref<32x128xbf16, #tpu.memory_space<vmem>>, vector<32x128xbf16>
      tpu.vector_store %arg8[%c0_19, %c0_20], %35 {strides = array<i32>} : memref<32x128xbf16, #tpu.memory_space<vmem>>, vector<32x128xbf16>,
    } else {
    }
    %c0 = arith.constant 0 : index
    %c0_1 = arith.constant 0 : index
    %3 = vector.load %arg8[%c0, %c0_1] : memref<32x128xbf16, #tpu.memory_space<vmem>>, vector<32x128xbf16>
    %c0_2 = arith.constant 0 : index
    %c0_3 = arith.constant 0 : index
    %4 = vector.load %arg5[%c0_2, %c0_3] : memref<128x384xbf16, #tpu.memory_space<vmem>>, vector<128x384xbf16>
    %cst = arith.constant dense<0.000000e+00> : vector<32x384xf32>
    %5 = tpu.matmul %3, %4, %cst {dimension_numbers = #tpu.dot_dimension_numbers<[1], [0], [0], [1], [0, 0, 1, 1], [], []>} : vector<32x128xbf16>, vector<128x384xbf16>, vector<32x384xf32> -> vector<32x384xf32>
    %c0_4 = arith.constant 0 : index
    %c0_5 = arith.constant 0 : index
    %6 = vector.load %arg6[%c0_4, %c0_5] : memref<1x384xf32, #tpu.memory_space<vmem>>, vector<1x384xf32>
    %7 = vector.broadcast %6 : vector<1x384xf32> to vector<32x384xf32>
    %8 = arith.addf %5, %7 : vector<32x384xf32>
    %9 = arith.truncf %8 : vector<32x384xf32> to vector<32x384xbf16>
    %c0_6 = arith.constant 0 : index
    %c0_7 = arith.constant 0 : index
    %10 = vector.load %arg7[%c0_6, %c0_7] : memref<32x384xbf16, #tpu.memory_space<vmem>>, vector<32x384xbf16>
    tpu.vector_store %arg7[%c0_6, %c0_7], %9 {strides = array<i32>} : memref<32x384xbf16, #tpu.memory_space<vmem>>, vector<32x384xbf16>,
    return
  }
  func.func @transform_0(%arg0: i32, %arg1: i32) -> (i32, i32) {
    %c0_i32 = arith.constant 0 : i32
    %c0_i32_0 = arith.constant 0 : i32
    return %arg0, %c0_i32 : i32, i32
  }
  func.func @transform_1(%arg0: i32, %arg1: i32) -> (i32, i32) {
    %c0_i32 = arith.constant 0 : i32
    %c0_i32_0 = arith.constant 0 : i32
    %c0_i32_1 = arith.constant 0 : i32
    return %c0_i32, %c0_i32_0 : i32, i32
  }
  func.func @transform_2(%arg0: i32, %arg1: i32) -> (i32, i32) {
    %c0_i32 = arith.constant 0 : i32
    %c0_i32_0 = arith.constant 0 : i32
    %c0_i32_1 = arith.constant 0 : i32
    return %c0_i32, %c0_i32_0 : i32, i32
  }
  func.func @transform_3(%arg0: i32, %arg1: i32) -> (i32, i32) {
    %c0_i32 = arith.constant 0 : i32
    %c0_i32_0 = arith.constant 0 : i32
    return %c0_i32, %arg1 : i32, i32
  }
  func.func @transform_4(%arg0: i32, %arg1: i32) -> (i32, i32) {
    %c0_i32 = arith.constant 0 : i32
    %c0_i32_0 = arith.constant 0 : i32
    return %c0_i32, %arg1 : i32, i32
  }
  func.func @transform_5(%arg0: i32, %arg1: i32) -> (i32, i32) {
    %c0_i32 = arith.constant 0 : i32
    return %arg0, %arg1 : i32, i32
  }
}

module attributes {stable_mosaic.version = 11 : i64} {
  func.func @_linear_kernel(%arg0: i32, %arg1: i32, %arg2: memref<32x128xbf16, #tpu.memory_space<vmem>>, %arg3: memref<128x128xbf16, #tpu.memory_space<vmem>>, %arg4: memref<1x128xf32, #tpu.memory_space<vmem>>, %arg5: memref<32x128xbf16, #tpu.memory_space<vmem>>, %arg6: memref<32x128xbf16, #tpu.memory_space<vmem>>) attributes {dimension_semantics = [#tpu.dimension_semantics<parallel>, #tpu.dimension_semantics<parallel>], iteration_bounds = array<i64: 1, 1>, scalar_prefetch = 0 : i64, scratch_operands = 0 : i64, tpu.core_type = #tpu.core_type<tc>, window_params = [{transform_indices = @transform_0, window_bounds = array<i64: 32, 128>}, {transform_indices = @transform_1, window_bounds = array<i64: 128, 128>}, {transform_indices = @transform_2, window_bounds = array<i64: 1, 128>}, {transform_indices = @transform_3, window_bounds = array<i64: 32, 128>}, {transform_indices = @transform_4, window_bounds = array<i64: 32, 128>}]} {
    %c0 = arith.constant 0 : index
    %c0_0 = arith.constant 0 : index
    %0 = vector.load %arg2[%c0, %c0_0] : memref<32x128xbf16, #tpu.memory_space<vmem>>, vector<32x128xbf16>
    %c0_1 = arith.constant 0 : index
    %c0_2 = arith.constant 0 : index
    %1 = vector.load %arg3[%c0_1, %c0_2] : memref<128x128xbf16, #tpu.memory_space<vmem>>, vector<128x128xbf16>
    %cst = arith.constant dense<0.000000e+00> : vector<32x128xf32>
    %2 = tpu.matmul %0, %1, %cst {dimension_numbers = #tpu.dot_dimension_numbers<[1], [0], [0], [1], [0, 0, 1, 1], [], []>} : vector<32x128xbf16>, vector<128x128xbf16>, vector<32x128xf32> -> vector<32x128xf32>
    %c0_3 = arith.constant 0 : index
    %c0_4 = arith.constant 0 : index
    %3 = vector.load %arg4[%c0_3, %c0_4] : memref<1x128xf32, #tpu.memory_space<vmem>>, vector<1x128xf32>
    %4 = vector.broadcast %3 : vector<1x128xf32> to vector<32x128xf32>
    %5 = arith.addf %2, %4 : vector<32x128xf32>
    %c0_5 = arith.constant 0 : index
    %c0_6 = arith.constant 0 : index
    %6 = vector.load %arg5[%c0_5, %c0_6] : memref<32x128xbf16, #tpu.memory_space<vmem>>, vector<32x128xbf16>
    %7 = arith.extf %6 : vector<32x128xbf16> to vector<32x128xf32>
    %8 = arith.addf %5, %7 : vector<32x128xf32>
    %9 = arith.truncf %8 : vector<32x128xf32> to vector<32x128xbf16>
    %c0_7 = arith.constant 0 : index
    %c0_8 = arith.constant 0 : index
    %10 = vector.load %arg6[%c0_7, %c0_8] : memref<32x128xbf16, #tpu.memory_space<vmem>>, vector<32x128xbf16>
    tpu.vector_store %arg6[%c0_7, %c0_8], %9 {strides = array<i32>} : memref<32x128xbf16, #tpu.memory_space<vmem>>, vector<32x128xbf16>,
    return
  }
  func.func @transform_0(%arg0: i32, %arg1: i32) -> (i32, i32) {
    %c0_i32 = arith.constant 0 : i32
    %c0_i32_0 = arith.constant 0 : i32
    return %arg0, %c0_i32 : i32, i32
  }
  func.func @transform_1(%arg0: i32, %arg1: i32) -> (i32, i32) {
    %c0_i32 = arith.constant 0 : i32
    %c0_i32_0 = arith.constant 0 : i32
    return %c0_i32, %arg1 : i32, i32
  }
  func.func @transform_2(%arg0: i32, %arg1: i32) -> (i32, i32) {
    %c0_i32 = arith.constant 0 : i32
    %c0_i32_0 = arith.constant 0 : i32
    return %c0_i32, %arg1 : i32, i32
  }
  func.func @transform_3(%arg0: i32, %arg1: i32) -> (i32, i32) {
    %c0_i32 = arith.constant 0 : i32
    return %arg0, %arg1 : i32, i32
  }
  func.func @transform_4(%arg0: i32, %arg1: i32) -> (i32, i32) {
    %c0_i32 = arith.constant 0 : i32
    return %arg0, %arg1 : i32, i32
  }
}

module attributes {stable_mosaic.version = 11 : i64} {
  func.func @_ln_linear_kernel(%arg0: i32, %arg1: i32, %arg2: memref<32x128xbf16, #tpu.memory_space<vmem>>, %arg3: memref<1x128xf32, #tpu.memory_space<vmem>>, %arg4: memref<1x128xf32, #tpu.memory_space<vmem>>, %arg5: memref<128x512xbf16, #tpu.memory_space<vmem>>, %arg6: memref<1x512xf32, #tpu.memory_space<vmem>>, %arg7: memref<32x512xbf16, #tpu.memory_space<vmem>>, %arg8: memref<32x128xbf16, #tpu.memory_space<vmem>>) attributes {dimension_semantics = [#tpu.dimension_semantics<parallel>, #tpu.dimension_semantics<arbitrary>], iteration_bounds = array<i64: 1, 1>, scalar_prefetch = 0 : i64, scratch_operands = 1 : i64, tpu.core_type = #tpu.core_type<tc>, window_params = [{transform_indices = @transform_0, window_bounds = array<i64: 32, 128>}, {pipeline_mode = #tpu.pipeline_mode<synchronous>, transform_indices = @transform_1, window_bounds = array<i64: 1, 128>}, {pipeline_mode = #tpu.pipeline_mode<synchronous>, transform_indices = @transform_2, window_bounds = array<i64: 1, 128>}, {transform_indices = @transform_3, window_bounds = array<i64: 128, 512>}, {transform_indices = @transform_4, window_bounds = array<i64: 1, 512>}, {transform_indices = @transform_5, window_bounds = array<i64: 32, 512>}]} {
    %c0_i32 = arith.constant 0 : i32
    %0 = arith.cmpi eq, %arg1, %c0_i32 : i32
    %1 = arith.extui %0 : i1 to i32
    %c0_i32_0 = arith.constant 0 : i32
    %2 = arith.cmpi ne, %1, %c0_i32_0 : i32
    scf.if %2 {
      %c0_12 = arith.constant 0 : index
      %c0_13 = arith.constant 0 : index
      %24 = vector.load %arg2[%c0_12, %c0_13] : memref<32x128xbf16, #tpu.memory_space<vmem>>, vector<32x128xbf16>
      %25 = arith.extf %24 : vector<32x128xbf16> to vector<32x128xf32>
      %cst_14 = arith.constant dense<0.000000e+00> : vector<32xf32>
      %26 = vector.multi_reduction <add>, %25, %cst_14 [1] : vector<32x128xf32> to vector<32xf32>
      %27 = vector.shape_cast %26 : vector<32xf32> to vector<32x1xf32>
      %cst_15 = arith.constant 1.280000e+02 : f32
      %28 = vector.broadcast %cst_15 : f32 to vector<32x1xf32>
      %29 = arith.divf %27, %28 : vector<32x1xf32>
      %30 = vector.broadcast %29 : vector<32x1xf32> to vector<32x128xf32>
      %31 = arith.subf %25, %30 : vector<32x128xf32>
      %32 = arith.mulf %31, %31 : vector<32x128xf32>
      %cst_16 = arith.constant dense<0.000000e+00> : vector<32xf32>
      %33 = vector.multi_reduction <add>, %32, %cst_16 [1] : vector<32x128xf32> to vector<32xf32>
      %34 = vector.shape_cast %33 : vector<32xf32> to vector<32x1xf32>
      %cst_17 = arith.constant 1.280000e+02 : f32
      %35 = vector.broadcast %cst_17 : f32 to vector<32x1xf32>
      %36 = arith.divf %34, %35 : vector<32x1xf32>
      %cst_18 = arith.constant 9.99999974E-6 : f32
      %37 = vector.broadcast %cst_18 : f32 to vector<32x1xf32>
      %38 = arith.addf %36, %37 : vector<32x1xf32>
      %39 = math.rsqrt %38 : vector<32x1xf32>
      %40 = vector.broadcast %39 : vector<32x1xf32> to vector<32x128xf32>
      %41 = arith.mulf %31, %40 : vector<32x128xf32>
      %c0_19 = arith.constant 0 : index
      %c0_20 = arith.constant 0 : index
      %42 = vector.load %arg3[%c0_19, %c0_20] : memref<1x128xf32, #tpu.memory_space<vmem>>, vector<1x128xf32>
      %43 = vector.broadcast %42 : vector<1x128xf32> to vector<32x128xf32>
      %44 = arith.mulf %41, %43 : vector<32x128xf32>
      %c0_21 = arith.constant 0 : index
      %c0_22 = arith.constant 0 : index
      %45 = vector.load %arg4[%c0_21, %c0_22] : memref<1x128xf32, #tpu.memory_space<vmem>>, vector<1x128xf32>
      %46 = vector.broadcast %45 : vector<1x128xf32> to vector<32x128xf32>
      %47 = arith.addf %44, %46 : vector<32x128xf32>
      %48 = arith.truncf %47 : vector<32x128xf32> to vector<32x128xbf16>
      %c0_23 = arith.constant 0 : index
      %c0_24 = arith.constant 0 : index
      %49 = vector.load %arg8[%c0_23, %c0_24] : memref<32x128xbf16, #tpu.memory_space<vmem>>, vector<32x128xbf16>
      tpu.vector_store %arg8[%c0_23, %c0_24], %48 {strides = array<i32>} : memref<32x128xbf16, #tpu.memory_space<vmem>>, vector<32x128xbf16>,
    } else {
    }
    %c0 = arith.constant 0 : index
    %c0_1 = arith.constant 0 : index
    %3 = vector.load %arg8[%c0, %c0_1] : memref<32x128xbf16, #tpu.memory_space<vmem>>, vector<32x128xbf16>
    %c0_2 = arith.constant 0 : index
    %c0_3 = arith.constant 0 : index
    %4 = vector.load %arg5[%c0_2, %c0_3] : memref<128x512xbf16, #tpu.memory_space<vmem>>, vector<128x512xbf16>
    %cst = arith.constant dense<0.000000e+00> : vector<32x512xf32>
    %5 = tpu.matmul %3, %4, %cst {dimension_numbers = #tpu.dot_dimension_numbers<[1], [0], [0], [1], [0, 0, 1, 1], [], []>} : vector<32x128xbf16>, vector<128x512xbf16>, vector<32x512xf32> -> vector<32x512xf32>
    %c0_4 = arith.constant 0 : index
    %c0_5 = arith.constant 0 : index
    %6 = vector.load %arg6[%c0_4, %c0_5] : memref<1x512xf32, #tpu.memory_space<vmem>>, vector<1x512xf32>
    %7 = vector.broadcast %6 : vector<1x512xf32> to vector<32x512xf32>
    %8 = arith.addf %5, %7 : vector<32x512xf32>
    %cst_6 = arith.constant 5.000000e-01 : f32
    %9 = vector.broadcast %cst_6 : f32 to vector<32x512xf32>
    %10 = arith.mulf %9, %8 : vector<32x512xf32>
    %11 = arith.mulf %8, %8 : vector<32x512xf32>
    %12 = arith.mulf %11, %8 : vector<32x512xf32>
    %cst_7 = arith.constant 4.471500e-02 : f32
    %13 = vector.broadcast %cst_7 : f32 to vector<32x512xf32>
    %14 = arith.mulf %13, %12 : vector<32x512xf32>
    %15 = arith.addf %8, %14 : vector<32x512xf32>
    %cst_8 = arith.constant 0.797884583 : f32
    %16 = vector.broadcast %cst_8 : f32 to vector<32x512xf32>
    %17 = arith.mulf %16, %15 : vector<32x512xf32>
    %18 = math.tanh %17 : vector<32x512xf32>
    %cst_9 = arith.constant 1.000000e+00 : f32
    %19 = vector.broadcast %cst_9 : f32 to vector<32x512xf32>
    %20 = arith.addf %19, %18 : vector<32x512xf32>
    %21 = arith.mulf %10, %20 : vector<32x512xf32>
    %22 = arith.truncf %21 : vector<32x512xf32> to vector<32x512xbf16>
    %c0_10 = arith.constant 0 : index
    %c0_11 = arith.constant 0 : index
    %23 = vector.load %arg7[%c0_10, %c0_11] : memref<32x512xbf16, #tpu.memory_space<vmem>>, vector<32x512xbf16>
    tpu.vector_store %arg7[%c0_10, %c0_11], %22 {strides = array<i32>} : memref<32x512xbf16, #tpu.memory_space<vmem>>, vector<32x512xbf16>,
    return
  }
  func.func @transform_0(%arg0: i32, %arg1: i32) -> (i32, i32) {
    %c0_i32 = arith.constant 0 : i32
    %c0_i32_0 = arith.constant 0 : i32
    return %arg0, %c0_i32 : i32, i32
  }
  func.func @transform_1(%arg0: i32, %arg1: i32) -> (i32, i32) {
    %c0_i32 = arith.constant 0 : i32
    %c0_i32_0 = arith.constant 0 : i32
    %c0_i32_1 = arith.constant 0 : i32
    return %c0_i32, %c0_i32_0 : i32, i32
  }
  func.func @transform_2(%arg0: i32, %arg1: i32) -> (i32, i32) {
    %c0_i32 = arith.constant 0 : i32
    %c0_i32_0 = arith.constant 0 : i32
    %c0_i32_1 = arith.constant 0 : i32
    return %c0_i32, %c0_i32_0 : i32, i32
  }
  func.func @transform_3(%arg0: i32, %arg1: i32) -> (i32, i32) {
    %c0_i32 = arith.constant 0 : i32
    %c0_i32_0 = arith.constant 0 : i32
    return %c0_i32, %arg1 : i32, i32
  }
  func.func @transform_4(%arg0: i32, %arg1: i32) -> (i32, i32) {
    %c0_i32 = arith.constant 0 : i32
    %c0_i32_0 = arith.constant 0 : i32
    return %c0_i32, %arg1 : i32, i32
  }
  func.func @transform_5(%arg0: i32, %arg1: i32) -> (i32, i32) {
    %c0_i32 = arith.constant 0 : i32
    return %arg0, %arg1 : i32, i32
  }
}

module attributes {stable_mosaic.version = 11 : i64} {
  func.func @_linear_kernel(%arg0: i32, %arg1: i32, %arg2: memref<32x512xbf16, #tpu.memory_space<vmem>>, %arg3: memref<512x128xbf16, #tpu.memory_space<vmem>>, %arg4: memref<1x128xf32, #tpu.memory_space<vmem>>, %arg5: memref<32x128xbf16, #tpu.memory_space<vmem>>, %arg6: memref<32x128xbf16, #tpu.memory_space<vmem>>) attributes {dimension_semantics = [#tpu.dimension_semantics<parallel>, #tpu.dimension_semantics<parallel>], iteration_bounds = array<i64: 1, 1>, scalar_prefetch = 0 : i64, scratch_operands = 0 : i64, tpu.core_type = #tpu.core_type<tc>, window_params = [{transform_indices = @transform_0, window_bounds = array<i64: 32, 512>}, {transform_indices = @transform_1, window_bounds = array<i64: 512, 128>}, {transform_indices = @transform_2, window_bounds = array<i64: 1, 128>}, {transform_indices = @transform_3, window_bounds = array<i64: 32, 128>}, {transform_indices = @transform_4, window_bounds = array<i64: 32, 128>}]} {
    %c0 = arith.constant 0 : index
    %c0_0 = arith.constant 0 : index
    %0 = vector.load %arg2[%c0, %c0_0] : memref<32x512xbf16, #tpu.memory_space<vmem>>, vector<32x512xbf16>
    %c0_1 = arith.constant 0 : index
    %c0_2 = arith.constant 0 : index
    %1 = vector.load %arg3[%c0_1, %c0_2] : memref<512x128xbf16, #tpu.memory_space<vmem>>, vector<512x128xbf16>
    %cst = arith.constant dense<0.000000e+00> : vector<32x128xf32>
    %2 = tpu.matmul %0, %1, %cst {dimension_numbers = #tpu.dot_dimension_numbers<[1], [0], [0], [1], [0, 0, 1, 1], [], []>} : vector<32x512xbf16>, vector<512x128xbf16>, vector<32x128xf32> -> vector<32x128xf32>
    %c0_3 = arith.constant 0 : index
    %c0_4 = arith.constant 0 : index
    %3 = vector.load %arg4[%c0_3, %c0_4] : memref<1x128xf32, #tpu.memory_space<vmem>>, vector<1x128xf32>
    %4 = vector.broadcast %3 : vector<1x128xf32> to vector<32x128xf32>
    %5 = arith.addf %2, %4 : vector<32x128xf32>
    %c0_5 = arith.constant 0 : index
    %c0_6 = arith.constant 0 : index
    %6 = vector.load %arg5[%c0_5, %c0_6] : memref<32x128xbf16, #tpu.memory_space<vmem>>, vector<32x128xbf16>
    %7 = arith.extf %6 : vector<32x128xbf16> to vector<32x128xf32>
    %8 = arith.addf %5, %7 : vector<32x128xf32>
    %9 = arith.truncf %8 : vector<32x128xf32> to vector<32x128xbf16>
    %c0_7 = arith.constant 0 : index
    %c0_8 = arith.constant 0 : index
    %10 = vector.load %arg6[%c0_7, %c0_8] : memref<32x128xbf16, #tpu.memory_space<vmem>>, vector<32x128xbf16>
    tpu.vector_store %arg6[%c0_7, %c0_8], %9 {strides = array<i32>} : memref<32x128xbf16, #tpu.memory_space<vmem>>, vector<32x128xbf16>,
    return
  }
  func.func @transform_0(%arg0: i32, %arg1: i32) -> (i32, i32) {
    %c0_i32 = arith.constant 0 : i32
    %c0_i32_0 = arith.constant 0 : i32
    return %arg0, %c0_i32 : i32, i32
  }
  func.func @transform_1(%arg0: i32, %arg1: i32) -> (i32, i32) {
    %c0_i32 = arith.constant 0 : i32
    %c0_i32_0 = arith.constant 0 : i32
    return %c0_i32, %arg1 : i32, i32
  }
  func.func @transform_2(%arg0: i32, %arg1: i32) -> (i32, i32) {
    %c0_i32 = arith.constant 0 : i32
    %c0_i32_0 = arith.constant 0 : i32
    return %c0_i32, %arg1 : i32, i32
  }
  func.func @transform_3(%arg0: i32, %arg1: i32) -> (i32, i32) {
    %c0_i32 = arith.constant 0 : i32
    return %arg0, %arg1 : i32, i32
  }
  func.func @transform_4(%arg0: i32, %arg1: i32) -> (i32, i32) {
    %c0_i32 = arith.constant 0 : i32
    return %arg0, %arg1 : i32, i32
  }
}

module attributes {stable_mosaic.version = 11 : i64} {
  func.func @_layernorm_kernel(%arg0: i32, %arg1: memref<32x128xbf16, #tpu.memory_space<vmem>>, %arg2: memref<1x128xf32, #tpu.memory_space<vmem>>, %arg3: memref<1x128xf32, #tpu.memory_space<vmem>>, %arg4: memref<32x128xbf16, #tpu.memory_space<vmem>>) attributes {dimension_semantics = [#tpu.dimension_semantics<parallel>], iteration_bounds = array<i64: 1>, scalar_prefetch = 0 : i64, scratch_operands = 0 : i64, tpu.core_type = #tpu.core_type<tc>, window_params = [{transform_indices = @transform_0, window_bounds = array<i64: 32, 128>}, {pipeline_mode = #tpu.pipeline_mode<synchronous>, transform_indices = @transform_1, window_bounds = array<i64: 1, 128>}, {pipeline_mode = #tpu.pipeline_mode<synchronous>, transform_indices = @transform_2, window_bounds = array<i64: 1, 128>}, {transform_indices = @transform_3, window_bounds = array<i64: 32, 128>}]} {
    %c0 = arith.constant 0 : index
    %c0_0 = arith.constant 0 : index
    %0 = vector.load %arg1[%c0, %c0_0] : memref<32x128xbf16, #tpu.memory_space<vmem>>, vector<32x128xbf16>
    %1 = arith.extf %0 : vector<32x128xbf16> to vector<32x128xf32>
    %cst = arith.constant dense<0.000000e+00> : vector<32xf32>
    %2 = vector.multi_reduction <add>, %1, %cst [1] : vector<32x128xf32> to vector<32xf32>
    %3 = vector.shape_cast %2 : vector<32xf32> to vector<32x1xf32>
    %cst_1 = arith.constant 1.280000e+02 : f32
    %4 = vector.broadcast %cst_1 : f32 to vector<32x1xf32>
    %5 = arith.divf %3, %4 : vector<32x1xf32>
    %6 = vector.broadcast %5 : vector<32x1xf32> to vector<32x128xf32>
    %7 = arith.subf %1, %6 : vector<32x128xf32>
    %8 = arith.mulf %7, %7 : vector<32x128xf32>
    %cst_2 = arith.constant dense<0.000000e+00> : vector<32xf32>
    %9 = vector.multi_reduction <add>, %8, %cst_2 [1] : vector<32x128xf32> to vector<32xf32>
    %10 = vector.shape_cast %9 : vector<32xf32> to vector<32x1xf32>
    %cst_3 = arith.constant 1.280000e+02 : f32
    %11 = vector.broadcast %cst_3 : f32 to vector<32x1xf32>
    %12 = arith.divf %10, %11 : vector<32x1xf32>
    %cst_4 = arith.constant 9.99999974E-6 : f32
    %13 = vector.broadcast %cst_4 : f32 to vector<32x1xf32>
    %14 = arith.addf %12, %13 : vector<32x1xf32>
    %15 = math.rsqrt %14 : vector<32x1xf32>
    %16 = vector.broadcast %15 : vector<32x1xf32> to vector<32x128xf32>
    %17 = arith.mulf %7, %16 : vector<32x128xf32>
    %c0_5 = arith.constant 0 : index
    %c0_6 = arith.constant 0 : index
    %18 = vector.load %arg2[%c0_5, %c0_6] : memref<1x128xf32, #tpu.memory_space<vmem>>, vector<1x128xf32>
    %19 = vector.broadcast %18 : vector<1x128xf32> to vector<32x128xf32>
    %20 = arith.mulf %17, %19 : vector<32x128xf32>
    %c0_7 = arith.constant 0 : index
    %c0_8 = arith.constant 0 : index
    %21 = vector.load %arg3[%c0_7, %c0_8] : memref<1x128xf32, #tpu.memory_space<vmem>>, vector<1x128xf32>
    %22 = vector.broadcast %21 : vector<1x128xf32> to vector<32x128xf32>
    %23 = arith.addf %20, %22 : vector<32x128xf32>
    %24 = arith.truncf %23 : vector<32x128xf32> to vector<32x128xbf16>
    %c0_9 = arith.constant 0 : index
    %c0_10 = arith.constant 0 : index
    %25 = vector.load %arg4[%c0_9, %c0_10] : memref<32x128xbf16, #tpu.memory_space<vmem>>, vector<32x128xbf16>
    tpu.vector_store %arg4[%c0_9, %c0_10], %24 {strides = array<i32>} : memref<32x128xbf16, #tpu.memory_space<vmem>>, vector<32x128xbf16>,
    return
  }
  func.func @transform_0(%arg0: i32) -> (i32, i32) {
    %c0_i32 = arith.constant 0 : i32
    %c0_i32_0 = arith.constant 0 : i32
    return %arg0, %c0_i32 : i32, i32
  }
  func.func @transform_1(%arg0: i32) -> (i32, i32) {
    %c0_i32 = arith.constant 0 : i32
    %c0_i32_0 = arith.constant 0 : i32
    %c0_i32_1 = arith.constant 0 : i32
    return %c0_i32, %c0_i32_0 : i32, i32
  }
  func.func @transform_2(%arg0: i32) -> (i32, i32) {
    %c0_i32 = arith.constant 0 : i32
    %c0_i32_0 = arith.constant 0 : i32
    %c0_i32_1 = arith.constant 0 : i32
    return %c0_i32, %c0_i32_0 : i32, i32
  }
  func.func @transform_3(%arg0: i32) -> (i32, i32) {
    %c0_i32 = arith.constant 0 : i32
    %c0_i32_0 = arith.constant 0 : i32
    return %arg0, %c0_i32 : i32, i32
  }
}

module attributes {stable_mosaic.version = 11 : i64} {
  func.func @_l2norm_kernel(%arg0: i32, %arg1: memref<8x64xf32, #tpu.memory_space<vmem>>, %arg2: memref<8x64xf32, #tpu.memory_space<vmem>>) attributes {dimension_semantics = [#tpu.dimension_semantics<parallel>], iteration_bounds = array<i64: 1>, scalar_prefetch = 0 : i64, scratch_operands = 0 : i64, tpu.core_type = #tpu.core_type<tc>, window_params = [{transform_indices = @transform_0, window_bounds = array<i64: 8, 64>}, {transform_indices = @transform_1, window_bounds = array<i64: 8, 64>}]} {
    %c0 = arith.constant 0 : index
    %c0_0 = arith.constant 0 : index
    %0 = vector.load %arg1[%c0, %c0_0] : memref<8x64xf32, #tpu.memory_space<vmem>>, vector<8x64xf32>
    %1 = arith.mulf %0, %0 : vector<8x64xf32>
    %cst = arith.constant dense<0.000000e+00> : vector<8xf32>
    %2 = vector.multi_reduction <add>, %1, %cst [1] : vector<8x64xf32> to vector<8xf32>
    %3 = vector.shape_cast %2 : vector<8xf32> to vector<8x1xf32>
    %cst_1 = arith.constant 1.000000e-24 : f32
    %4 = vector.broadcast %cst_1 : f32 to vector<8x1xf32>
    %5 = arith.maximumf %3, %4 : vector<8x1xf32>
    %6 = math.rsqrt %5 : vector<8x1xf32>
    %7 = vector.broadcast %6 : vector<8x1xf32> to vector<8x64xf32>
    %8 = arith.mulf %0, %7 : vector<8x64xf32>
    %c0_2 = arith.constant 0 : index
    %c0_3 = arith.constant 0 : index
    %9 = vector.load %arg2[%c0_2, %c0_3] : memref<8x64xf32, #tpu.memory_space<vmem>>, vector<8x64xf32>
    tpu.vector_store %arg2[%c0_2, %c0_3], %8 {strides = array<i32>} : memref<8x64xf32, #tpu.memory_space<vmem>>, vector<8x64xf32>,
    return
  }
  func.func @transform_0(%arg0: i32) -> (i32, i32) {
    %c0_i32 = arith.constant 0 : i32
    %c0_i32_0 = arith.constant 0 : i32
    return %arg0, %c0_i32 : i32, i32
  }
  func.func @transform_1(%arg0: i32) -> (i32, i32) {
    %c0_i32 = arith.constant 0 : i32
    %c0_i32_0 = arith.constant 0 : i32
    return %arg0, %c0_i32 : i32, i32
  }
}

</mosaic_0001>

<bundles_post_ra>
// kernel: _lambda_.28
= control target key start
LH: loop header
LB: loop body
LE: loop exit
PB: predicated region body
PF: predicated region fallthrough
CT: control target
= control target key end

     0   :  { %vm120_vm0 = vcmask 523264   ;;  %s341_s1 = inlined_call_operand.vmem [shape: bf16[192,128], index: 1, kind: input, shape index: {}]   ;;  %s342_s0 = inlined_call_operand.vmem [shape: f32[32,192], index: 0, kind: input, shape index: {}]   ;;  %s343_s2 = inlined_call_operand.vmem [shape: bf16[32,128], index: 2, kind: output, shape index: {}]  }
   0x1   :  { %v234_v0 = vld [vmem:[%s341_s1 + $0x38] sm:$0xff]  ;;  %v233_v2 = vld [vmem:[%s341_s1 + $0x30] sm:$0xff]  ;;  %v232_v4 = vld [vmem:[%s341_s1 + $0x28] sm:$0xff] }
   0x2   :  { %v238_v1 = vld [vmem:[%s341_s1 + $0x58] sm:$0xff]  ;;  %127 = vmatpush.bf16.msra.mxu0 %v234_v0  ;;  %250 = vmatpush.bf16.msra.mxu2 %v234_v0  ;;  %v237_v3 = vld [vmem:[%s341_s1 + $0x50] sm:$0xff]  ;;  %v236_v5 = vld [vmem:[%s341_s1 + $0x48] sm:$0xff] }
   0x3   :  { %150 = vmatpush.bf16.msra.mxu1 %v238_v1  ;;  %v231_v6 = vld [vmem:[%s341_s1 + $0x20] sm:$0xff]  ;;  %v13_v8 = vld [vmem:[%s342_s0 + $0x8] sm:$0xff]  ;;  %v15_v9 = vld [vmem:[%s342_s0 + $0x18] sm:$0xff] }
   0x4   :  { %v235_v7 = vld [vmem:[%s341_s1 + $0x40] sm:$0xff]  ;;  %v21_v10 = vpack.c.bf16 %v15_v9, %v13_v8  ;;  %v230_v11 = vld [vmem:[%s341_s1 + $0x18] sm:$0xff]  ;;  %v229_v12 = vld [vmem:[%s341_s1 + $0x10] sm:$0xff] }
   0x5   :  { %v228_v13 = vld [vmem:[%s341_s1 + $0x8] sm:$0xff]  ;;  %v227_v14 = vld [vmem:[%s341_s1] sm:$0xff]  ;;  %v14_v16 = vld [vmem:[%s342_s0 + $0x10] sm:$0xff] }
   0x6   :  { %128 = vmatpush.bf16.msra.mxu0 %v233_v2  ;;  %251 = vmatpush.bf16.msra.mxu2 %v233_v2  ;;  %v12_v15 = vld [vmem:[%s342_s0] sm:$0xff]  ;;  %v18_v18 = vld [vmem:[%s342_s0 + $0x30] sm:$0xff]  ;;  %v17_v19 = vld [vmem:[%s342_s0 + $0x28] sm:$0xff] }
   0x7   :  { %151 = vmatpush.bf16.msra.mxu1 %v237_v3  ;;  %v16_v17 = vld [vmem:[%s342_s0 + $0x20] sm:$0xff]  ;;  %v19_v20 = vld [vmem:[%s342_s0 + $0x38] sm:$0xff]  ;;  %v20_v21 = vpack.c.bf16 %v14_v16, %v12_v15 }
   0x8   :  { %v22_v22 = vpack.c.bf16 %v18_v18, %v16_v17  ;;  %v23_v23 = vpack.c.bf16 %v19_v20, %v17_v19 }
   0xa   :  { %129 = vmatpush.bf16.msra.mxu0 %v232_v4  ;;  %252 = vmatpush.bf16.msra.mxu2 %v232_v4 }
   0xb   :  { %152 = vmatpush.bf16.msra.mxu1 %v236_v5 }
   0xe   :  { %130 = vmatpush.bf16.msra.mxu0 %v231_v6  ;;  %253 = vmatpush.bf16.msra.mxu2 %v231_v6 }
   0xf   :  { %153 = vmatpush.bf16.msra.mxu1 %v235_v7 }
  0x12   :  { %225 = vmatmul.msk.bf16.vlgmr.msra.gmra.mxu1 %vm120_vm0, %v21_v10  ;;  %131 = vmatpush.bf16.msra.mxu0 %v230_v11 }
  0x13   :  { %254 = vmatpush.bf16.msra.mxu2 %v230_v11 }
  0x16   :  { %132 = vmatpush.bf16.msra.mxu0 %v229_v12 }
  0x17   :  { %255 = vmatpush.bf16.msra.mxu2 %v229_v12 }
  0x1a   :  { %133 = vmatpush.bf16.msra.mxu0 %v228_v13 }
  0x1b   :  { %256 = vmatpush.bf16.msra.mxu2 %v228_v13 }
  0x1e   :  { %134 = vmatpush.bf16.msra.mxu0 %v227_v14 }
  0x1f   :  { %257 = vmatpush.bf16.msra.mxu2 %v227_v14 }
  0x21   :  { %135 = vmatmul.bf16.vlgmr.msra.gmra.mxu0 %v20_v21 }
  0x22   :  { %140 = vmatmul.bf16.vlgmr.msra.gmra.mxu2 %v22_v22  ;;  %226 = vmatmul.msk.bf16.gmra.mxu1 %vm120_vm0, %v23_v23 }
  0x8f   :  { %v155_v24 = vpop.f32.mrf.mxu1 }
  0x97   :  { %v157_v25 = vpop.f32.mrf.mxu1 }
  0x9e   :  { %v136_v26 = vpop.f32.mrf.mxu0 }
  0x9f   :  { %v160_v27 = vpop.f32.mrf.mxu1  ;;  %v156_v30 = vadd.f32 %v155_v24, %v136_v26 }
  0xa5   :  { %v141_v28 = vpop.f32.mrf.mxu2 }
  0xa6   :  { %v138_v29 = vpop.f32.mrf.mxu0  ;;  %v161_v35 = vadd.f32 %v160_v27, %v141_v28 }
  0xa7   :  { %v158_v31 = vadd.f32 %v157_v25, %v138_v29  ;;  %v162_v33 = vpop.f32.mrf.mxu1 }
  0xa9   :  { %v242_v32 = vpack.c.bf16 %v158_v31, %v156_v30 }
  0xab   :  { %243 = vst [vmem:[%s343_s2] sm:$0xff] %v242_v32  }
  0xad   :  { %v143_v34 = vpop.f32.mrf.mxu2 }
  0xae   :  { %v163_v36 = vadd.f32 %v162_v33, %v143_v34 }
  0xb0   :  { %v247_v37 = vpack.c.bf16 %v163_v36, %v161_v35 }
  0xb2   :  { %249 = vst [vmem:[%s343_s2 + $0x8] sm:$0xff] %v247_v37  }

// kernel: _lambda_.29
= control target key start
LH: loop header
LB: loop body
LE: loop exit
PB: predicated region body
PF: predicated region fallthrough
CT: control target
= control target key end

     0   :  { %v184_v5 = vmov 128.0   ;;  %s260_s0 = inlined_call_operand.vmem [shape: f32[40,128], index: 0, kind: input, shape index: {}]   ;;  %s261_s1 = inlined_call_operand.vmem [shape: f32[1,128], index: 1, kind: input, shape index: {}]   ;;  %s262_s2 = inlined_call_operand.vmem [shape: f32[1,128], index: 2, kind: input, shape index: {}]   ;;  %s263_s3 = inlined_call_operand.vmem [shape: bf16[40,128], index: 3, kind: output, shape index: {}]  }
   0x1   :  { %v16_v0 = vld [vmem:[%s260_s0 + $0x10] sm:$0xff]  ;;  %v14_v1 = vld [vmem:[%s260_s0] sm:$0xff]  ;;  %v17_v3 = vld [vmem:[%s260_s0 + $0x18] sm:$0xff]  ;;  %172 = vrcp.f32 %v184_v5 }
   0x2   :  { %23 = vadd.xlane.f32.xlu1 %v16_v0  ;;  %19 = vadd.xlane.f32.xlu0 %v14_v1  ;;  %v18_v2 = vld [vmem:[%s260_s0 + $0x20] sm:$0xff]  ;;  %v15_v4 = vld [vmem:[%s260_s0 + $0x8] sm:$0xff] }
   0x3   :  { %27 = vadd.xlane.f32.xlu2 %v18_v2 }
   0x7   :  { %v173_v6 = vpop.eup %172 }
   0x8   :  { %v30_v7 = vmul.f32 128.0, %v173_v6  ;;  %vm34_vm0 = vweird.f32 %v173_v6 }
   0xa   :  { %25 = vadd.xlane.f32.xlu1 %v17_v3  ;;  %21 = vadd.xlane.f32.xlu0 %v15_v4  ;;  %v31_v8 = vsub.f32 1.0, %v30_v7  ;;  %v170_v7 = vld [vmem:[%s261_s1] ss:$0 sm:$0xff] }
   0xc   :  { %v32_v9 = vmul.f32 %v173_v6, %v31_v8 }
   0xe   :  { %v33_v10 = vadd.f32 %v173_v6, %v32_v9 }
  0x10   :  { %v35_v11 = vsel %vm34_vm0, %v173_v6, %v33_v10 }
  0x75   :  { %v24_v12 = vpop.xlane.xlu1 %23  ;;  %v20_v13 = vpop.xlane.xlu0 %19 }
  0x76   :  { %v38_v14 = vmul.f32 %v35_v11, %v24_v12  ;;  %v36_v15 = vmul.f32 %v35_v11, %v20_v13  ;;  %v28_v20 = vpop.xlane.xlu2 %27 }
  0x77   :  { %v40_v27 = vmul.f32 %v35_v11, %v28_v20 }
  0x78   :  { %v220_v16 = vsub.f32 %v16_v0, %v38_v14  ;;  %v222_v17 = vsub.f32 %v14_v1, %v36_v15 }
  0x79   :  { %v236_v30 = vsub.f32 %v18_v2, %v40_v27 }
  0x7a   :  { %v48_v18 = vmul.f32 %v220_v16, %v220_v16  ;;  %v46_v19 = vmul.f32 %v222_v17, %v222_v17 }
  0x7b   :  { %v50_v31 = vmul.f32 %v236_v30, %v236_v30 }
  0x7c   :  { %55 = vadd.xlane.f32.xlu1 %v48_v18  ;;  %51 = vadd.xlane.f32.xlu2 %v46_v19  ;;  %v171_v18 = vld [vmem:[%s262_s2] ss:$0 sm:$0xff] }
  0x7d   :  { %v26_v21 = vpop.xlane.xlu1 %25  ;;  %v22_v22 = vpop.xlane.xlu0 %21 }
  0x7e   :  { %v39_v23 = vmul.f32 %v35_v11, %v26_v21  ;;  %v37_v24 = vmul.f32 %v35_v11, %v22_v22 }
  0x80   :  { %v228_v25 = vsub.f32 %v17_v3, %v39_v23  ;;  %v230_v26 = vsub.f32 %v15_v4, %v37_v24 }
  0x82   :  { %v49_v28 = vmul.f32 %v228_v25, %v228_v25  ;;  %v47_v29 = vmul.f32 %v230_v26, %v230_v26 }
  0x84   :  { %57 = vadd.xlane.f32.xlu2 %v49_v28  ;;  %53 = vadd.xlane.f32.xlu0 %v47_v29 }
  0x8c   :  { %59 = vadd.xlane.f32.xlu0 %v50_v31 }
  0xef   :  { %v56_v32 = vpop.xlane.xlu1 %55  ;;  %v52_v33 = vpop.xlane.xlu2 %51 }
  0xf0   :  { %v63_v34 = vmul.f32 %v56_v32, %v35_v11  ;;  %v61_v35 = vmul.f32 %v52_v33, %v35_v11 }
  0xf2   :  { %v68_v36 = vadd.f32 1e-05, %v63_v34  ;;  %v66_v37 = vadd.f32 1e-05, %v61_v35 }
  0xf4   :  { %174 = vrsqrt.f32 %v68_v36  ;;  %vm97_vm1 = vweird.f32 %v68_v36  ;;  %vm77_vm5 = vweird.f32 %v66_v37 }
  0xf5   :  { %176 = vrsqrt.f32 %v66_v37 }
  0xf7   :  { %v58_v38 = vpop.xlane.xlu2 %57  ;;  %v54_v39 = vpop.xlane.xlu0 %53 }
  0xf8   :  { %v64_v40 = vmul.f32 %v58_v38, %v35_v11  ;;  %v62_v41 = vmul.f32 %v54_v39, %v35_v11 }
  0xfa   :  { %v175_v42 = vpop.eup %174  ;;  %v69_v43 = vadd.f32 1e-05, %v64_v40  ;;  %v67_v44 = vadd.f32 1e-05, %v62_v41 }
  0xfb   :  { %v177_v45 = vpop.eup %176  ;;  %v92_v46 = vmul.f32 %v175_v42, %v68_v36  ;;  %vm98_vm2 = vweird.f32 %v175_v42 }
  0xfc   :  { %v72_v47 = vmul.f32 %v177_v45, %v66_v37  ;;  %178 = vrsqrt.f32 %v69_v43  ;;  %vm78_vm3 = vweird.f32 %v177_v45  ;;  %vm99_vm4 = vmor %vm97_vm1, %vm98_vm2  ;;  %vm107_vm7 = vweird.f32 %v69_v43 }
  0xfd   :  { %v93_v48 = vmul.f32 %v175_v42, %v92_v46  ;;  %180 = vrsqrt.f32 %v67_v44  ;;  %vm79_vm6 = vmor %vm77_vm5, %vm78_vm3  ;;  %vm87_vm11 = vweird.f32 %v67_v44 }
  0xfe   :  { %v73_v49 = vmul.f32 %v177_v45, %v72_v47 }
  0xff   :  { %v94_v50 = vmul.f32 0.5, %v93_v48  ;;  %v60_v51 = vpop.xlane.xlu0 %59 }
 0x100   :  { %v74_v52 = vmul.f32 0.5, %v73_v49  ;;  %v65_v53 = vmul.f32 %v60_v51, %v35_v11 }
 0x101   :  { %v95_v54 = vsub.f32 1.5, %v94_v50 }
 0x102   :  { %v179_v55 = vpop.eup %178  ;;  %v75_v56 = vsub.f32 1.5, %v74_v52  ;;  %v70_v57 = vadd.f32 1e-05, %v65_v53 }
 0x103   :  { %v181_v58 = vpop.eup %180  ;;  %v96_v59 = vmul.f32 %v175_v42, %v95_v54  ;;  %v102_v60 = vmul.f32 %v179_v55, %v69_v43  ;;  %vm108_vm8 = vweird.f32 %v179_v55 }
 0x104   :  { %v76_v61 = vmul.f32 %v177_v45, %v75_v56  ;;  %v82_v62 = vmul.f32 %v181_v58, %v67_v44  ;;  %182 = vrsqrt.f32 %v70_v57  ;;  %vm88_vm9 = vweird.f32 %v181_v58  ;;  %vm109_vm10 = vmor %vm107_vm7, %vm108_vm8 }
 0x105   :  { %v103_v63 = vmul.f32 %v179_v55, %v102_v60  ;;  %v100_v1 = vsel %vm99_vm4, %v175_v42, %v96_v59  ;;  %vm89_vm12 = vmor %vm87_vm11, %vm88_vm9  ;;  %vm117_vm14 = vweird.f32 %v70_v57 }
 0x106   :  { %v83_v0 = vmul.f32 %v181_v58, %v82_v62  ;;  %v80_v3 = vsel %vm79_vm6, %v177_v45, %v76_v61  ;;  %v123_v8 = vmul.f32 %v100_v1, %v220_v16 }
 0x107   :  { %v104_v2 = vmul.f32 0.5, %v103_v63  ;;  %v121_v10 = vmul.f32 %v80_v3, %v222_v17 }
 0x108   :  { %v84_v4 = vmul.f32 0.5, %v83_v0  ;;  %v132_v19 = vmul.f32 %v170_v7, %v123_v8 }
 0x109   :  { %v105_v5 = vsub.f32 1.5, %v104_v2  ;;  %v130_v21 = vmul.f32 %v170_v7, %v121_v10 }
 0x10a   :  { %v183_v6 = vpop.eup %182  ;;  %v85_v9 = vsub.f32 1.5, %v84_v4  ;;  %v141_v28 = vadd.f32 %v171_v18, %v132_v19 }
 0x10b   :  { %v106_v11 = vmul.f32 %v179_v55, %v105_v5  ;;  %v112_v12 = vmul.f32 %v183_v6, %v70_v57  ;;  %vm118_vm13 = vweird.f32 %v183_v6  ;;  %v139_v31 = vadd.f32 %v171_v18, %v130_v21 }
 0x10c   :  { %v86_v13 = vmul.f32 %v181_v58, %v85_v9  ;;  %vm119_vm15 = vmor %vm117_vm14, %vm118_vm13 }
 0x10d   :  { %v110_v14 = vsel %vm109_vm10, %v179_v55, %v106_v11  ;;  %v113_v15 = vmul.f32 %v183_v6, %v112_v12 }
 0x10e   :  { %v124_v20 = vmul.f32 %v110_v14, %v228_v25  ;;  %v90_v16 = vsel %vm89_vm12, %v181_v58, %v86_v13 }
 0x10f   :  { %v122_v22 = vmul.f32 %v90_v16, %v230_v26  ;;  %v114_v17 = vmul.f32 0.5, %v113_v15 }
 0x110   :  { %v133_v23 = vmul.f32 %v170_v7, %v124_v20 }
 0x111   :  { %v131_v24 = vmul.f32 %v170_v7, %v122_v22  ;;  %v115_v27 = vsub.f32 1.5, %v114_v17 }
 0x112   :  { %v142_v29 = vadd.f32 %v171_v18, %v133_v23 }
 0x113   :  { %v140_v32 = vadd.f32 %v171_v18, %v131_v24  ;;  %v116_v33 = vmul.f32 %v183_v6, %v115_v27 }
 0x114   :  { %v166_v34 = vpack.c.bf16 %v142_v29, %v141_v28 }
 0x115   :  { %v161_v35 = vpack.c.bf16 %v140_v32, %v139_v31  ;;  %v120_v36 = vsel %vm119_vm15, %v183_v6, %v116_v33 }
 0x116   :  { %168 = vst [vmem:[%s263_s3 + $0x8] sm:$0xff] %v166_v34   ;;  %v125_v25 = vmul.f32 %v120_v36, %v236_v30 }
 0x117   :  { %162 = vst [vmem:[%s263_s3] sm:$0xff] %v161_v35  }
 0x118   :  { %v134_v26 = vmul.f32 %v170_v7, %v125_v25 }
 0x11a   :  { %v143_v37 = vadd.f32 %v171_v18, %v134_v26 }
 0x11c   :  { %v148_v38 = vpack.c.bf16 %v143_v37, %v143_v37 }
 0x11e   :  { %153 = vst [vmem:[%s263_s3 + $0x10] sm:$0xf] %v148_v38 }

// kernel: _lambda_.30
= control target key start
LH: loop header
LB: loop body
LE: loop exit
PB: predicated region body
PF: predicated region fallthrough
CT: control target
= control target key end

     0   :  { %v624_v8 = vmov 128.0   ;;  %s905_s0 = inlined_call_operand.vmem [shape: bf16[40,128], index: 0, kind: input, shape index: {}]   ;;  %s906_s1 = inlined_call_operand.vmem [shape: f32[1,128], index: 1, kind: input, shape index: {}]   ;;  %s907_s2 = inlined_call_operand.vmem [shape: f32[1,128], index: 2, kind: input, shape index: {}]   ;;  %s908_s3 = inlined_call_operand.vmem [shape: bf16[128,384], index: 3, kind: input, shape index: {}]   ;;  %s909_s4 = inlined_call_operand.vmem [shape: f32[1,384], index: 4, kind: input, shape index: {}]   ;;  %s910_s5 = inlined_call_operand.vmem [shape: bf16[40,384], index: 5, kind: output, shape index: {}]  }
   0x1   :  { %v599_v0 = vld [vmem:[%s905_s0 + $0x8] sm:$0xff]   ;;  %v582_v1 = vld [vmem:[%s905_s0] sm:$0xff]   ;;  %v28_v2 = vld [vmem:[%s905_s0 + $0x10] sm:$0xf]  ;;  %612 = vrcp.f32 %v624_v8 }
   0x2   :  { %v587_v3 = vunpack.c.l.bf16 %v599_v0  ;;  %v583_v4 = vunpack.c.l.bf16 %v582_v1  ;;  %v33_v5 = vunpack.c.l.bf16 %v28_v2  ;;  %v588_v6 = vunpack.c.h.bf16 %v599_v0  ;;  %v545_v35 = vld [vmem:[%s908_s3 + $0xa8] sm:$0xf]  ;;  %v579_v36 = vld [vmem:[%s908_s3 + $0xb0] sm:$0xf0]  ;;  %v578_v37 = vld [vmem:[%s908_s3 + $0xac] sm:$0xf] }
   0x3   :  { %v584_v7 = vunpack.c.h.bf16 %v582_v1  ;;  %v546_v38 = vor.u32 %v579_v36, %v545_v35  ;;  %v547_v39 = vld [vmem:[%s908_s3 + $0xb4] sm:$0xf0]  ;;  %v553_v40 = vld [vmem:[%s908_s3 + $0xb0] sm:$0xf]  ;;  %v580_v41 = vld [vmem:[%s908_s3 + $0xb8] sm:$0xf0] }
   0x4   :  { %38 = vadd.xlane.f32.xlu1 %v587_v3  ;;  %34 = vadd.xlane.f32.xlu0 %v583_v4  ;;  %v550_v42 = vor.u32 %v578_v37, %v547_v39  ;;  %v554_v43 = vor.u32 %v580_v41, %v553_v40  ;;  %v533_v44 = vld [vmem:[%s908_s3 + $0x90] sm:$0xf]  ;;  %v576_v45 = vld [vmem:[%s908_s3 + $0x98] sm:$0xf0]  ;;  %v575_v46 = vld [vmem:[%s908_s3 + $0x94] sm:$0xf] }
   0x5   :  { %42 = vadd.xlane.f32.xlu2 %v33_v5  ;;  %358 = vmatpush.bf16.msra.mxu0 %v546_v38  ;;  %v534_v47 = vor.u32 %v576_v45, %v533_v44  ;;  %v535_v48 = vld [vmem:[%s908_s3 + $0x9c] sm:$0xf0]  ;;  %v541_v49 = vld [vmem:[%s908_s3 + $0x98] sm:$0xf]  ;;  %v577_v50 = vld [vmem:[%s908_s3 + $0xa0] sm:$0xf0] }
   0x6   :  { %601 = vmatpush.bf16.msra.mxu3 %v546_v38  ;;  %381 = vmatpush.bf16.msra.mxu1 %v550_v42  ;;  %v538_v51 = vor.u32 %v575_v46, %v535_v48  ;;  %v542_v52 = vor.u32 %v577_v50, %v541_v49  ;;  %v521_v53 = vld [vmem:[%s908_s3 + $0x78] sm:$0xf]  ;;  %v573_v54 = vld [vmem:[%s908_s3 + $0x80] sm:$0xf0]  ;;  %v572_v55 = vld [vmem:[%s908_s3 + $0x7c] sm:$0xf] }
   0x7   :  { %v613_v9 = vpop.eup %612  ;;  %404 = vmatpush.bf16.msra.mxu2 %v554_v43  ;;  %v522_v56 = vor.u32 %v573_v54, %v521_v53  ;;  %v523_v57 = vld [vmem:[%s908_s3 + $0x84] sm:$0xf0]  ;;  %v529_v58 = vld [vmem:[%s908_s3 + $0x80] sm:$0xf]  ;;  %v574_v59 = vld [vmem:[%s908_s3 + $0x88] sm:$0xf0] }
   0x8   :  { %v45_v10 = vmul.f32 128.0, %v613_v9  ;;  %vm49_vm0 = vweird.f32 %v613_v9  ;;  %v526_v60 = vor.u32 %v572_v55, %v523_v57  ;;  %v530_v61 = vor.u32 %v574_v59, %v529_v58  ;;  %v509_v62 = vld [vmem:[%s908_s3 + $0x60] sm:$0xf]  ;;  %v570_v63 = vld [vmem:[%s908_s3 + $0x68] sm:$0xf0] }
   0x9   :  { %359 = vmatpush.bf16.msra.mxu0 %v534_v47  ;;  %v569_v0 = vld [vmem:[%s908_s3 + $0x64] sm:$0xf]  ;;  %v510_v1 = vor.u32 %v570_v63, %v509_v62  ;;  %v511_v2 = vld [vmem:[%s908_s3 + $0x6c] sm:$0xf0]  ;;  %v567_v8 = vld [vmem:[%s908_s3 + $0x50] sm:$0xf0] }
   0xa   :  { %v46_v11 = vsub.f32 1.0, %v45_v10  ;;  %602 = vmatpush.bf16.msra.mxu3 %v534_v47  ;;  %382 = vmatpush.bf16.msra.mxu1 %v538_v51  ;;  %v473_v37 = vld [vmem:[%s908_s3 + $0x18] sm:$0xf]  ;;  %v561_v38 = vld [vmem:[%s908_s3 + $0x20] sm:$0xf0] }
   0xb   :  { %405 = vmatpush.bf16.msra.mxu2 %v542_v52  ;;  %v560_v39 = vld [vmem:[%s908_s3 + $0x1c] sm:$0xf]  ;;  %v474_v42 = vor.u32 %v561_v38, %v473_v37  ;;  %v475_v43 = vld [vmem:[%s908_s3 + $0x24] sm:$0xf0]  ;;  %v481_v44 = vld [vmem:[%s908_s3 + $0x20] sm:$0xf] }
   0xc   :  { %40 = vadd.xlane.f32.xlu1 %v588_v6  ;;  %36 = vadd.xlane.f32.xlu0 %v584_v7  ;;  %v47_v12 = vmul.f32 %v613_v9, %v46_v11  ;;  %v562_v45 = vld [vmem:[%s908_s3 + $0x28] sm:$0xf0]  ;;  %v478_v48 = vor.u32 %v560_v39, %v475_v43  ;;  %v461_v53 = vld [vmem:[%s908_s3] sm:$0xf]  ;;  %v557_v57 = vld [vmem:[%s908_s3 + $0x4] sm:$0xf] }
   0xd   :  { %360 = vmatpush.bf16.msra.mxu0 %v522_v56  ;;  %v482_v49 = vor.u32 %v562_v45, %v481_v44  ;;  %v463_v58 = vld [vmem:[%s908_s3 + $0xc] sm:$0xf0]  ;;  %v611_v39 = vld [vmem:[%s907_s2] ss:$0 sm:$0xff] }
   0xe   :  { %v48_v13 = vadd.f32 %v613_v9, %v47_v12  ;;  %603 = vmatpush.bf16.msra.mxu3 %v522_v56  ;;  %383 = vmatpush.bf16.msra.mxu1 %v526_v60  ;;  %v558_v56 = vld [vmem:[%s908_s3 + $0x8] sm:$0xf0]  ;;  %v469_v60 = vld [vmem:[%s908_s3 + $0x8] sm:$0xf] }
   0xf   :  { %406 = vmatpush.bf16.msra.mxu2 %v530_v61  ;;  %v559_v61 = vld [vmem:[%s908_s3 + $0x10] sm:$0xf0]  ;;  %v462_v63 = vor.u32 %v558_v56, %v461_v53 }
  0x10   :  { %v664_v14 = vsel %vm49_vm0, %v613_v9, %v48_v13  ;;  %v566_v9 = vld [vmem:[%s908_s3 + $0x4c] sm:$0xf]  ;;  %v499_v13 = vld [vmem:[%s908_s3 + $0x54] sm:$0xf0] }
  0x11   :  { %361 = vmatpush.bf16.msra.mxu0 %v510_v1 }
  0x12   :  { %604 = vmatpush.bf16.msra.mxu3 %v510_v1  ;;  %v466_v1 = vor.u32 %v557_v57, %v463_v58 }
  0x77   :  { %v39_v15 = vpop.xlane.xlu1 %38  ;;  %v35_v16 = vpop.xlane.xlu0 %34 }
  0x78   :  { %v53_v17 = vmul.f32 %v664_v14, %v39_v15  ;;  %v51_v18 = vmul.f32 %v664_v14, %v35_v16  ;;  %v43_v23 = vpop.xlane.xlu2 %42  ;;  %v505_v15 = vld [vmem:[%s908_s3 + $0x50] sm:$0xf]  ;;  %v568_v16 = vld [vmem:[%s908_s3 + $0x58] sm:$0xf0] }
  0x79   :  { %v55_v30 = vmul.f32 %v664_v14, %v43_v23 }
  0x7a   :  { %v668_v19 = vsub.f32 %v587_v3, %v53_v17  ;;  %v670_v20 = vsub.f32 %v583_v4, %v51_v18  ;;  %v517_v3 = vld [vmem:[%s908_s3 + $0x68] sm:$0xf]  ;;  %v571_v4 = vld [vmem:[%s908_s3 + $0x70] sm:$0xf0] }
  0x7b   :  { %v687_v33 = vsub.f32 %v33_v5, %v55_v30  ;;  %v514_v5 = vor.u32 %v569_v0, %v511_v2  ;;  %v487_v30 = vld [vmem:[%s908_s3 + $0x3c] sm:$0xf0]  ;;  %v470_v2 = vor.u32 %v559_v61, %v469_v60 }
  0x7c   :  { %v63_v21 = vmul.f32 %v668_v19, %v668_v19  ;;  %v61_v22 = vmul.f32 %v670_v20, %v670_v20 }
  0x7d   :  { %v65_v34 = vmul.f32 %v687_v33, %v687_v33  ;;  %384 = vmatpush.bf16.msra.mxu1 %v514_v5 }
  0x7e   :  { %70 = vadd.xlane.f32.xlu1 %v63_v21  ;;  %66 = vadd.xlane.f32.xlu2 %v61_v22  ;;  %v502_v21 = vor.u32 %v566_v9, %v499_v13  ;;  %v506_v22 = vor.u32 %v568_v16, %v505_v15 }
  0x7f   :  { %v41_v24 = vpop.xlane.xlu1 %40  ;;  %v37_v25 = vpop.xlane.xlu0 %36 }
  0x80   :  { %v54_v26 = vmul.f32 %v664_v14, %v41_v24  ;;  %v52_v27 = vmul.f32 %v664_v14, %v37_v25  ;;  %v485_v25 = vld [vmem:[%s908_s3 + $0x30] sm:$0xf] }
  0x81   :  { %385 = vmatpush.bf16.msra.mxu1 %v502_v21 }
  0x82   :  { %v678_v28 = vsub.f32 %v588_v6, %v54_v26  ;;  %v680_v29 = vsub.f32 %v584_v7, %v52_v27  ;;  %v518_v6 = vor.u32 %v571_v4, %v517_v3  ;;  %v497_v7 = vld [vmem:[%s908_s3 + $0x48] sm:$0xf]  ;;  %v564_v26 = vld [vmem:[%s908_s3 + $0x38] sm:$0xf0]  ;;  %v563_v27 = vld [vmem:[%s908_s3 + $0x34] sm:$0xf] }
  0x83   :  { %v498_v12 = vor.u32 %v567_v8, %v497_v7  ;;  %v490_v35 = vor.u32 %v563_v27, %v487_v30  ;;  %v610_v30 = vld [vmem:[%s906_s1] ss:$0 sm:$0xff] }
  0x84   :  { %v64_v31 = vmul.f32 %v678_v28, %v678_v28  ;;  %v62_v32 = vmul.f32 %v680_v29, %v680_v29  ;;  %407 = vmatpush.bf16.msra.mxu2 %v518_v6 }
  0x85   :  { %362 = vmatpush.bf16.msra.mxu0 %v498_v12  ;;  %605 = vmatpush.bf16.msra.mxu3 %v498_v12 }
  0x86   :  { %72 = vadd.xlane.f32.xlu2 %v64_v31  ;;  %68 = vadd.xlane.f32.xlu0 %v62_v32  ;;  %v486_v31 = vor.u32 %v564_v26, %v485_v25  ;;  %v493_v32 = vld [vmem:[%s908_s3 + $0x38] sm:$0xf] }
  0x87   :  { %386 = vmatpush.bf16.msra.mxu1 %v490_v35 }
  0x88   :  { %408 = vmatpush.bf16.msra.mxu2 %v506_v22 }
  0x89   :  { %363 = vmatpush.bf16.msra.mxu0 %v486_v31  ;;  %606 = vmatpush.bf16.msra.mxu3 %v486_v31 }
  0x8b   :  { %387 = vmatpush.bf16.msra.mxu1 %v478_v48 }
  0x8d   :  { %364 = vmatpush.bf16.msra.mxu0 %v474_v42  ;;  %607 = vmatpush.bf16.msra.mxu3 %v474_v42 }
  0x8e   :  { %74 = vadd.xlane.f32.xlu0 %v65_v34  ;;  %v565_v34 = vld [vmem:[%s908_s3 + $0x40] sm:$0xf0] }
  0x8f   :  { %v494_v36 = vor.u32 %v565_v34, %v493_v32  ;;  %388 = vmatpush.bf16.msra.mxu1 %v466_v1 }
  0x91   :  { %409 = vmatpush.bf16.msra.mxu2 %v494_v36  ;;  %365 = vmatpush.bf16.msra.mxu0 %v462_v63 }
  0x92   :  { %608 = vmatpush.bf16.msra.mxu3 %v462_v63 }
  0x95   :  { %410 = vmatpush.bf16.msra.mxu2 %v482_v49 }
  0x99   :  { %411 = vmatpush.bf16.msra.mxu2 %v470_v2 }
  0xf1   :  { %v71_v10 = vpop.xlane.xlu1 %70  ;;  %v67_v11 = vpop.xlane.xlu2 %66 }
  0xf2   :  { %v78_v17 = vmul.f32 %v71_v10, %v664_v14  ;;  %v76_v18 = vmul.f32 %v67_v11, %v664_v14 }
  0xf4   :  { %v783_v23 = vadd.f32 1e-05, %v78_v17  ;;  %v785_v24 = vadd.f32 1e-05, %v76_v18 }
  0xf6   :  { %614 = vrsqrt.f32 %v783_v23  ;;  %vm112_vm1 = vweird.f32 %v783_v23  ;;  %vm92_vm5 = vweird.f32 %v785_v24 }
  0xf7   :  { %616 = vrsqrt.f32 %v785_v24 }
  0xf9   :  { %v73_v40 = vpop.xlane.xlu2 %72  ;;  %v69_v41 = vpop.xlane.xlu0 %68 }
  0xfa   :  { %v79_v46 = vmul.f32 %v73_v40, %v664_v14  ;;  %v77_v47 = vmul.f32 %v69_v41, %v664_v14 }
  0xfc   :  { %v615_v50 = vpop.eup %614  ;;  %v84_v51 = vadd.f32 1e-05, %v79_v46  ;;  %v827_v52 = vadd.f32 1e-05, %v77_v47 }
  0xfd   :  { %v617_v54 = vpop.eup %616  ;;  %v107_v55 = vmul.f32 %v615_v50, %v783_v23  ;;  %vm113_vm2 = vweird.f32 %v615_v50 }
  0xfe   :  { %v87_v59 = vmul.f32 %v617_v54, %v785_v24  ;;  %618 = vrsqrt.f32 %v84_v51  ;;  %vm852_vm3 = vmor %vm112_vm1, %vm113_vm2  ;;  %vm93_vm4 = vweird.f32 %v617_v54  ;;  %vm122_vm7 = vweird.f32 %v84_v51 }
  0xff   :  { %v108_v62 = vmul.f32 %v615_v50, %v107_v55  ;;  %620 = vrsqrt.f32 %v827_v52  ;;  %vm94_vm6 = vmor %vm92_vm5, %vm93_vm4  ;;  %vm102_vm11 = vweird.f32 %v827_v52 }
 0x100   :  { %v88_v0 = vmul.f32 %v617_v54, %v87_v59 }
 0x101   :  { %v109_v3 = vmul.f32 0.5, %v108_v62  ;;  %v75_v4 = vpop.xlane.xlu0 %74 }
 0x102   :  { %v89_v5 = vmul.f32 0.5, %v88_v0  ;;  %v80_v6 = vmul.f32 %v75_v4, %v664_v14 }
 0x103   :  { %v110_v7 = vsub.f32 1.5, %v109_v3 }
 0x104   :  { %v619_v8 = vpop.eup %618  ;;  %v90_v9 = vsub.f32 1.5, %v89_v5  ;;  %v85_v10 = vadd.f32 1e-05, %v80_v6 }
 0x105   :  { %v621_v11 = vpop.eup %620  ;;  %v111_v12 = vmul.f32 %v615_v50, %v110_v7  ;;  %v117_v13 = vmul.f32 %v619_v8, %v84_v51  ;;  %vm123_vm8 = vweird.f32 %v619_v8 }
 0x106   :  { %v91_v16 = vmul.f32 %v617_v54, %v90_v9  ;;  %v97_v14 = vmul.f32 %v621_v11, %v827_v52  ;;  %622 = vrsqrt.f32 %v85_v10  ;;  %vm124_vm9 = vmor %vm122_vm7, %vm123_vm8  ;;  %vm103_vm10 = vweird.f32 %v621_v11 }
 0x107   :  { %v118_v17 = vmul.f32 %v619_v8, %v117_v13  ;;  %v115_v21 = vsel %vm852_vm3, %v615_v50, %v111_v12  ;;  %vm104_vm12 = vmor %vm102_vm11, %vm103_vm10  ;;  %vm132_vm13 = vweird.f32 %v85_v10 }
 0x108   :  { %v98_v18 = vmul.f32 %v621_v11, %v97_v14  ;;  %v95_v23 = vsel %vm94_vm6, %v617_v54, %v91_v16  ;;  %v138_v31 = vmul.f32 %v115_v21, %v668_v19 }
 0x109   :  { %v119_v22 = vmul.f32 0.5, %v118_v17  ;;  %v136_v32 = vmul.f32 %v95_v23, %v670_v20 }
 0x10a   :  { %v99_v25 = vmul.f32 0.5, %v98_v18  ;;  %v147_v40 = vmul.f32 %v610_v30, %v138_v31 }
 0x10b   :  { %v120_v26 = vsub.f32 1.5, %v119_v22  ;;  %v145_v42 = vmul.f32 %v610_v30, %v136_v32 }
 0x10c   :  { %v623_v27 = vpop.eup %622  ;;  %v100_v24 = vsub.f32 1.5, %v99_v25  ;;  %v156_v47 = vadd.f32 %v611_v39, %v147_v40 }
 0x10d   :  { %v121_v34 = vmul.f32 %v619_v8, %v120_v26  ;;  %v127_v35 = vmul.f32 %v623_v27, %v85_v10  ;;  %vm133_vm14 = vweird.f32 %v623_v27  ;;  %v154_v49 = vadd.f32 %v611_v39, %v145_v42 }
 0x10e   :  { %v101_v36 = vmul.f32 %v621_v11, %v100_v24  ;;  %vm134_vm15 = vmor %vm132_vm13, %vm133_vm14 }
 0x10f   :  { %v125_v37 = vsel %vm124_vm9, %v619_v8, %v121_v34  ;;  %v128_v38 = vmul.f32 %v623_v27, %v127_v35 }
 0x110   :  { %v139_v19 = vmul.f32 %v125_v37, %v678_v28  ;;  %v105_v41 = vsel %vm104_vm12, %v621_v11, %v101_v36 }
 0x111   :  { %v137_v20 = vmul.f32 %v105_v41, %v680_v29  ;;  %v129_v43 = vmul.f32 0.5, %v128_v38 }
 0x112   :  { %v148_v44 = vmul.f32 %v610_v30, %v139_v19 }
 0x113   :  { %v146_v45 = vmul.f32 %v610_v30, %v137_v20  ;;  %v130_v46 = vsub.f32 1.5, %v129_v43 }
 0x114   :  { %v157_v48 = vadd.f32 %v611_v39, %v148_v44 }
 0x115   :  { %v155_v50 = vadd.f32 %v611_v39, %v146_v45  ;;  %v131_v51 = vmul.f32 %v623_v27, %v130_v46 }
 0x116   :  { %v597_v52 = vpack.c.bf16 %v157_v48, %v156_v47 }
 0x117   :  { %v592_v53 = vpack.c.bf16 %v155_v50, %v154_v49  ;;  %v135_v54 = vsel %vm134_vm15, %v623_v27, %v131_v51 }
 0x118   :  { %600 = vst [vmem:[#allocation2 + $0x8] sm:$0xff] %v597_v52   ;;  %v140_v28 = vmul.f32 %v135_v54, %v687_v33  ;;  %v206_v33 = vld [vmem:[%s909_s4] sm:$0x7] }
 0x119   :  { %593 = vst [vmem:[#allocation2] sm:$0xff] %v592_v53   ;;  %v208_v62 = vperm.slane %v206_v33, 0  ;;  %v209_v63 = vperm.slane %v206_v33, 1  ;;  %v210_v5 = vperm.slane %v206_v33, 2 }
 0x11a   :  { %v149_v55 = vmul.f32 %v610_v30, %v140_v28 }
 0x11c   :  { %v158_v29 = vadd.f32 %v611_v39, %v149_v55 }
 0x11e   :  { %v163_v56 = vpack.c.bf16 %v158_v29, %v158_v29 }
 0x11f   :  { %v556_v57 = vld [vmem:[#allocation2 + $0x8] sm:$0xff] }
 0x120   :  { %168 = vst [vmem:[#allocation2 + $0x10] sm:$0xf] %v163_v56  ;;  %v555_v58 = vld [vmem:[#allocation2] sm:$0xff]  ;;  %371 = vmatmul.bf16.vlgmr.msra.gmra.mxu3 %v556_v57 }
 0x121   :  { %366 = vmatmul.bf16.vlgmr.msra.gmra.mxu0 %v555_v58  ;;  %389 = vmatmul.bf16.vlgmr.msra.gmra.mxu1 %v555_v58 }
 0x122   :  { %412 = vmatmul.bf16.vlgmr.msra.gmra.mxu2 %v555_v58 }
 0x127   :  { %v173_v59 = vld [vmem:[#allocation2 + $0x10] sm:$0xf] }
 0x128   :  { %v223_v60 = vunpack.c.l.b16 %v173_v59 }
 0x12a   :  { %v226_v61 = vpack.c.b16 %v223_v60, %v223_v60 }
 0x130   :  { %376 = vmatmul.bf16.gmra.mxu3 %v226_v61 }
 0x131   :  { %394 = vmatmul.bf16.gmra.mxu1 %v556_v57 }
 0x132   :  { %417 = vmatmul.bf16.gmra.mxu2 %v556_v57 }
 0x141   :  { %399 = vmatmul.bf16.gmra.mxu1 %v226_v61 }
 0x142   :  { %422 = vmatmul.bf16.gmra.mxu2 %v226_v61 }
 0x19e   :  { %v367_v0 = vpop.f32.mrf.mxu0  ;;  %v390_v1 = vpop.f32.mrf.mxu1 }
 0x19f   :  { %v368_v2 = vadd.f32 %v367_v0, %v208_v62  ;;  %v391_v3 = vadd.f32 %v390_v1, %v209_v63 }
 0x1a1   :  { %v427_v4 = vpack.c.bf16 %v391_v3, %v368_v2 }
 0x1a3   :  { %437 = vst [vmem:[%s910_s5] sm:$0xff] %v427_v4  ;;  %v372_v6 = vpop.f32.mrf.mxu3 }
 0x1a4   :  { %v373_v21 = vadd.f32 %v372_v6, %v208_v62 }
 0x1a5   :  { %v413_v7 = vpop.f32.mrf.mxu2 }
 0x1a6   :  { %v414_v8 = vadd.f32 %v413_v7, %v210_v5  ;;  %v369_v9 = vpop.f32.mrf.mxu0  ;;  %v392_v10 = vpop.f32.mrf.mxu1 }
 0x1a7   :  { %v370_v11 = vadd.f32 %v369_v9, %v208_v62  ;;  %v393_v12 = vadd.f32 %v392_v10, %v209_v63 }
 0x1a8   :  { %v428_v13 = vpack.c.bf16 %v414_v8, %v414_v8 }
 0x1a9   :  { %v429_v15 = vpack.c.bf16 %v393_v12, %v370_v11 }
 0x1aa   :  { %438 = vst [vmem:[%s910_s5 + $0x8] sm:$0xf] %v428_v13 }
 0x1ab   :  { %439 = vst [vmem:[%s910_s5 + $0xc] sm:$0xff] %v429_v15  ;;  %v374_v16 = vpop.f32.mrf.mxu3 }
 0x1ac   :  { %v375_v24 = vadd.f32 %v374_v16, %v208_v62 }
 0x1ad   :  { %v415_v14 = vpop.f32.mrf.mxu2 }
 0x1ae   :  { %v416_v17 = vadd.f32 %v415_v14, %v210_v5  ;;  %v395_v18 = vpop.f32.mrf.mxu1 }
 0x1af   :  { %v396_v22 = vadd.f32 %v395_v18, %v209_v63 }
 0x1b0   :  { %v430_v23 = vpack.c.bf16 %v416_v17, %v416_v17 }
 0x1b1   :  { %v431_v25 = vpack.c.bf16 %v396_v22, %v373_v21 }
 0x1b2   :  { %440 = vst [vmem:[%s910_s5 + $0x14] sm:$0xf] %v430_v23 }
 0x1b3   :  { %441 = vst [vmem:[%s910_s5 + $0x18] sm:$0xff] %v431_v25  ;;  %v377_v26 = vpop.f32.mrf.mxu3 }
 0x1b4   :  { %v378_v40 = vadd.f32 %v377_v26, %v208_v62 }
 0x1b5   :  { %v418_v27 = vpop.f32.mrf.mxu2 }
 0x1b6   :  { %v419_v30 = vadd.f32 %v418_v27, %v210_v5  ;;  %v397_v31 = vpop.f32.mrf.mxu1 }
 0x1b7   :  { %v398_v32 = vadd.f32 %v397_v31, %v209_v63 }
 0x1b8   :  { %v432_v34 = vpack.c.bf16 %v419_v30, %v419_v30 }
 0x1b9   :  { %v433_v35 = vpack.c.bf16 %v398_v32, %v375_v24 }
 0x1ba   :  { %442 = vst [vmem:[%s910_s5 + $0x20] sm:$0xf] %v432_v34 }
 0x1bb   :  { %443 = vst [vmem:[%s910_s5 + $0x24] sm:$0xff] %v433_v35  ;;  %v379_v36 = vpop.f32.mrf.mxu3 }
 0x1bd   :  { %v420_v37 = vpop.f32.mrf.mxu2 }
 0x1be   :  { %v421_v38 = vadd.f32 %v420_v37, %v210_v5  ;;  %v400_v39 = vpop.f32.mrf.mxu1 }
 0x1bf   :  { %v401_v19 = vadd.f32 %v400_v39, %v209_v63 }
 0x1c0   :  { %v434_v41 = vpack.c.bf16 %v421_v38, %v421_v38 }
 0x1c1   :  { %v435_v42 = vpack.c.bf16 %v401_v19, %v378_v40 }
 0x1c2   :  { %444 = vst [vmem:[%s910_s5 + $0x2c] sm:$0xf] %v434_v41 }
 0x1c3   :  { %445 = vst [vmem:[%s910_s5 + $0x30] sm:$0xff] %v435_v42 }
 0x1c5   :  { %v423_v20 = vpop.f32.mrf.mxu2 }
 0x1c6   :  { %v424_v43 = vadd.f32 %v423_v20, %v210_v5  ;;  %v402_v44 = vpop.f32.mrf.mxu1 }
 0x1c8   :  { %v436_v45 = vpack.c.bf16 %v424_v43, %v424_v43 }
 0x1ca   :  { %446 = vst [vmem:[%s910_s5 + $0x38] sm:$0xf] %v436_v45 }
 0x1cd   :  { %v425_v46 = vpop.f32.mrf.mxu2 }

// kernel: _lambda_.31
= control target key start
LH: loop header
LB: loop body
LE: loop exit
PB: predicated region body
PF: predicated region fallthrough
CT: control target
= control target key end

     0   :  { %s985_s12 = smov 0   ;;  %s987_s13 = smov 0   ;;  %s1117_s0 = inlined_call_operand.vmem [shape: bf16[2,17,384], index: 0, kind: input, shape index: {}, may-alias: {0,1,2}]   ;;  %s1118_s1 = inlined_call_operand.vmem [shape: bf16[2,17,384], index: 1, kind: input, shape index: {}, may-alias: {0,1,2}]   ;;  %s1119_s2 = inlined_call_operand.vmem [shape: bf16[2,17,384], index: 2, kind: input, shape index: {}, may-alias: {0,1,2}]   ;;  %s1120_s3 = inlined_call_operand.vmem [shape: bf16[2,17,128], index: 3, kind: output, shape index: {}]  }
   0x1   :  { %s989_s14 = smov 0   ;;  %s991_s15 = smov 0  }
   0x2   :  { %s993_s16 = smov 0  }
   0x3 LB: > { %s25_s17 = sadd.s32 1, %s957_s15  ;;  %p41_p1 = scmp.ne.s32.totalorder %s949_s13, %s945_s12  ;;  %s961_s16 = sphi %s993_s16, %s13_s16   ;;  %s957_s15 = sphi %s991_s15, %s1125_s15   ;;  %s953_s14 = sphi %s989_s14, %s1124_s14   ;;  %s949_s13 = sphi %s987_s13, %s1123_s13   ;;  %s945_s12 = sphi %s985_s12, %s1122_s12  }
   0x4   : > { %p27_p0 = scmp.ge.s32.totalorder %s25_s17, 2  ;;  %p42_p2 = scmp.eq.s32.totalorder %s961_s16, 0 }
   0x5   : > { %s34_s20 = sadd.s32 1, %s949_s13  ;;  %p804_p5 = scmp.ge.s32.totalorder %s961_s16, 2 }
   0x6   : > { %s1127_s17 = smov (%p27_p0, %s25_s17), 0  ;;  %p1016_p3 = por %p42_p2, %p41_p1 }
   0x7   : > { %s29_s19 = ssub.s32 %s957_s15, %s1127_s17  ;;  %155 = sbr.rel (%p804_p5) target bundleno = 36 (0x24), region = 16 }
   0x8   : > { %p32_p4 = scmp.eq.s32.totalorder %s29_s19, 0 }
   0xa   : > { %s1024_s21 = scalar_select %p32_p4, %s949_s13, %s34_s20  }
   0xc   : > { %158 = sbr.rel (!%p1016_p3) target bundleno = 20 (0x14), region = 20  ;;  %s160_s22 = sand.u32 (%p1016_p3), 1, %s949_s13  }
   0xd   : > { %s847_s23 = smul.u32 (%p1016_p3), 36, %s957_s15 }
   0xe   : > { %s846_s24 = smul.u32 (%p1016_p3), 12, %s160_s22 }
   0xf   : > { %s166_s27 = scalar_lea.vmem (%p1016_p3), %s1117_s0, %s847_s23 }
  0x10   : > { %v183_v0 = vld [vmem:[%s166_s27] sm:$0xf] (%p1016_p3)  ;;  %v185_v1 = vld [vmem:[%s166_s27 + $0xc] sm:$0xf] (%p1016_p3)  ;;  %s162_s28 = scalar_lea.vmem (%p1016_p3), [#allocation2], %s846_s24 }
  0x11   : > { %184 = vst [vmem:[%s162_s28] sm:$0xf] %v183_v0  ;;  %v187_v2 = vld [vmem:[%s166_s27 + $0x18] sm:$0xf] }
  0x12   : > { %186 = vst [vmem:[%s162_s28 + $0x4] sm:$0xf] %v185_v1 }
  0x13   : > { %188 = vst [vmem:[%s162_s28 + $0x8] sm:$0xf] %v187_v2 }
  0x14 PF: > { %218 = sbr.rel (!%p1016_p3) target bundleno = 28 (0x1c), region = 61  ;;  %s220_s29 = sand.u32 (%p1016_p3), 1, %s949_s13  }
  0x15   : > { %s806_s30 = smul.u32 (%p1016_p3), 36, %s957_s15 }
  0x16   : > { %s848_s4 = smul.u32 (%p1016_p3), 12, %s220_s29 }
  0x17   : > { %s712_s7 = scalar_lea.vmem (%p1016_p3), %s1118_s1, %s806_s30 }
  0x18   : > { %v807_v3 = vld [vmem:[%s712_s7 + $0x4] sm:$0xf] (%p1016_p3)  ;;  %v808_v4 = vld [vmem:[%s712_s7 + $0x10] sm:$0xf] (%p1016_p3)  ;;  %s222_s8 = scalar_lea.vmem (%p1016_p3), [#allocation3], %s848_s4 }
  0x19   : > { %245 = vst [vmem:[%s222_s8] sm:$0xf] %v807_v3  ;;  %v809_v5 = vld [vmem:[%s712_s7 + $0x1c] sm:$0xf] }
  0x1a   : > { %247 = vst [vmem:[%s222_s8 + $0x4] sm:$0xf] %v808_v4 }
  0x1b   : > { %249 = vst [vmem:[%s222_s8 + $0x8] sm:$0xf] %v809_v5 }
  0x1c PF: > { %279 = sbr.rel (!%p1016_p3) target bundleno = 36 (0x24), region = 102  ;;  %s281_s9 = sand.u32 (%p1016_p3), 1, %s949_s13  }
  0x1d   : > { %s810_s10 = smul.u32 (%p1016_p3), 36, %s957_s15 }
  0x1e   : > { %s849_s11 = smul.u32 (%p1016_p3), 12, %s281_s9 }
  0x1f   : > { %s719_s22 = scalar_lea.vmem (%p1016_p3), %s1119_s2, %s810_s10 }
  0x20   : > { %v811_v6 = vld [vmem:[%s719_s22 + $0x8] sm:$0xf] (%p1016_p3)  ;;  %v812_v7 = vld [vmem:[%s719_s22 + $0x14] sm:$0xf] (%p1016_p3)  ;;  %s283_s23 = scalar_lea.vmem (%p1016_p3), [#allocation4], %s849_s11 }
  0x21   : > { %306 = vst [vmem:[%s283_s23] sm:$0xf] %v811_v6  ;;  %v813_v8 = vld [vmem:[%s719_s22 + $0x20] sm:$0xf] }
  0x22   : > { %308 = vst [vmem:[%s283_s23 + $0x4] sm:$0xf] %v812_v7 }
  0x23   : > { %310 = vst [vmem:[%s283_s23 + $0x8] sm:$0xf] %v813_v8 }
  0x24 PF: > { %p814_p6 = scmp.ge.s32.totalorder %s961_s16, 1  ;;  %p339_p7 = scmp.lt.s32.totalorder %s961_s16, 3 }
  0x26   : > { %p340_p8 = pnand %p814_p6, %p339_p7 }
  0x27   : > { %s346_s18 = sand.u32 (!%p340_p8), 1, %s945_s12   ;;  %s963_s27 = smov (!%p340_p8), 64  }
  0x28   : > { %343 = sbr.rel (%p340_p8) target bundleno = 900 (0x384), region = 143  ;;  %p396_p9 = scmp.lt.s32.totalorder (!%p340_p8), %s953_s14, 1 }
  0x29   : > { %s1051_s24 = smul.u32 (!%p340_p8), 12, %s346_s18 }
  0x2b   : > { %s355_s25 = scalar_lea.vmem (!%p340_p8), [#allocation3], %s1051_s24  ;;  %s348_s26 = scalar_lea.vmem (!%p340_p8), [#allocation2], %s1051_s24 }
  0x2c   : > { %s362_s12 = scalar_lea.vmem (!%p340_p8), [#allocation4], %s1051_s24 }
  0x2d   : > { %v410_v9 = vld [vmem:[%s355_s25 + $0x8] sm:$0x1]  ;;  %v407_v12 = vld [vmem:[%s348_s26 + $0x8] sm:$0x1]  ;;  %vm430_vm0 = vcmask 523264   ;;  %v839_v17 = vld [vmem:[%s355_s25] sm:$0xff] }
  0x2e   : > { %v838_v10 = vld [vmem:[%s348_s26] sm:$0xff]  ;;  %v427_v11 = vunpack.c.l.b16 %v410_v9  ;;  %v419_v13 = vunpack.c.l.b16 %v407_v12  ;;  %v438_v18 = vsel %vm430_vm0, %v839_v17, 0  ;;  %vm464_vm1 = vcmask 138240   ;;  %v840_v52 = vld [vmem:[%s362_s12] sm:$0xff]  ;;  %v413_v6 = vld [vmem:[%s362_s12 + $0x8] sm:$0x1] }
  0x2f   : > { %540 = vrot.lane.b32.xlu1 %v838_v10, %s963_s27  ;;  %vm471_vm2 = vcmask 131072   ;;  %v506_v9 = vunpack.c.l.b16 %v413_v6  ;;  %vm516_vm3 = vcmask 1040384   ;;  %s1129_s14 = smov (!%p396_p9, %s953_s14), 1  ;;  %vm669_vm4 = vsmask.f32 256 }
  0x30   : > { %v429_v14 = vpack.c.b16 %v427_v11, %v427_v11  ;;  %v421_v16 = vpack.c.b16 %v419_v13, %v419_v13  ;;  %s851_s28 = smul.u32 12, %s1129_s14  ;;  %vm670_vm5 = vmand %vm516_vm3, %vm669_vm4 }
  0x32   : > { %546 = vrot.lane.b32.xlu0 %v429_v14, %s963_s27  ;;  %v441_v15 = vsel %vm430_vm0, %v429_v14, 0  ;;  %s403_s4 = scalar_lea.vmem %s1120_s3, %s851_s28 }
  0x33   : > { %449 = vmatpush.bf16.xpose.msra.mxu0 %v441_v15  ;;  %v964_v15 = vmov 0  }
  0x37   : > { %542 = vrot.lane.b32.xlu1 %v421_v16, %s963_s27 }
  0x3a   : > { %544 = vrot.lane.b32.xlu0 %v839_v17, %s963_s27 }
  0x3b   : > { %450 = vmatpush.bf16.xpose.msra.mxu0 %v438_v18 }
  0x42   : > { %824 = vmatmul.msk.bf16.vlgmr.msra.gmra.mxu0 %vm430_vm0, %v838_v10  ;;  %v508_v10 = vpack.c.b16 %v506_v9, %v506_v9 }
  0x52   : > { %825 = vmatmul.msk.bf16.gmra.mxu0 %vm430_vm0, %v421_v16  ;;  %v518_v16 = vsel %vm516_vm3, 65535, %v964_v15 }
  0x53   : > { %v520_v17 = vand.u32 %v518_v16, %v508_v10 }
  0x55   : > { %528 = vmatpush.bf16.msra.mxu1 %v520_v17 }
  0x59   : > { %529 = vmatpush.bf16.msra.mxu1 %v840_v52 }
  0xa1   : > { %v541_v23 = vpop.permute.xlu1 %540 }
  0xa4   : > { %v547_v19 = vpop.permute.xlu0 %546 }
  0xa5   : > { %v558_v20 = vsel %vm430_vm0, %v547_v19, 0 }
  0xa6   : > { %566 = vmatpush.bf16.xpose.msra.mxu2 %v558_v20 }
  0xa9   : > { %v543_v26 = vpop.permute.xlu1 %542 }
  0xac   : > { %v545_v21 = vpop.permute.xlu0 %544 }
  0xad   : > { %v555_v22 = vsel %vm430_vm0, %v545_v21, 0 }
  0xae   : > { %567 = vmatpush.bf16.xpose.msra.mxu2 %v555_v22 }
  0xb5   : > { %832 = vmatmul.msk.bf16.vlgmr.msra.gmra.mxu2 %vm430_vm0, %v541_v23 }
  0xbf   : > { %v452_v24 = vpop.f32.mrf.mxu0 }
  0xc0   : > { %v461_v25 = vmul.f32 0.125, %v452_v24 }
  0xc2   : > { %v465_v27 = vsel %vm464_vm1, %v461_v25, -inf }
  0xc3   : > { %466 = vmax.xlane.f32.xlu1 %v465_v27 }
  0xc5   : > { %833 = vmatmul.msk.bf16.gmra.mxu2 %vm430_vm0, %v543_v26 }
  0xc7   : > { %v454_v28 = vpop.f32.mrf.mxu0 }
  0xc8   : > { %v462_v37 = vmul.f32 0.125, %v454_v28 }
  0xca   : > { %v468_v42 = vsel %vm464_vm1, %v462_v37, -inf }
  0xcf   : > { %v457_v29 = vpop.f32.mrf.mxu0 }
  0xd0   : > { %v463_v45 = vmul.f32 0.125, %v457_v29 }
  0xd2   : > { %v472_v47 = vsel %vm471_vm2, %v463_v45, -inf }
  0xd7   : > { %v459_v30 = vpop.f32.mrf.mxu0 }
  0xdc   : > { %616 = vrot.lane.b32.xlu1 %v840_v52, %s963_s27 }
 0x136   : > { %v467_v38 = vpop.xlane.xlu1 %466 }
 0x137   : > { %v475_v40 = vsub.f32 %v461_v25, %v467_v38 }
 0x138   : > { %v569_v31 = vpop.f32.mrf.mxu2 }
 0x139   : > { %v578_v32 = vmul.f32 0.125, %v569_v31  ;;  %v478_v44 = vmul.f32 1.442695, %v475_v40 }
 0x13b   : > { %v581_v33 = vsel %vm464_vm1, %v578_v32, -inf  ;;  %899 = vpow2.f32 %v478_v44 }
 0x13c   : > { %582 = vmax.xlane.f32.xlu2 %v581_v33 }
 0x140   : > { %v571_v34 = vpop.f32.mrf.mxu2 }
 0x141   : > { %v579_v35 = vmul.f32 0.125, %v571_v34  ;;  %v1073_v48 = vpop.eup %899 }
 0x142   : > { %v484_v49 = vsel %vm464_vm1, %v1073_v48, 0.0 }
 0x143   : > { %v584_v36 = vsel %vm464_vm1, %v579_v35, -inf }
 0x144   : > { %585 = vmax.xlane.f32.xlu2 %v584_v36 }
 0x148   : > { %v574_v39 = vpop.f32.mrf.mxu2 }
 0x149   : > { %v580_v41 = vmul.f32 0.125, %v574_v39 }
 0x14b   : > { %v587_v43 = vsel %vm471_vm2, %v580_v41, -inf }
 0x14c   : > { %588 = vmax.xlane.f32.xlu0 %v587_v43  ;;  %469 = vmax.xlane.f32.xlu2 %v468_v42 }
 0x14e   : > { %v617_v26 = vpop.permute.xlu1 %616 }
 0x150   : > { %v576_v46 = vpop.f32.mrf.mxu2 }
 0x154   : > { %473 = vmax.xlane.f32.xlu0 %v472_v47 }
 0x15c   : > { %485 = vadd.xlane.f32.xlu0 %v484_v49 }
 0x1af   : > { %v583_v50 = vpop.xlane.xlu2 %582 }
 0x1b0   : > { %v590_v51 = vsub.f32 %v578_v32, %v583_v50 }
 0x1b2   : > { %v593_v53 = vmul.f32 1.442695, %v590_v51 }
 0x1b4   : > { %901 = vpow2.f32 %v593_v53 }
 0x1b7   : > { %v586_v54 = vpop.xlane.xlu2 %585 }
 0x1b8   : > { %v591_v55 = vsub.f32 %v579_v35, %v586_v54 }
 0x1ba   : > { %v902_v56 = vpop.eup %901  ;;  %v595_v57 = vmul.f32 1.442695, %v591_v55 }
 0x1bb   : > { %v599_v58 = vsel %vm464_vm1, %v902_v56, 0.0 }
 0x1bc   : > { %903 = vpow2.f32 %v595_v57  ;;  %600 = vadd.xlane.f32.xlu2 %v599_v58  ;;  %v671_v57 = vld [vmem:[%s403_s4 + $0x8] sm:$0x1] }
 0x1bf   : > { %v589_v59 = vpop.xlane.xlu0 %588  ;;  %v470_v60 = vpop.xlane.xlu2 %469 }
 0x1c0   : > { %v476_v61 = vsub.f32 %v462_v37, %v470_v60  ;;  %v592_v11 = vsub.f32 %v580_v41, %v589_v59 }
 0x1c2   : > { %v904_v62 = vpop.eup %903  ;;  %v480_v63 = vmul.f32 1.442695, %v476_v61  ;;  %v597_v12 = vmul.f32 1.442695, %v592_v11 }
 0x1c3   : > { %v602_v0 = vsel %vm464_vm1, %v904_v62, 0.0 }
 0x1c4   : > { %603 = vadd.xlane.f32.xlu2 %v602_v0  ;;  %905 = vpow2.f32 %v480_v63 }
 0x1c7   : > { %v474_v1 = vpop.xlane.xlu0 %473 }
 0x1c8   : > { %v477_v2 = vsub.f32 %v463_v45, %v474_v1 }
 0x1ca   : > { %v482_v3 = vmul.f32 1.442695, %v477_v2  ;;  %v906_v4 = vpop.eup %905 }
 0x1cb   : > { %v487_v5 = vsel %vm464_vm1, %v906_v4, 0.0 }
 0x1cc   : > { %907 = vpow2.f32 %v482_v3  ;;  %488 = vadd.xlane.f32.xlu0 %v487_v5 }
 0x1cd   : > { %909 = vpow2.f32 %v597_v12 }
 0x1cf   : > { %v486_v20 = vpop.xlane.xlu0 %485 }
 0x1d2   : > { %v908_v7 = vpop.eup %907 }
 0x1d3   : > { %v490_v8 = vsel %vm471_vm2, %v908_v7, 0.0  ;;  %v910_v13 = vpop.eup %909 }
 0x1d4   : > { %491 = vadd.xlane.f32.xlu0 %v490_v8  ;;  %v605_v14 = vsel %vm471_vm2, %v910_v13, 0.0 }
 0x1dc   : > { %618 = vrot.lane.b32.xlu2 %v508_v10, %s963_s27 }
 0x205   : > { %606 = vadd.xlane.f32.xlu2 %v605_v14 }
 0x22f   : > { %v601_v18 = vpop.xlane.xlu2 %600 }
 0x237   : > { %v604_v19 = vpop.xlane.xlu2 %603 }
 0x238   : > { %911 = vrcp.f32 %v604_v19 }
 0x239   : > { %913 = vrcp.f32 %v601_v18 }
 0x23a   : > { %915 = vrcp.f32 %v486_v20 }
 0x23e   : > { %v912_v22 = vpop.eup %911 }
 0x23f   : > { %v619_v21 = vpop.permute.xlu2 %618  ;;  %v489_v23 = vpop.xlane.xlu0 %488  ;;  %v612_v27 = vmul.f32 %v912_v22, %v904_v62 }
 0x240   : > { %v628_v24 = vand.u32 %v619_v21, %v518_v16  ;;  %917 = vrcp.f32 %v489_v23  ;;  %v914_v25 = vpop.eup %913 }
 0x241   : > { %v916_v28 = vpop.eup %915  ;;  %v611_v29 = vmul.f32 %v914_v25, %v902_v56 }
 0x242   : > { %636 = vmatpush.bf16.msra.mxu3 %v628_v24  ;;  %v496_v32 = vmul.f32 %v916_v28, %v1073_v48 }
 0x243   : > { %v614_v31 = vpack.c.bf16 %v612_v27, %v611_v29 }
 0x246   : > { %637 = vmatpush.bf16.msra.mxu3 %v617_v26  ;;  %v918_v30 = vpop.eup %917 }
 0x247   : > { %v497_v33 = vmul.f32 %v918_v30, %v906_v4  ;;  %v492_v34 = vpop.xlane.xlu0 %491 }
 0x248   : > { %919 = vrcp.f32 %v492_v34 }
 0x249   : > { %834 = vmatmul.msk.bf16.vlgmr.msra.gmra.mxu3 %vm464_vm1, %v614_v31  ;;  %v499_v35 = vpack.c.bf16 %v497_v33, %v496_v32 }
 0x24b   : > { %830 = vmatmul.msk.bf16.vlgmr.msra.gmra.mxu1 %vm464_vm1, %v499_v35 }
 0x24e   : > { %v920_v36 = vpop.eup %919 }
 0x24f   : > { %v498_v37 = vmul.f32 %v920_v36, %v908_v7 }
 0x251   : > { %v500_v38 = vpack.c.bf16 %v498_v37, %v498_v37 }
 0x25b   : > { %831 = vmatmul.msk.bf16.gmra.mxu1 %vm464_vm1, %v500_v38 }
 0x278   : > { %v607_v39 = vpop.xlane.xlu2 %606 }
 0x279   : > { %921 = vrcp.f32 %v607_v39 }
 0x27f   : > { %v922_v40 = vpop.eup %921 }
 0x280   : > { %v613_v41 = vmul.f32 %v922_v40, %v910_v13 }
 0x282   : > { %v615_v42 = vpack.c.bf16 %v613_v41, %v613_v41 }
 0x284   : > { %835 = vmatmul.msk.bf16.gmra.mxu3 %vm464_vm1, %v615_v42 }
 0x2c8   : > { %v531_v43 = vpop.f32.mrf.mxu1 }
 0x2cc   : > { %v639_v44 = vpop.f32.mrf.mxu3 }
 0x2d0   : > { %v533_v45 = vpop.f32.mrf.mxu1 }
 0x2d4   : > { %v641_v46 = vpop.f32.mrf.mxu3 }
 0x2d5   : > { %653 = vrot.lane.b32.xlu0 %v641_v46, %s963_s27 }
 0x2d8   : > { %v536_v47 = vpop.f32.mrf.mxu1 }
 0x2e0   : > { %v538_v48 = vpop.f32.mrf.mxu1 }
 0x307   : > { %v644_v49 = vpop.f32.mrf.mxu3 }
 0x308   : > { %v894_v50 = vpack.i.bf16 %v639_v44, %v644_v49 }
 0x30a   : > { %895 = vrot.lane.b32.xlu1 %v894_v50, %s963_s27 }
 0x30f   : > { %v646_v51 = vpop.f32.mrf.mxu3 }
 0x347   : > { %v654_v52 = vpop.permute.xlu0 %653 }
 0x348   : > { %v661_v56 = vsel %vm430_vm0, %v533_v45, %v654_v52 }
 0x37c   : > { %v896_v53 = vpop.permute.xlu1 %895 }
 0x37d   : > { %v898_v54 = vunpack.i.h.bf16 %v896_v53  ;;  %v897_v55 = vunpack.i.l.bf16 %v896_v53 }
 0x37f   : > { %v660_v58 = vsel %vm430_vm0, %v531_v43, %v898_v54  ;;  %v662_v59 = vsel %vm430_vm0, %v536_v47, %v897_v55 }
 0x380   : > { %v665_v60 = vpack.c.bf16 %v662_v59, %v662_v59  ;;  %v844_v61 = vpack.c.bf16 %v661_v56, %v660_v58 }
 0x382   : > { %845 = vst [vmem:[%s403_s4] sm:$0xff] %v844_v61   ;;  %v672_v62 = vsel %vm670_vm5, %v665_v60, %v671_v57 }
 0x383   : > { %673 = vst [vmem:[%s403_s4 + $0x8] sm:$0x1] %v672_v62 }
 0x384 PF: > { %s13_s16 = sadd.s32 1, %s961_s16   ;;  %s1122_s12 = smov %s949_s13 }
 0x385   : > { %p10_p10 = scmp.ge.s32.totalorder %s13_s16, 4   ;;  %s1123_s13 = smov %s1024_s21 }
 0x386   : > { %s1124_s14 = smov %s957_s15  ;;  %s1125_s15 = smov %s1127_s17 }
 0x387   :  { %12 = sbr.rel (!%p10_p10) target bundleno = 3 (0x3), region = 206 }

// kernel: _lambda_.32
= control target key start
LH: loop header
LB: loop body
LE: loop exit
PB: predicated region body
PF: predicated region fallthrough
CT: control target
= control target key end

     0   :  { %s324_s1 = inlined_call_operand.vmem [shape: bf16[128,128], index: 1, kind: input, shape index: {}]   ;;  %s325_s2 = inlined_call_operand.vmem [shape: f32[1,128], index: 2, kind: input, shape index: {}]   ;;  %s326_s0 = inlined_call_operand.vmem [shape: bf16[40,128], index: 0, kind: input, shape index: {}]   ;;  %s327_s3 = inlined_call_operand.vmem [shape: bf16[40,128], index: 3, kind: input, shape index: {}]   ;;  %s328_s4 = inlined_call_operand.vmem [shape: bf16[40,128], index: 4, kind: output, shape index: {}]  }
   0x1   :  { %v207_v0 = vld [vmem:[%s324_s1 + $0x38] sm:$0xff]  ;;  %v206_v1 = vld [vmem:[%s324_s1 + $0x30] sm:$0xff]  ;;  %v205_v2 = vld [vmem:[%s324_s1 + $0x28] sm:$0xff] }
   0x2   :  { %106 = vmatpush.bf16.msra.mxu0 %v207_v0  ;;  %228 = vmatpush.bf16.msra.mxu1 %v207_v0  ;;  %v204_v3 = vld [vmem:[%s324_s1 + $0x20] sm:$0xff]  ;;  %v203_v4 = vld [vmem:[%s324_s1 + $0x18] sm:$0xff]  ;;  %v202_v5 = vld [vmem:[%s324_s1 + $0x10] sm:$0xff] }
   0x3   :  { %229 = vmatpush.bf16.msra.mxu2 %v207_v0  ;;  %v201_v6 = vld [vmem:[%s324_s1 + $0x8] sm:$0xff]  ;;  %v21_v7 = vld [vmem:[%s326_s0 + $0x10] sm:$0xf]  ;;  %v200_v8 = vld [vmem:[%s324_s1] sm:$0xff] }
   0x4   :  { %v51_v9 = vunpack.c.l.b16 %v21_v7  ;;  %v198_v10 = vld [vmem:[%s326_s0] sm:$0xff]  ;;  %v199_v11 = vld [vmem:[%s326_s0 + $0x8] sm:$0xff]  ;;  %v133_v18 = vld [vmem:[%s327_s3 + $0x10] sm:$0xf] }
   0x5   :  { %v244_v15 = vld [vmem:[%s325_s2] ss:$0 sm:$0xff]  ;;  %v226_v17 = vld [vmem:[%s327_s3 + $0x8] sm:$0xff]   ;;  %v138_v21 = vunpack.c.l.bf16 %v133_v18 }
   0x6   :  { %107 = vmatpush.bf16.msra.mxu0 %v206_v1  ;;  %230 = vmatpush.bf16.msra.mxu1 %v206_v1  ;;  %v54_v12 = vpack.c.b16 %v51_v9, %v51_v9  ;;  %v209_v16 = vld [vmem:[%s327_s3] sm:$0xff]   ;;  %v214_v20 = vunpack.c.l.bf16 %v226_v17  ;;  %v215_v26 = vunpack.c.h.bf16 %v226_v17 }
   0x7   :  { %231 = vmatpush.bf16.msra.mxu2 %v206_v1  ;;  %v210_v19 = vunpack.c.l.bf16 %v209_v16  ;;  %v211_v25 = vunpack.c.h.bf16 %v209_v16 }
   0xa   :  { %108 = vmatpush.bf16.msra.mxu0 %v205_v2  ;;  %232 = vmatpush.bf16.msra.mxu1 %v205_v2 }
   0xb   :  { %233 = vmatpush.bf16.msra.mxu2 %v205_v2 }
   0xe   :  { %109 = vmatpush.bf16.msra.mxu0 %v204_v3  ;;  %234 = vmatpush.bf16.msra.mxu1 %v204_v3 }
   0xf   :  { %235 = vmatpush.bf16.msra.mxu2 %v204_v3 }
  0x12   :  { %110 = vmatpush.bf16.msra.mxu0 %v203_v4  ;;  %236 = vmatpush.bf16.msra.mxu1 %v203_v4 }
  0x13   :  { %237 = vmatpush.bf16.msra.mxu2 %v203_v4 }
  0x16   :  { %111 = vmatpush.bf16.msra.mxu0 %v202_v5  ;;  %238 = vmatpush.bf16.msra.mxu1 %v202_v5 }
  0x17   :  { %239 = vmatpush.bf16.msra.mxu2 %v202_v5 }
  0x1a   :  { %112 = vmatpush.bf16.msra.mxu0 %v201_v6  ;;  %240 = vmatpush.bf16.msra.mxu1 %v201_v6 }
  0x1b   :  { %241 = vmatpush.bf16.msra.mxu2 %v201_v6 }
  0x1e   :  { %113 = vmatpush.bf16.msra.mxu0 %v200_v8  ;;  %242 = vmatpush.bf16.msra.mxu1 %v200_v8 }
  0x1f   :  { %243 = vmatpush.bf16.msra.mxu2 %v200_v8 }
  0x21   :  { %114 = vmatmul.bf16.vlgmr.msra.gmra.mxu0 %v198_v10  ;;  %119 = vmatmul.bf16.vlgmr.msra.gmra.mxu1 %v199_v11 }
  0x22   :  { %124 = vmatmul.bf16.vlgmr.msra.gmra.mxu2 %v54_v12 }
  0x9e   :  { %v115_v13 = vpop.f32.mrf.mxu0  ;;  %v120_v14 = vpop.f32.mrf.mxu1 }
  0x9f   :  { %v116_v22 = vadd.f32 %v244_v15, %v115_v13  ;;  %v121_v23 = vadd.f32 %v244_v15, %v120_v14 }
  0xa1   :  { %v139_v33 = vadd.f32 %v210_v19, %v116_v22  ;;  %v141_v34 = vadd.f32 %v214_v20, %v121_v23 }
  0xa5   :  { %v125_v24 = vpop.f32.mrf.mxu2 }
  0xa6   :  { %v126_v27 = vadd.f32 %v244_v15, %v125_v24  ;;  %v117_v28 = vpop.f32.mrf.mxu0  ;;  %v122_v29 = vpop.f32.mrf.mxu1 }
  0xa7   :  { %v118_v30 = vadd.f32 %v244_v15, %v117_v28  ;;  %v123_v31 = vadd.f32 %v244_v15, %v122_v29 }
  0xa8   :  { %v143_v32 = vadd.f32 %v138_v21, %v126_v27 }
  0xa9   :  { %v140_v35 = vadd.f32 %v211_v25, %v118_v30  ;;  %v142_v36 = vadd.f32 %v215_v26, %v123_v31 }
  0xaa   :  { %v148_v37 = vpack.c.bf16 %v143_v32, %v143_v32 }
  0xab   :  { %v219_v38 = vpack.c.bf16 %v140_v35, %v139_v33  ;;  %v224_v39 = vpack.c.bf16 %v142_v36, %v141_v34 }
  0xac   :  { %153 = vst [vmem:[%s328_s4 + $0x10] sm:$0xf] %v148_v37 }
  0xad   :  { %220 = vst [vmem:[%s328_s4] sm:$0xff] %v219_v38   ;;  %v127_v40 = vpop.f32.mrf.mxu2 }
  0xae   :  { %227 = vst [vmem:[%s328_s4 + $0x8] sm:$0xff] %v224_v39  }

// kernel: _lambda_.33
= control target key start
LH: loop header
LB: loop body
LE: loop exit
PB: predicated region body
PF: predicated region fallthrough
CT: control target
= control target key end

     0   :  { %v933_v8 = vmov 128.0   ;;  %s1388_s0 = inlined_call_operand.vmem [shape: bf16[40,128], index: 0, kind: input, shape index: {}]   ;;  %s1389_s1 = inlined_call_operand.vmem [shape: f32[1,128], index: 1, kind: input, shape index: {}]   ;;  %s1390_s2 = inlined_call_operand.vmem [shape: f32[1,128], index: 2, kind: input, shape index: {}]   ;;  %s1391_s3 = inlined_call_operand.vmem [shape: bf16[128,512], index: 3, kind: input, shape index: {}]   ;;  %s1392_s4 = inlined_call_operand.vmem [shape: f32[1,512], index: 4, kind: input, shape index: {}]   ;;  %s1393_s5 = inlined_call_operand.vmem [shape: bf16[40,512], index: 5, kind: output, shape index: {}]  }
   0x1   :  { %v876_v0 = vld [vmem:[%s1388_s0 + $0x8] sm:$0xff]   ;;  %v859_v1 = vld [vmem:[%s1388_s0] sm:$0xff]   ;;  %v28_v2 = vld [vmem:[%s1388_s0 + $0x10] sm:$0xf]  ;;  %881 = vrcp.f32 %v933_v8 }
   0x2   :  { %v864_v3 = vunpack.c.l.bf16 %v876_v0  ;;  %v860_v4 = vunpack.c.l.bf16 %v859_v1  ;;  %v33_v5 = vunpack.c.l.bf16 %v28_v2  ;;  %v865_v6 = vunpack.c.h.bf16 %v876_v0  ;;  %v810_v35 = vld [vmem:[%s1391_s3 + $0xe0] sm:$0xf]  ;;  %v856_v36 = vld [vmem:[%s1391_s3 + $0xec] sm:$0xf0]  ;;  %v854_v37 = vld [vmem:[%s1391_s3 + $0xe4] sm:$0xf] }
   0x3   :  { %v861_v7 = vunpack.c.h.bf16 %v859_v1  ;;  %v811_v38 = vor.u32 %v856_v36, %v810_v35  ;;  %v812_v39 = vld [vmem:[%s1391_s3 + $0xf0] sm:$0xf0]  ;;  %v818_v40 = vld [vmem:[%s1391_s3 + $0xe8] sm:$0xf]  ;;  %v857_v41 = vld [vmem:[%s1391_s3 + $0xf4] sm:$0xf0] }
   0x4   :  { %38 = vadd.xlane.f32.xlu1 %v864_v3  ;;  %34 = vadd.xlane.f32.xlu0 %v860_v4  ;;  %v815_v42 = vor.u32 %v854_v37, %v812_v39  ;;  %v819_v43 = vor.u32 %v857_v41, %v818_v40  ;;  %v855_v44 = vld [vmem:[%s1391_s3 + $0xec] sm:$0xf]  ;;  %v820_v45 = vld [vmem:[%s1391_s3 + $0xf8] sm:$0xf0]  ;;  %v794_v47 = vld [vmem:[%s1391_s3 + $0xc0] sm:$0xf] }
   0x5   :  { %42 = vadd.xlane.f32.xlu2 %v33_v5  ;;  %392 = vmatpush.bf16.msra.mxu0 %v811_v38  ;;  %v823_v46 = vor.u32 %v855_v44, %v820_v45  ;;  %v852_v48 = vld [vmem:[%s1391_s3 + $0xcc] sm:$0xf0]  ;;  %v850_v49 = vld [vmem:[%s1391_s3 + $0xc4] sm:$0xf]  ;;  %v796_v51 = vld [vmem:[%s1391_s3 + $0xd0] sm:$0xf0] }
   0x6   :  { %415 = vmatpush.bf16.msra.mxu1 %v815_v42  ;;  %438 = vmatpush.bf16.msra.mxu2 %v819_v43  ;;  %v795_v50 = vor.u32 %v852_v48, %v794_v47  ;;  %v802_v52 = vld [vmem:[%s1391_s3 + $0xc8] sm:$0xf]  ;;  %v853_v53 = vld [vmem:[%s1391_s3 + $0xd4] sm:$0xf0]  ;;  %v799_v54 = vor.u32 %v850_v49, %v796_v51  ;;  %v851_v56 = vld [vmem:[%s1391_s3 + $0xcc] sm:$0xf] }
   0x7   :  { %v882_v9 = vpop.eup %881  ;;  %461 = vmatpush.bf16.msra.mxu3 %v823_v46  ;;  %v803_v55 = vor.u32 %v853_v53, %v802_v52  ;;  %v804_v57 = vld [vmem:[%s1391_s3 + $0xd8] sm:$0xf0]  ;;  %v778_v59 = vld [vmem:[%s1391_s3 + $0xa0] sm:$0xf]  ;;  %v848_v60 = vld [vmem:[%s1391_s3 + $0xac] sm:$0xf0] }
   0x8   :  { %v45_v10 = vmul.f32 128.0, %v882_v9  ;;  %vm49_vm0 = vweird.f32 %v882_v9  ;;  %v807_v58 = vor.u32 %v851_v56, %v804_v57  ;;  %v846_v61 = vld [vmem:[%s1391_s3 + $0xa4] sm:$0xf]  ;;  %v779_v62 = vor.u32 %v848_v60, %v778_v59  ;;  %v780_v63 = vld [vmem:[%s1391_s3 + $0xb0] sm:$0xf0] }
   0x9   :  { %393 = vmatpush.bf16.msra.mxu0 %v795_v50  ;;  %v786_v0 = vld [vmem:[%s1391_s3 + $0xa8] sm:$0xf]  ;;  %v849_v1 = vld [vmem:[%s1391_s3 + $0xb4] sm:$0xf0]  ;;  %v783_v2 = vor.u32 %v846_v61, %v780_v63  ;;  %v844_v8 = vld [vmem:[%s1391_s3 + $0x8c] sm:$0xf0] }
   0xa   :  { %v46_v11 = vsub.f32 1.0, %v45_v10  ;;  %416 = vmatpush.bf16.msra.mxu1 %v799_v54  ;;  %439 = vmatpush.bf16.msra.mxu2 %v803_v55  ;;  %v839_v38 = vld [vmem:[%s1391_s3 + $0x6c] sm:$0xf]  ;;  %v756_v39 = vld [vmem:[%s1391_s3 + $0x78] sm:$0xf0] }
   0xb   :  { %462 = vmatpush.bf16.msra.mxu3 %v807_v58  ;;  %v759_v40 = vor.u32 %v839_v38, %v756_v39  ;;  %v730_v43 = vld [vmem:[%s1391_s3 + $0x40] sm:$0xf]  ;;  %v836_v44 = vld [vmem:[%s1391_s3 + $0x4c] sm:$0xf0]  ;;  %v834_v45 = vld [vmem:[%s1391_s3 + $0x44] sm:$0xf] }
   0xc   :  { %40 = vadd.xlane.f32.xlu1 %v865_v6  ;;  %36 = vadd.xlane.f32.xlu0 %v861_v7  ;;  %v47_v12 = vmul.f32 %v882_v9, %v46_v11  ;;  %v764_v11 = vld [vmem:[%s1391_s3 + $0x90] sm:$0xf0]  ;;  %v731_v47 = vor.u32 %v836_v44, %v730_v43  ;;  %v738_v48 = vld [vmem:[%s1391_s3 + $0x48] sm:$0xf]  ;;  %v837_v49 = vld [vmem:[%s1391_s3 + $0x54] sm:$0xf0] }
   0xd   :  { %394 = vmatpush.bf16.msra.mxu0 %v779_v62  ;;  %v732_v46 = vld [vmem:[%s1391_s3 + $0x50] sm:$0xf0]  ;;  %v835_v50 = vld [vmem:[%s1391_s3 + $0x4c] sm:$0xf]  ;;  %v739_v52 = vor.u32 %v837_v49, %v738_v48  ;;  %v740_v53 = vld [vmem:[%s1391_s3 + $0x58] sm:$0xf0] }
   0xe   :  { %v48_v13 = vadd.f32 %v882_v9, %v47_v12  ;;  %417 = vmatpush.bf16.msra.mxu1 %v783_v2  ;;  %v770_v12 = vld [vmem:[%s1391_s3 + $0x88] sm:$0xf]  ;;  %v735_v51 = vor.u32 %v834_v45, %v732_v46  ;;  %v743_v54 = vor.u32 %v835_v50, %v740_v53  ;;  %v714_v55 = vld [vmem:[%s1391_s3 + $0x20] sm:$0xf]  ;;  %v832_v56 = vld [vmem:[%s1391_s3 + $0x2c] sm:$0xf0] }
   0xf   :  { %v830_v57 = vld [vmem:[%s1391_s3 + $0x24] sm:$0xf]  ;;  %v715_v60 = vor.u32 %v832_v56, %v714_v55  ;;  %v716_v61 = vld [vmem:[%s1391_s3 + $0x30] sm:$0xf0]  ;;  %v722_v62 = vld [vmem:[%s1391_s3 + $0x28] sm:$0xf] }
  0x10   :  { %v973_v14 = vsel %vm49_vm0, %v882_v9, %v48_v13  ;;  %v842_v9 = vld [vmem:[%s1391_s3 + $0x84] sm:$0xf]  ;;  %v845_v13 = vld [vmem:[%s1391_s3 + $0x94] sm:$0xf0]  ;;  %v719_v2 = vor.u32 %v830_v57, %v716_v61  ;;  %v879_v55 = vld [vmem:[%s1389_s1] ss:$0 sm:$0xff] }
  0x11   :  { %v833_v63 = vld [vmem:[%s1391_s3 + $0x34] sm:$0xf0] }
  0x77   :  { %v39_v15 = vpop.xlane.xlu1 %38  ;;  %v35_v16 = vpop.xlane.xlu0 %34 }
  0x78   :  { %v53_v17 = vmul.f32 %v973_v14, %v39_v15  ;;  %v51_v18 = vmul.f32 %v973_v14, %v35_v16  ;;  %v43_v23 = vpop.xlane.xlu2 %42  ;;  %v767_v15 = vor.u32 %v842_v9, %v764_v11  ;;  %v771_v16 = vor.u32 %v845_v13, %v770_v12  ;;  %v828_v13 = vld [vmem:[%s1391_s3 + $0xc] sm:$0xf0] }
  0x79   :  { %v55_v30 = vmul.f32 %v973_v14, %v43_v23  ;;  %v840_v23 = vld [vmem:[%s1391_s3 + $0x6c] sm:$0xf0] }
  0x7a   :  { %v977_v19 = vsub.f32 %v864_v3, %v53_v17  ;;  %v979_v20 = vsub.f32 %v860_v4, %v51_v18  ;;  %v787_v3 = vor.u32 %v849_v1, %v786_v0  ;;  %v847_v4 = vld [vmem:[%s1391_s3 + $0xac] sm:$0xf]  ;;  %v772_v18 = vld [vmem:[%s1391_s3 + $0x98] sm:$0xf0]  ;;  %418 = vmatpush.bf16.msra.mxu1 %v767_v15  ;;  %v826_v15 = vld [vmem:[%s1391_s3 + $0x4] sm:$0xf] }
  0x7b   :  { %v996_v33 = vsub.f32 %v33_v5, %v55_v30  ;;  %v788_v5 = vld [vmem:[%s1391_s3 + $0xb8] sm:$0xf0]  ;;  %v843_v17 = vld [vmem:[%s1391_s3 + $0x8c] sm:$0xf]  ;;  %v748_v30 = vld [vmem:[%s1391_s3 + $0x70] sm:$0xf0] }
  0x7c   :  { %v63_v21 = vmul.f32 %v977_v19, %v977_v19  ;;  %v61_v22 = vmul.f32 %v979_v20, %v979_v20  ;;  %440 = vmatpush.bf16.msra.mxu2 %v787_v3  ;;  %v723_v3 = vor.u32 %v833_v63, %v722_v62  ;;  %v880_v63 = vld [vmem:[%s1390_s2] ss:$0 sm:$0xff] }
  0x7d   :  { %v65_v34 = vmul.f32 %v996_v33, %v996_v33 }
  0x7e   :  { %70 = vadd.xlane.f32.xlu1 %v63_v21  ;;  %66 = vadd.xlane.f32.xlu2 %v61_v22  ;;  %v775_v21 = vor.u32 %v843_v17, %v772_v18  ;;  %v746_v22 = vld [vmem:[%s1391_s3 + $0x60] sm:$0xf]  ;;  %v706_v18 = vld [vmem:[%s1391_s3 + $0x8] sm:$0xf] }
  0x7f   :  { %v41_v24 = vpop.xlane.xlu1 %40  ;;  %v37_v25 = vpop.xlane.xlu0 %36 }
  0x80   :  { %v54_v26 = vmul.f32 %v973_v14, %v41_v24  ;;  %v52_v27 = vmul.f32 %v973_v14, %v37_v25  ;;  %441 = vmatpush.bf16.msra.mxu2 %v771_v16  ;;  %v838_v24 = vld [vmem:[%s1391_s3 + $0x64] sm:$0xf]  ;;  %v700_v16 = vld [vmem:[%s1391_s3 + $0x10] sm:$0xf0] }
  0x81   :  { %v751_v36 = vor.u32 %v838_v24, %v748_v30  ;;  %v827_v24 = vld [vmem:[%s1391_s3 + $0xc] sm:$0xf] }
  0x82   :  { %v987_v28 = vsub.f32 %v865_v6, %v54_v26  ;;  %v989_v29 = vsub.f32 %v861_v7, %v52_v27  ;;  %v791_v6 = vor.u32 %v847_v4, %v788_v5  ;;  %v762_v7 = vld [vmem:[%s1391_s3 + $0x80] sm:$0xf]  ;;  %v747_v27 = vor.u32 %v840_v23, %v746_v22  ;;  %v831_v4 = vld [vmem:[%s1391_s3 + $0x2c] sm:$0xf]  ;;  %v724_v5 = vld [vmem:[%s1391_s3 + $0x38] sm:$0xf0] }
  0x83   :  { %v763_v10 = vor.u32 %v844_v8, %v762_v7  ;;  %419 = vmatpush.bf16.msra.mxu1 %v751_v36 }
  0x84   :  { %v64_v31 = vmul.f32 %v987_v28, %v987_v28  ;;  %v62_v32 = vmul.f32 %v989_v29, %v989_v29  ;;  %463 = vmatpush.bf16.msra.mxu3 %v791_v6  ;;  %v727_v6 = vor.u32 %v831_v4, %v724_v5 }
  0x85   :  { %395 = vmatpush.bf16.msra.mxu0 %v763_v10  ;;  %v698_v10 = vld [vmem:[%s1391_s3] sm:$0xf] }
  0x86   :  { %72 = vadd.xlane.f32.xlu2 %v64_v31  ;;  %68 = vadd.xlane.f32.xlu0 %v62_v32  ;;  %v754_v31 = vld [vmem:[%s1391_s3 + $0x68] sm:$0xf]  ;;  %v841_v32 = vld [vmem:[%s1391_s3 + $0x74] sm:$0xf0]  ;;  %v699_v23 = vor.u32 %v828_v13, %v698_v10 }
  0x87   :  { %v755_v37 = vor.u32 %v841_v32, %v754_v31  ;;  %420 = vmatpush.bf16.msra.mxu1 %v735_v51 }
  0x88   :  { %464 = vmatpush.bf16.msra.mxu3 %v775_v21  ;;  %v829_v21 = vld [vmem:[%s1391_s3 + $0x14] sm:$0xf0] }
  0x89   :  { %396 = vmatpush.bf16.msra.mxu0 %v747_v27  ;;  %442 = vmatpush.bf16.msra.mxu2 %v755_v37  ;;  %v703_v27 = vor.u32 %v826_v15, %v700_v16  ;;  %v707_v30 = vor.u32 %v829_v21, %v706_v18 }
  0x8b   :  { %421 = vmatpush.bf16.msra.mxu1 %v719_v2 }
  0x8c   :  { %465 = vmatpush.bf16.msra.mxu3 %v759_v40 }
  0x8d   :  { %397 = vmatpush.bf16.msra.mxu0 %v731_v47  ;;  %443 = vmatpush.bf16.msra.mxu2 %v739_v52 }
  0x8e   :  { %74 = vadd.xlane.f32.xlu0 %v65_v34 }
  0x8f   :  { %422 = vmatpush.bf16.msra.mxu1 %v703_v27 }
  0x90   :  { %466 = vmatpush.bf16.msra.mxu3 %v743_v54 }
  0x91   :  { %398 = vmatpush.bf16.msra.mxu0 %v715_v60  ;;  %444 = vmatpush.bf16.msra.mxu2 %v723_v3 }
  0x94   :  { %467 = vmatpush.bf16.msra.mxu3 %v727_v6 }
  0x95   :  { %399 = vmatpush.bf16.msra.mxu0 %v699_v23  ;;  %445 = vmatpush.bf16.msra.mxu2 %v707_v30 }
  0xf1   :  { %v71_v25 = vpop.xlane.xlu1 %70  ;;  %v67_v26 = vpop.xlane.xlu2 %66 }
  0xf2   :  { %v78_v34 = vmul.f32 %v71_v25, %v973_v14  ;;  %v76_v35 = vmul.f32 %v67_v26, %v973_v14  ;;  %v708_v25 = vld [vmem:[%s1391_s3 + $0x18] sm:$0xf0] }
  0xf3   :  { %v711_v31 = vor.u32 %v827_v24, %v708_v25 }
  0xf4   :  { %v1122_v41 = vadd.f32 1e-05, %v78_v34  ;;  %v1124_v42 = vadd.f32 1e-05, %v76_v35 }
  0xf5   :  { %468 = vmatpush.bf16.msra.mxu3 %v711_v31 }
  0xf6   :  { %883 = vrsqrt.f32 %v1122_v41  ;;  %vm112_vm1 = vweird.f32 %v1122_v41  ;;  %vm92_vm5 = vweird.f32 %v1124_v42 }
  0xf7   :  { %885 = vrsqrt.f32 %v1124_v42 }
  0xf9   :  { %v73_v58 = vpop.xlane.xlu2 %72  ;;  %v69_v59 = vpop.xlane.xlu0 %68 }
  0xfa   :  { %v79_v0 = vmul.f32 %v73_v58, %v973_v14  ;;  %v77_v1 = vmul.f32 %v69_v59, %v973_v14 }
  0xfc   :  { %v884_v7 = vpop.eup %883  ;;  %v84_v8 = vadd.f32 1e-05, %v79_v0  ;;  %v1178_v9 = vadd.f32 1e-05, %v77_v1 }
  0xfd   :  { %v886_v11 = vpop.eup %885  ;;  %v107_v12 = vmul.f32 %v884_v7, %v1122_v41  ;;  %vm113_vm2 = vweird.f32 %v884_v7 }
  0xfe   :  { %v87_v17 = vmul.f32 %v886_v11, %v1124_v42  ;;  %887 = vrsqrt.f32 %v84_v8  ;;  %vm1209_vm3 = vmor %vm112_vm1, %vm113_vm2  ;;  %vm93_vm4 = vweird.f32 %v886_v11  ;;  %vm122_vm7 = vweird.f32 %v84_v8 }
  0xff   :  { %v108_v22 = vmul.f32 %v884_v7, %v107_v12  ;;  %889 = vrsqrt.f32 %v1178_v9  ;;  %vm94_vm6 = vmor %vm92_vm5, %vm93_vm4  ;;  %vm102_vm11 = vweird.f32 %v1178_v9 }
 0x100   :  { %v88_v26 = vmul.f32 %v886_v11, %v87_v17 }
 0x101   :  { %v109_v32 = vmul.f32 0.5, %v108_v22  ;;  %v75_v34 = vpop.xlane.xlu0 %74 }
 0x102   :  { %v89_v35 = vmul.f32 0.5, %v88_v26  ;;  %v80_v36 = vmul.f32 %v75_v34, %v973_v14 }
 0x103   :  { %v110_v37 = vsub.f32 1.5, %v109_v32 }
 0x104   :  { %v888_v38 = vpop.eup %887  ;;  %v90_v39 = vsub.f32 1.5, %v89_v35  ;;  %v85_v40 = vadd.f32 1e-05, %v80_v36 }
 0x105   :  { %v890_v43 = vpop.eup %889  ;;  %v111_v44 = vmul.f32 %v884_v7, %v110_v37  ;;  %v117_v45 = vmul.f32 %v888_v38, %v84_v8  ;;  %vm123_vm8 = vweird.f32 %v888_v38 }
 0x106   :  { %v91_v47 = vmul.f32 %v886_v11, %v90_v39  ;;  %v97_v14 = vmul.f32 %v890_v43, %v1178_v9  ;;  %891 = vrsqrt.f32 %v85_v40  ;;  %vm124_vm9 = vmor %vm122_vm7, %vm123_vm8  ;;  %vm103_vm10 = vweird.f32 %v890_v43 }
 0x107   :  { %v118_v48 = vmul.f32 %v888_v38, %v117_v45  ;;  %v115_v49 = vsel %vm1209_vm3, %v884_v7, %v111_v44  ;;  %vm104_vm12 = vmor %vm102_vm11, %vm103_vm10  ;;  %vm132_vm13 = vweird.f32 %v85_v40 }
 0x108   :  { %v98_v41 = vmul.f32 %v890_v43, %v97_v14  ;;  %v95_v51 = vsel %vm94_vm6, %v886_v11, %v91_v47  ;;  %v138_v56 = vmul.f32 %v115_v49, %v977_v19 }
 0x109   :  { %v119_v50 = vmul.f32 0.5, %v118_v48  ;;  %v136_v57 = vmul.f32 %v95_v51, %v979_v20 }
 0x10a   :  { %v99_v52 = vmul.f32 0.5, %v98_v41  ;;  %v147_v0 = vmul.f32 %v879_v55, %v138_v56 }
 0x10b   :  { %v120_v53 = vsub.f32 1.5, %v119_v50  ;;  %v145_v2 = vmul.f32 %v879_v55, %v136_v57 }
 0x10c   :  { %v892_v54 = vpop.eup %891  ;;  %v100_v42 = vsub.f32 1.5, %v99_v52  ;;  %v156_v7 = vadd.f32 %v880_v63, %v147_v0 }
 0x10d   :  { %v121_v58 = vmul.f32 %v888_v38, %v120_v53  ;;  %v127_v59 = vmul.f32 %v892_v54, %v85_v40  ;;  %vm133_vm14 = vweird.f32 %v892_v54  ;;  %v154_v9 = vadd.f32 %v880_v63, %v145_v2 }
 0x10e   :  { %v101_v60 = vmul.f32 %v890_v43, %v100_v42  ;;  %vm134_vm15 = vmor %vm132_vm13, %vm133_vm14 }
 0x10f   :  { %v125_v61 = vsel %vm124_vm9, %v888_v38, %v121_v58  ;;  %v128_v62 = vmul.f32 %v892_v54, %v127_v59 }
 0x110   :  { %v139_v19 = vmul.f32 %v125_v61, %v987_v28  ;;  %v105_v1 = vsel %vm104_vm12, %v890_v43, %v101_v60 }
 0x111   :  { %v137_v20 = vmul.f32 %v105_v1, %v989_v29  ;;  %v129_v3 = vmul.f32 0.5, %v128_v62 }
 0x112   :  { %v148_v4 = vmul.f32 %v879_v55, %v139_v19 }
 0x113   :  { %v146_v5 = vmul.f32 %v879_v55, %v137_v20  ;;  %v130_v6 = vsub.f32 1.5, %v129_v3 }
 0x114   :  { %v157_v8 = vadd.f32 %v880_v63, %v148_v4 }
 0x115   :  { %v155_v10 = vadd.f32 %v880_v63, %v146_v5  ;;  %v131_v11 = vmul.f32 %v892_v54, %v130_v6 }
 0x116   :  { %v874_v12 = vpack.c.bf16 %v157_v8, %v156_v7 }
 0x117   :  { %v869_v13 = vpack.c.bf16 %v155_v10, %v154_v9  ;;  %v135_v15 = vsel %vm134_vm15, %v892_v54, %v131_v11 }
 0x118   :  { %877 = vst [vmem:[#allocation2 + $0x8] sm:$0xff] %v874_v12   ;;  %v140_v28 = vmul.f32 %v135_v15, %v996_v33  ;;  %v206_v33 = vld [vmem:[%s1392_s4] sm:$0xf] }
 0x119   :  { %870 = vst [vmem:[#allocation2] sm:$0xff] %v869_v13   ;;  %v1232_v25 = vperm.slane %v206_v33, 0  ;;  %v1234_v26 = vperm.slane %v206_v33, 1  ;;  %v1238_v36 = vperm.slane %v206_v33, 2  ;;  %v1240_v37 = vperm.slane %v206_v33, 3 }
 0x11a   :  { %v149_v16 = vmul.f32 %v879_v55, %v140_v28 }
 0x11c   :  { %v158_v29 = vadd.f32 %v880_v63, %v149_v16 }
 0x11e   :  { %v163_v17 = vpack.c.bf16 %v158_v29, %v158_v29 }
 0x11f   :  { %v825_v21 = vld [vmem:[#allocation2 + $0x8] sm:$0xff] }
 0x120   :  { %168 = vst [vmem:[#allocation2 + $0x10] sm:$0xf] %v163_v17  ;;  %v824_v18 = vld [vmem:[#allocation2] sm:$0xff] }
 0x121   :  { %400 = vmatmul.bf16.vlgmr.msra.gmra.mxu0 %v824_v18  ;;  %423 = vmatmul.bf16.vlgmr.msra.gmra.mxu1 %v824_v18 }
 0x122   :  { %446 = vmatmul.bf16.vlgmr.msra.gmra.mxu2 %v824_v18  ;;  %469 = vmatmul.bf16.vlgmr.msra.gmra.mxu3 %v824_v18 }
 0x127   :  { %v173_v22 = vld [vmem:[#allocation2 + $0x10] sm:$0xf] }
 0x128   :  { %v225_v23 = vunpack.c.l.b16 %v173_v22 }
 0x12a   :  { %v228_v24 = vpack.c.b16 %v225_v23, %v225_v23 }
 0x131   :  { %405 = vmatmul.bf16.gmra.mxu0 %v825_v21  ;;  %428 = vmatmul.bf16.gmra.mxu1 %v825_v21 }
 0x132   :  { %451 = vmatmul.bf16.gmra.mxu2 %v825_v21  ;;  %474 = vmatmul.bf16.gmra.mxu3 %v825_v21 }
 0x141   :  { %410 = vmatmul.bf16.gmra.mxu0 %v228_v24  ;;  %433 = vmatmul.bf16.gmra.mxu1 %v228_v24 }
 0x142   :  { %456 = vmatmul.bf16.gmra.mxu2 %v228_v24  ;;  %479 = vmatmul.bf16.gmra.mxu3 %v228_v24 }
 0x19e   :  { %v401_v27 = vpop.f32.mrf.mxu0  ;;  %v424_v30 = vpop.f32.mrf.mxu1 }
 0x19f   :  { %v402_v31 = vadd.f32 %v401_v27, %v1232_v25  ;;  %v425_v32 = vadd.f32 %v424_v30, %v1234_v26 }
 0x1a1   :  { %v504_v34 = vmul.f32 %v402_v31, %v402_v31  ;;  %v505_v35 = vmul.f32 %v425_v32, %v425_v32  ;;  %v484_v6 = vmul.f32 0.5, %v402_v31  ;;  %v485_v7 = vmul.f32 0.5, %v425_v32 }
 0x1a3   :  { %v524_v38 = vmul.f32 %v504_v34, %v402_v31  ;;  %v525_v39 = vmul.f32 %v505_v35, %v425_v32 }
 0x1a5   :  { %v544_v40 = vmul.f32 0.044715, %v524_v38  ;;  %v545_v43 = vmul.f32 0.044715, %v525_v39  ;;  %v447_v44 = vpop.f32.mrf.mxu2  ;;  %v470_v45 = vpop.f32.mrf.mxu3 }
 0x1a6   :  { %v448_v46 = vadd.f32 %v447_v44, %v1238_v36  ;;  %v471_v47 = vadd.f32 %v470_v45, %v1240_v37  ;;  %v403_v14 = vpop.f32.mrf.mxu0  ;;  %v426_v48 = vpop.f32.mrf.mxu1 }
 0x1a7   :  { %v564_v41 = vadd.f32 %v544_v40, %v402_v31  ;;  %v565_v49 = vadd.f32 %v545_v43, %v425_v32  ;;  %v404_v50 = vadd.f32 %v403_v14, %v1232_v25  ;;  %v1246_v51 = vadd.f32 %v426_v48, %v1234_v26 }
 0x1a8   :  { %v506_v52 = vmul.f32 %v448_v46, %v448_v46  ;;  %v507_v53 = vmul.f32 %v471_v47, %v471_v47  ;;  %v486_v28 = vmul.f32 0.5, %v448_v46  ;;  %v487_v31 = vmul.f32 0.5, %v471_v47 }
 0x1a9   :  { %v584_v54 = vmul.f32 0.7978846, %v564_v41  ;;  %v585_v55 = vmul.f32 0.7978846, %v565_v49  ;;  %v508_v56 = vmul.f32 %v404_v50, %v404_v50  ;;  %v509_v58 = vmul.f32 %v1246_v51, %v1246_v51 }
 0x1aa   :  { %v526_v42 = vmul.f32 %v506_v52, %v448_v46  ;;  %v527_v57 = vmul.f32 %v507_v53, %v471_v47  ;;  %v488_v43 = vmul.f32 0.5, %v404_v50 }
 0x1ab   :  { %893 = vtanh.f32 %v584_v54  ;;  %v528_v59 = vmul.f32 %v508_v56, %v404_v50  ;;  %v529_v62 = vmul.f32 %v509_v58, %v1246_v51 }
 0x1ac   :  { %895 = vtanh.f32 %v585_v55  ;;  %v546_v60 = vmul.f32 0.044715, %v526_v42  ;;  %v547_v61 = vmul.f32 0.044715, %v527_v57 }
 0x1ad   :  { %v548_v63 = vmul.f32 0.044715, %v528_v59  ;;  %v449_v0 = vpop.f32.mrf.mxu2  ;;  %v472_v19 = vpop.f32.mrf.mxu3  ;;  %v549_v20 = vmul.f32 0.044715, %v529_v62 }
 0x1ae   :  { %v566_v1 = vadd.f32 %v546_v60, %v448_v46  ;;  %v567_v2 = vadd.f32 %v547_v61, %v471_v47  ;;  %v1252_v3 = vadd.f32 %v449_v0, %v1238_v36  ;;  %v406_v4 = vpop.f32.mrf.mxu0  ;;  %v429_v5 = vpop.f32.mrf.mxu1  ;;  %v1255_v9 = vadd.f32 %v472_v19, %v1240_v37 }
 0x1af   :  { %v568_v8 = vadd.f32 %v548_v63, %v404_v50  ;;  %v569_v12 = vadd.f32 %v549_v20, %v1246_v51  ;;  %v1259_v13 = vadd.f32 %v406_v4, %v1232_v25  ;;  %v1266_v23 = vadd.f32 %v429_v5, %v1234_v26 }
 0x1b0   :  { %v586_v10 = vmul.f32 0.7978846, %v566_v1  ;;  %v587_v11 = vmul.f32 0.7978846, %v567_v2  ;;  %v510_v29 = vmul.f32 %v1252_v3, %v1252_v3  ;;  %v511_v17 = vmul.f32 %v1255_v9, %v1255_v9 }
 0x1b1   :  { %v894_v15 = vpop.eup %893  ;;  %v588_v16 = vmul.f32 0.7978846, %v568_v8  ;;  %v589_v22 = vmul.f32 0.7978846, %v569_v12  ;;  %v512_v32 = vmul.f32 %v1259_v13, %v1259_v13  ;;  %v513_v45 = vmul.f32 %v1266_v23, %v1266_v23 }
 0x1b2   :  { %v896_v18 = vpop.eup %895  ;;  %v624_v21 = vadd.f32 1.0, %v894_v15  ;;  %897 = vtanh.f32 %v586_v10  ;;  %v530_v33 = vmul.f32 %v510_v29, %v1252_v3  ;;  %v531_v27 = vmul.f32 %v511_v17, %v1255_v9 }
 0x1b3   :  { %v625_v24 = vadd.f32 1.0, %v896_v18  ;;  %899 = vtanh.f32 %v587_v11  ;;  %v532_v44 = vmul.f32 %v512_v32, %v1259_v13  ;;  %v489_v50 = vmul.f32 0.5, %v1246_v51 }
 0x1b4   :  { %v644_v30 = vmul.f32 %v624_v21, %v484_v6  ;;  %901 = vtanh.f32 %v588_v16  ;;  %v550_v35 = vmul.f32 0.044715, %v530_v33  ;;  %v551_v38 = vmul.f32 0.044715, %v531_v27 }
 0x1b5   :  { %v645_v34 = vmul.f32 %v625_v24, %v485_v7  ;;  %903 = vtanh.f32 %v589_v22  ;;  %v452_v39 = vpop.f32.mrf.mxu2  ;;  %v475_v40 = vpop.f32.mrf.mxu3  ;;  %v552_v54 = vmul.f32 0.044715, %v532_v44  ;;  %v533_v55 = vmul.f32 %v513_v45, %v1266_v23 }
 0x1b6   :  { %v1276_v46 = vadd.f32 %v452_v39, %v1238_v36  ;;  %v408_v47 = vpop.f32.mrf.mxu0  ;;  %v431_v14 = vpop.f32.mrf.mxu1  ;;  %v570_v41 = vadd.f32 %v550_v35, %v1252_v3  ;;  %v571_v49 = vadd.f32 %v551_v38, %v1255_v9  ;;  %v1281_v52 = vadd.f32 %v475_v40, %v1240_v37 }
 0x1b7   :  { %v664_v48 = vpack.c.bf16 %v645_v34, %v644_v30  ;;  %v1291_v60 = vadd.f32 %v408_v47, %v1232_v25  ;;  %v572_v51 = vadd.f32 %v552_v54, %v1259_v13  ;;  %v553_v63 = vmul.f32 0.044715, %v533_v55 }
 0x1b8   :  { %v898_v53 = vpop.eup %897  ;;  %v514_v56 = vmul.f32 %v1276_v46, %v1276_v46  ;;  %v590_v58 = vmul.f32 0.7978846, %v570_v41  ;;  %v591_v59 = vmul.f32 0.7978846, %v571_v49  ;;  %v515_v20 = vmul.f32 %v1281_v52, %v1281_v52 }
 0x1b9   :  { %v900_v42 = vpop.eup %899  ;;  %674 = vst [vmem:[%s1393_s5] sm:$0xff] %v664_v48  ;;  %v626_v57 = vadd.f32 1.0, %v898_v53  ;;  %v592_v6 = vmul.f32 0.7978846, %v572_v51  ;;  %v573_v8 = vadd.f32 %v553_v63, %v1266_v23  ;;  %v516_v33 = vmul.f32 %v1291_v60, %v1291_v60 }
 0x1ba   :  { %v902_v61 = vpop.eup %901  ;;  %v627_v62 = vadd.f32 1.0, %v900_v42  ;;  %v534_v0 = vmul.f32 %v514_v56, %v1276_v46  ;;  %905 = vtanh.f32 %v590_v58  ;;  %v535_v11 = vmul.f32 %v515_v20, %v1281_v52 }
 0x1bb   :  { %v904_v19 = vpop.eup %903  ;;  %v646_v1 = vmul.f32 %v626_v57, %v486_v28  ;;  %v628_v2 = vadd.f32 1.0, %v902_v61  ;;  %907 = vtanh.f32 %v591_v59  ;;  %v490_v28 = vmul.f32 0.5, %v1252_v3 }
 0x1bc   :  { %v647_v4 = vmul.f32 %v627_v62, %v487_v31  ;;  %v629_v5 = vadd.f32 1.0, %v904_v19  ;;  %v554_v10 = vmul.f32 0.044715, %v534_v0  ;;  %909 = vtanh.f32 %v592_v6 }
 0x1bd   :  { %v648_v7 = vmul.f32 %v628_v2, %v488_v43  ;;  %v454_v12 = vpop.f32.mrf.mxu2  ;;  %v477_v15 = vpop.f32.mrf.mxu3  ;;  %v593_v21 = vmul.f32 0.7978846, %v573_v8  ;;  %v555_v24 = vmul.f32 0.044715, %v535_v11  ;;  %v491_v30 = vmul.f32 0.5, %v1255_v9 }
 0x1be   :  { %v665_v16 = vpack.c.bf16 %v647_v4, %v646_v1  ;;  %v649_v29 = vmul.f32 %v629_v5, %v489_v50  ;;  %v411_v17 = vpop.f32.mrf.mxu0  ;;  %v434_v18 = vpop.f32.mrf.mxu1  ;;  %v574_v22 = vadd.f32 %v554_v10, %v1276_v46  ;;  %v1308_v31 = vadd.f32 %v431_v14, %v1234_v26 }
 0x1bf   :  { %v1311_v3 = vadd.f32 %v454_v12, %v1238_v36  ;;  %911 = vtanh.f32 %v593_v21  ;;  %v575_v35 = vadd.f32 %v555_v24, %v1281_v52  ;;  %v536_v38 = vmul.f32 %v516_v33, %v1291_v60 }
 0x1c0   :  { %675 = vst [vmem:[%s1393_s5 + $0x8] sm:$0xff] %v665_v16  ;;  %v666_v27 = vpack.c.bf16 %v649_v29, %v648_v7  ;;  %v906_v32 = vpop.eup %905  ;;  %v594_v34 = vmul.f32 0.7978846, %v574_v22  ;;  %v492_v9 = vmul.f32 0.5, %v1259_v13  ;;  %v517_v43 = vmul.f32 %v1308_v31, %v1308_v31 }
 0x1c1   :  { %v908_v39 = vpop.eup %907  ;;  %v630_v40 = vadd.f32 1.0, %v906_v32  ;;  %v1322_v44 = vadd.f32 %v477_v15, %v1240_v37  ;;  %v595_v47 = vmul.f32 0.7978846, %v575_v35  ;;  %v556_v14 = vmul.f32 0.044715, %v536_v38 }
 0x1c2   :  { %676 = vst [vmem:[%s1393_s5 + $0x10] sm:$0xff] %v666_v27  ;;  %v631_v45 = vadd.f32 1.0, %v908_v39  ;;  %913 = vtanh.f32 %v594_v34  ;;  %v910_v48 = vpop.eup %909  ;;  %v493_v49 = vmul.f32 0.5, %v1266_v23  ;;  %v537_v53 = vmul.f32 %v517_v43, %v1308_v31 }
 0x1c3   :  { %v650_v41 = vmul.f32 %v630_v40, %v490_v28  ;;  %v518_v50 = vmul.f32 %v1311_v3, %v1311_v3  ;;  %v632_v54 = vadd.f32 1.0, %v910_v48  ;;  %915 = vtanh.f32 %v595_v47 }
 0x1c4   :  { %v651_v13 = vmul.f32 %v631_v45, %v491_v30  ;;  %v576_v55 = vadd.f32 %v556_v14, %v1291_v60  ;;  %v557_v57 = vmul.f32 0.044715, %v537_v53  ;;  %v519_v59 = vmul.f32 %v1322_v44, %v1322_v44 }
 0x1c5   :  { %v457_v56 = vpop.f32.mrf.mxu2  ;;  %v480_v42 = vpop.f32.mrf.mxu3  ;;  %v538_v58 = vmul.f32 %v518_v50, %v1311_v3  ;;  %v1333_v23 = vadd.f32 %v411_v17, %v1232_v25  ;;  %v652_v0 = vmul.f32 %v632_v54, %v492_v9  ;;  %v1336_v1 = vadd.f32 %v434_v18, %v1234_v26 }
 0x1c6   :  { %v413_v61 = vpop.f32.mrf.mxu0  ;;  %v436_v62 = vpop.f32.mrf.mxu1  ;;  %v667_v63 = vpack.c.bf16 %v651_v13, %v650_v41  ;;  %v596_v19 = vmul.f32 0.7978846, %v576_v55  ;;  %v577_v20 = vadd.f32 %v557_v57, %v1308_v31  ;;  %v539_v5 = vmul.f32 %v519_v59, %v1322_v44 }
 0x1c7   :  { %v912_v51 = vpop.eup %911  ;;  %v558_v4 = vmul.f32 0.044715, %v538_v58  ;;  %v494_v25 = vmul.f32 0.5, %v1276_v46  ;;  %v495_v7 = vmul.f32 0.5, %v1281_v52  ;;  %v520_v26 = vmul.f32 %v1333_v23, %v1333_v23 }
 0x1c8   :  { %v633_v2 = vadd.f32 1.0, %v912_v51  ;;  %v914_v6 = vpop.eup %913  ;;  %677 = vst [vmem:[%s1393_s5 + $0x18] sm:$0xff] %v667_v63  ;;  %917 = vtanh.f32 %v596_v19  ;;  %v597_v11 = vmul.f32 0.7978846, %v577_v20  ;;  %v559_v16 = vmul.f32 0.044715, %v539_v5 }
 0x1c9   :  { %v634_v10 = vadd.f32 1.0, %v914_v6  ;;  %v578_v12 = vadd.f32 %v558_v4, %v1311_v3  ;;  %v916_v15 = vpop.eup %915  ;;  %v540_v29 = vmul.f32 %v520_v26, %v1333_v23  ;;  %v521_v28 = vmul.f32 %v1336_v1, %v1336_v1 }
 0x1ca   :  { %v653_v8 = vmul.f32 %v633_v2, %v493_v49  ;;  %v1352_v46 = vadd.f32 %v457_v56, %v1238_v36  ;;  %v635_v18 = vadd.f32 1.0, %v916_v15  ;;  %919 = vtanh.f32 %v597_v11 }
 0x1cb   :  { %v654_v17 = vmul.f32 %v634_v10, %v494_v25  ;;  %v598_v21 = vmul.f32 0.7978846, %v578_v12  ;;  %v579_v22 = vadd.f32 %v559_v16, %v1322_v44  ;;  %v560_v24 = vmul.f32 0.044715, %v540_v29 }
 0x1cc   :  { %v668_v52 = vpack.c.bf16 %v653_v8, %v652_v0  ;;  %v541_v33 = vmul.f32 %v521_v28, %v1336_v1  ;;  %v655_v32 = vmul.f32 %v635_v18, %v495_v7  ;;  %v522_v36 = vmul.f32 %v1352_v46, %v1352_v46 }
 0x1cd   :  { %v459_v27 = vpop.f32.mrf.mxu2  ;;  %v482_v30 = vpop.f32.mrf.mxu3  ;;  %v481_v34 = vadd.f32 %v480_v42, %v1240_v37  ;;  %921 = vtanh.f32 %v598_v21  ;;  %v599_v38 = vmul.f32 0.7978846, %v579_v22  ;;  %v580_v39 = vadd.f32 %v560_v24, %v1333_v23 }
 0x1ce   :  { %678 = vst [vmem:[%s1393_s5 + $0x20] sm:$0xff] %v668_v52  ;;  %v918_v35 = vpop.eup %917  ;;  %v561_v40 = vmul.f32 0.044715, %v541_v33  ;;  %v669_v9 = vpack.c.bf16 %v655_v32, %v654_v17  ;;  %v496_v43 = vmul.f32 0.5, %v1291_v60  ;;  %v542_v47 = vmul.f32 %v522_v36, %v1352_v46 }
 0x1cf   :  { %v636_v45 = vadd.f32 1.0, %v918_v35  ;;  %923 = vtanh.f32 %v599_v38  ;;  %v600_v14 = vmul.f32 0.7978846, %v580_v39  ;;  %v523_v41 = vmul.f32 %v481_v34, %v481_v34 }
 0x1d0   :  { %v581_v48 = vadd.f32 %v561_v40, %v1336_v1  ;;  %v920_v49 = vpop.eup %919  ;;  %679 = vst [vmem:[%s1393_s5 + $0x28] sm:$0xff] %v669_v9  ;;  %v497_v53 = vmul.f32 0.5, %v1308_v31  ;;  %v562_v50 = vmul.f32 0.044715, %v542_v47  ;;  %v498_v58 = vmul.f32 0.5, %v1311_v3 }
 0x1d1   :  { %v656_v37 = vmul.f32 %v636_v45, %v496_v43  ;;  %v637_v13 = vadd.f32 1.0, %v920_v49  ;;  %925 = vtanh.f32 %v600_v14  ;;  %v543_v54 = vmul.f32 %v523_v41, %v481_v34 }
 0x1d2   :  { %v601_v60 = vmul.f32 0.7978846, %v581_v48  ;;  %v582_v55 = vadd.f32 %v562_v50, %v1352_v46  ;;  %v499_v31 = vmul.f32 0.5, %v1322_v44  ;;  %v500_v5 = vmul.f32 0.5, %v1333_v23 }
 0x1d3   :  { %v922_v56 = vpop.eup %921  ;;  %v657_v42 = vmul.f32 %v637_v13, %v497_v53  ;;  %v563_v57 = vmul.f32 0.044715, %v543_v54  ;;  %v501_v26 = vmul.f32 0.5, %v1336_v1  ;;  %v502_v15 = vmul.f32 0.5, %v1352_v46 }
 0x1d4   :  { %927 = vtanh.f32 %v601_v60  ;;  %v638_v59 = vadd.f32 1.0, %v922_v56  ;;  %v602_v61 = vmul.f32 0.7978846, %v582_v55  ;;  %v503_v29 = vmul.f32 0.5, %v481_v34 }
 0x1d5   :  { %v924_v62 = vpop.eup %923  ;;  %v670_v51 = vpack.c.bf16 %v657_v42, %v656_v37  ;;  %v583_v63 = vadd.f32 %v563_v57, %v481_v34 }
 0x1d6   :  { %v658_v0 = vmul.f32 %v638_v59, %v498_v58  ;;  %v639_v19 = vadd.f32 1.0, %v924_v62  ;;  %929 = vtanh.f32 %v602_v61 }
 0x1d7   :  { %v926_v2 = vpop.eup %925  ;;  %680 = vst [vmem:[%s1393_s5 + $0x30] sm:$0xff] %v670_v51  ;;  %v603_v20 = vmul.f32 0.7978846, %v583_v63 }
 0x1d8   :  { %v659_v4 = vmul.f32 %v639_v19, %v499_v31  ;;  %v640_v3 = vadd.f32 1.0, %v926_v2 }
 0x1d9   :  { %931 = vtanh.f32 %v603_v20 }
 0x1da   :  { %v928_v6 = vpop.eup %927  ;;  %v671_v25 = vpack.c.bf16 %v659_v4, %v658_v0  ;;  %v660_v7 = vmul.f32 %v640_v3, %v500_v5 }
 0x1db   :  { %v641_v8 = vadd.f32 1.0, %v928_v6 }
 0x1dc   :  { %v930_v44 = vpop.eup %929  ;;  %681 = vst [vmem:[%s1393_s5 + $0x38] sm:$0xff] %v671_v25 }
 0x1dd   :  { %v661_v10 = vmul.f32 %v641_v8, %v501_v26  ;;  %v642_v11 = vadd.f32 1.0, %v930_v44 }
 0x1df   :  { %v672_v12 = vpack.c.bf16 %v661_v10, %v660_v7  ;;  %v932_v16 = vpop.eup %931  ;;  %v662_v23 = vmul.f32 %v642_v11, %v502_v15 }
 0x1e0   :  { %v643_v28 = vadd.f32 1.0, %v932_v16 }
 0x1e1   :  { %682 = vst [vmem:[%s1393_s5 + $0x40] sm:$0xff] %v672_v12 }
 0x1e2   :  { %v663_v1 = vmul.f32 %v643_v28, %v503_v29 }
 0x1e4   :  { %v673_v52 = vpack.c.bf16 %v663_v1, %v662_v23 }
 0x1e6   :  { %683 = vst [vmem:[%s1393_s5 + $0x48] sm:$0xff] %v673_v52 }

// kernel: _lambda_.34
= control target key start
LH: loop header
LB: loop body
LE: loop exit
PB: predicated region body
PF: predicated region fallthrough
CT: control target
= control target key end

     0   :  { %s879_s1 = inlined_call_operand.vmem [shape: bf16[512,128], index: 1, kind: input, shape index: {}]   ;;  %s880_s2 = inlined_call_operand.vmem [shape: f32[1,128], index: 2, kind: input, shape index: {}]   ;;  %s881_s0 = inlined_call_operand.vmem [shape: bf16[40,512], index: 0, kind: input, shape index: {}]   ;;  %s882_s3 = inlined_call_operand.vmem [shape: bf16[40,128], index: 3, kind: input, shape index: {}]   ;;  %s883_s4 = inlined_call_operand.vmem [shape: bf16[40,128], index: 4, kind: output, shape index: {}]  }
   0x1   :  { %v637_v0 = vld [vmem:[%s879_s1 + $0x38] sm:$0xff]  ;;  %v636_v4 = vld [vmem:[%s879_s1 + $0x30] sm:$0xff]  ;;  %v635_v8 = vld [vmem:[%s879_s1 + $0x28] sm:$0xff] }
   0x2   :  { %v645_v1 = vld [vmem:[%s879_s1 + $0x78] sm:$0xff]  ;;  %341 = vmatpush.bf16.msra.mxu0 %v637_v0  ;;  %v644_v5 = vld [vmem:[%s879_s1 + $0x70] sm:$0xff]  ;;  %v643_v9 = vld [vmem:[%s879_s1 + $0x68] sm:$0xff] }
   0x3   :  { %v653_v2 = vld [vmem:[%s879_s1 + $0xb8] sm:$0xff]  ;;  %364 = vmatpush.bf16.msra.mxu1 %v645_v1  ;;  %v652_v6 = vld [vmem:[%s879_s1 + $0xb0] sm:$0xff]  ;;  %v651_v10 = vld [vmem:[%s879_s1 + $0xa8] sm:$0xff] }
   0x4   :  { %v661_v3 = vld [vmem:[%s879_s1 + $0xf8] sm:$0xff]  ;;  %387 = vmatpush.bf16.msra.mxu2 %v653_v2  ;;  %v660_v7 = vld [vmem:[%s879_s1 + $0xf0] sm:$0xff]  ;;  %v659_v11 = vld [vmem:[%s879_s1 + $0xe8] sm:$0xff] }
   0x5   :  { %410 = vmatpush.bf16.msra.mxu3 %v661_v3  ;;  %v634_v12 = vld [vmem:[%s879_s1 + $0x20] sm:$0xff]  ;;  %v633_v16 = vld [vmem:[%s879_s1 + $0x18] sm:$0xff]  ;;  %v632_v20 = vld [vmem:[%s879_s1 + $0x10] sm:$0xff] }
   0x6   :  { %342 = vmatpush.bf16.msra.mxu0 %v636_v4  ;;  %v642_v13 = vld [vmem:[%s879_s1 + $0x60] sm:$0xff]  ;;  %v641_v17 = vld [vmem:[%s879_s1 + $0x58] sm:$0xff]  ;;  %v640_v21 = vld [vmem:[%s879_s1 + $0x50] sm:$0xff] }
   0x7   :  { %365 = vmatpush.bf16.msra.mxu1 %v644_v5  ;;  %v650_v14 = vld [vmem:[%s879_s1 + $0xa0] sm:$0xff]  ;;  %v649_v18 = vld [vmem:[%s879_s1 + $0x98] sm:$0xff]  ;;  %v648_v22 = vld [vmem:[%s879_s1 + $0x90] sm:$0xff] }
   0x8   :  { %388 = vmatpush.bf16.msra.mxu2 %v652_v6  ;;  %v658_v15 = vld [vmem:[%s879_s1 + $0xe0] sm:$0xff]  ;;  %v657_v19 = vld [vmem:[%s879_s1 + $0xd8] sm:$0xff]  ;;  %v656_v23 = vld [vmem:[%s879_s1 + $0xd0] sm:$0xff] }
   0x9   :  { %411 = vmatpush.bf16.msra.mxu3 %v660_v7  ;;  %v631_v24 = vld [vmem:[%s879_s1 + $0x8] sm:$0xff]  ;;  %v630_v28 = vld [vmem:[%s879_s1] sm:$0xff]  ;;  %v624_v33 = vld [vmem:[%s881_s0 + $0xc] sm:$0xf0] }
   0xa   :  { %343 = vmatpush.bf16.msra.mxu0 %v635_v8  ;;  %v639_v25 = vld [vmem:[%s879_s1 + $0x48] sm:$0xff]  ;;  %v638_v29 = vld [vmem:[%s879_s1 + $0x40] sm:$0xff]  ;;  %v466_v35 = vld [vmem:[%s881_s0 + $0x10] sm:$0xf0] }
   0xb   :  { %366 = vmatpush.bf16.msra.mxu1 %v643_v9  ;;  %v647_v26 = vld [vmem:[%s879_s1 + $0x88] sm:$0xff]  ;;  %v646_v30 = vld [vmem:[%s879_s1 + $0x80] sm:$0xff]  ;;  %v625_v37 = vld [vmem:[%s881_s0 + $0x14] sm:$0xf0] }
   0xc   :  { %389 = vmatpush.bf16.msra.mxu2 %v651_v10  ;;  %v655_v27 = vld [vmem:[%s879_s1 + $0xc8] sm:$0xff]  ;;  %v654_v31 = vld [vmem:[%s879_s1 + $0xc0] sm:$0xff]  ;;  %v474_v39 = vld [vmem:[%s881_s0 + $0x18] sm:$0xf0] }
   0xd   :  { %412 = vmatpush.bf16.msra.mxu3 %v659_v11  ;;  %v464_v32 = vld [vmem:[%s881_s0] sm:$0xf]  ;;  %v622_v34 = vld [vmem:[%s881_s0 + $0x4] sm:$0xf]  ;;  %v472_v36 = vld [vmem:[%s881_s0 + $0x8] sm:$0xf] }
   0xe   :  { %344 = vmatpush.bf16.msra.mxu0 %v634_v12  ;;  %v623_v38 = vld [vmem:[%s881_s0 + $0xc] sm:$0xf]  ;;  %v465_v40 = vor.u32 %v624_v33, %v464_v32  ;;  %v469_v41 = vor.u32 %v622_v34, %v466_v35  ;;  %v473_v42 = vor.u32 %v625_v37, %v472_v36  ;;  %v480_v44 = vld [vmem:[%s881_s0 + $0x20] sm:$0xf]  ;;  %v628_v45 = vld [vmem:[%s881_s0 + $0x2c] sm:$0xf0] }
   0xf   :  { %367 = vmatpush.bf16.msra.mxu1 %v642_v13  ;;  %v477_v43 = vor.u32 %v623_v38, %v474_v39  ;;  %v626_v46 = vld [vmem:[%s881_s0 + $0x24] sm:$0xf]  ;;  %v482_v47 = vld [vmem:[%s881_s0 + $0x30] sm:$0xf0]  ;;  %v488_v48 = vld [vmem:[%s881_s0 + $0x28] sm:$0xf]  ;;  %v481_v52 = vor.u32 %v628_v45, %v480_v44 }
  0x10   :  { %390 = vmatpush.bf16.msra.mxu2 %v650_v14  ;;  %v629_v49 = vld [vmem:[%s881_s0 + $0x34] sm:$0xf0]  ;;  %v627_v50 = vld [vmem:[%s881_s0 + $0x2c] sm:$0xf]  ;;  %v490_v51 = vld [vmem:[%s881_s0 + $0x38] sm:$0xf0]  ;;  %v485_v53 = vor.u32 %v626_v46, %v482_v47 }
  0x11   :  { %413 = vmatpush.bf16.msra.mxu3 %v658_v15  ;;  %v489_v54 = vor.u32 %v629_v49, %v488_v48  ;;  %v493_v55 = vor.u32 %v627_v50, %v490_v51  ;;  %v25_v56 = vld [vmem:[%s881_s0 + $0x40] sm:$0xff]  ;;  %v26_v57 = vld [vmem:[%s881_s0 + $0x48] sm:$0xff]  ;;  %v437_v50 = vld [vmem:[%s882_s3 + $0x10] sm:$0xf] }
  0x12   :  { %345 = vmatpush.bf16.msra.mxu0 %v633_v16  ;;  %v121_v58 = vunpack.c.l.b16 %v25_v56  ;;  %v122_v59 = vunpack.c.h.b16 %v25_v56  ;;  %v123_v60 = vunpack.c.l.b16 %v26_v57  ;;  %v124_v61 = vunpack.c.h.b16 %v26_v57  ;;  %v682_v2 = vld [vmem:[%s880_s2] ss:$0 sm:$0xff]  ;;  %v680_v35 = vld [vmem:[%s882_s3 + $0x8] sm:$0xff]  }
  0x13   :  { %368 = vmatpush.bf16.msra.mxu1 %v641_v17  ;;  %v663_v13 = vld [vmem:[%s882_s3] sm:$0xff]  }
  0x14   :  { %391 = vmatpush.bf16.msra.mxu2 %v649_v18  ;;  %v133_v62 = vpack.c.b16 %v121_v58, %v121_v58  ;;  %v134_v63 = vpack.c.b16 %v122_v59, %v122_v59  ;;  %v135_v0 = vpack.c.b16 %v123_v60, %v123_v60  ;;  %v136_v1 = vpack.c.b16 %v124_v61, %v124_v61 }
  0x15   :  { %414 = vmatpush.bf16.msra.mxu3 %v657_v19  ;;  %v664_v18 = vunpack.c.l.bf16 %v663_v13 }
  0x16   :  { %346 = vmatpush.bf16.msra.mxu0 %v632_v20  ;;  %v665_v20 = vunpack.c.h.bf16 %v663_v13 }
  0x17   :  { %369 = vmatpush.bf16.msra.mxu1 %v640_v21 }
  0x18   :  { %392 = vmatpush.bf16.msra.mxu2 %v648_v22 }
  0x19   :  { %415 = vmatpush.bf16.msra.mxu3 %v656_v23 }
  0x1a   :  { %347 = vmatpush.bf16.msra.mxu0 %v631_v24 }
  0x1b   :  { %370 = vmatpush.bf16.msra.mxu1 %v639_v25 }
  0x1c   :  { %393 = vmatpush.bf16.msra.mxu2 %v647_v26 }
  0x1d   :  { %416 = vmatpush.bf16.msra.mxu3 %v655_v27 }
  0x1e   :  { %348 = vmatpush.bf16.msra.mxu0 %v630_v28 }
  0x1f   :  { %371 = vmatpush.bf16.msra.mxu1 %v638_v29 }
  0x20   :  { %394 = vmatpush.bf16.msra.mxu2 %v646_v30 }
  0x21   :  { %417 = vmatpush.bf16.msra.mxu3 %v654_v31  ;;  %349 = vmatmul.bf16.vlgmr.msra.gmra.mxu0 %v465_v40  ;;  %v668_v40 = vunpack.c.l.bf16 %v680_v35 }
  0x22   :  { %372 = vmatmul.bf16.vlgmr.msra.gmra.mxu1 %v469_v41 }
  0x23   :  { %395 = vmatmul.bf16.vlgmr.msra.gmra.mxu2 %v473_v42  ;;  %v669_v42 = vunpack.c.h.bf16 %v680_v35 }
  0x24   :  { %418 = vmatmul.bf16.vlgmr.msra.gmra.mxu3 %v477_v43 }
  0x31   :  { %354 = vmatmul.bf16.gmra.mxu0 %v481_v52 }
  0x32   :  { %377 = vmatmul.bf16.gmra.mxu1 %v485_v53 }
  0x33   :  { %400 = vmatmul.bf16.gmra.mxu2 %v489_v54 }
  0x34   :  { %423 = vmatmul.bf16.gmra.mxu3 %v493_v55  ;;  %v442_v55 = vunpack.c.l.bf16 %v437_v50 }
  0x41   :  { %359 = vmatmul.bf16.gmra.mxu0 %v133_v62 }
  0x42   :  { %382 = vmatmul.bf16.gmra.mxu1 %v134_v63 }
  0x43   :  { %405 = vmatmul.bf16.gmra.mxu2 %v135_v0 }
  0x44   :  { %428 = vmatmul.bf16.gmra.mxu3 %v136_v1 }
  0x9e   :  { %v350_v3 = vpop.f32.mrf.mxu0 }
  0x9f   :  { %v373_v4 = vpop.f32.mrf.mxu1  ;;  %v351_v5 = vadd.f32 %v682_v2, %v350_v3 }
  0xa1   :  { %v374_v8 = vadd.f32 %v373_v4, %v351_v5 }
  0xa6   :  { %v396_v6 = vpop.f32.mrf.mxu2  ;;  %v352_v9 = vpop.f32.mrf.mxu0 }
  0xa7   :  { %v419_v7 = vpop.f32.mrf.mxu3  ;;  %v375_v10 = vpop.f32.mrf.mxu1  ;;  %v353_v11 = vadd.f32 %v682_v2, %v352_v9  ;;  %v397_v12 = vadd.f32 %v396_v6, %v374_v8 }
  0xa9   :  { %v376_v14 = vadd.f32 %v375_v10, %v353_v11  ;;  %v420_v17 = vadd.f32 %v419_v7, %v397_v12 }
  0xab   :  { %v443_v24 = vadd.f32 %v664_v18, %v420_v17 }
  0xae   :  { %v398_v15 = vpop.f32.mrf.mxu2  ;;  %v355_v21 = vpop.f32.mrf.mxu0 }
  0xaf   :  { %v421_v16 = vpop.f32.mrf.mxu3  ;;  %v399_v19 = vadd.f32 %v398_v15, %v376_v14  ;;  %v378_v22 = vpop.f32.mrf.mxu1  ;;  %v356_v26 = vadd.f32 %v682_v2, %v355_v21 }
  0xb1   :  { %v422_v23 = vadd.f32 %v421_v16, %v399_v19  ;;  %v379_v30 = vadd.f32 %v378_v22, %v356_v26 }
  0xb3   :  { %v444_v25 = vadd.f32 %v665_v20, %v422_v23 }
  0xb5   :  { %v673_v27 = vpack.c.bf16 %v444_v25, %v443_v24 }
  0xb6   :  { %v401_v28 = vpop.f32.mrf.mxu2  ;;  %v357_v31 = vpop.f32.mrf.mxu0 }
  0xb7   :  { %v424_v29 = vpop.f32.mrf.mxu3  ;;  %674 = vst [vmem:[%s883_s4] sm:$0xff] %v673_v27   ;;  %v380_v32 = vpop.f32.mrf.mxu1  ;;  %v358_v33 = vadd.f32 %v682_v2, %v357_v31  ;;  %v402_v34 = vadd.f32 %v401_v28, %v379_v30 }
  0xb9   :  { %v381_v36 = vadd.f32 %v380_v32, %v358_v33  ;;  %v425_v39 = vadd.f32 %v424_v29, %v402_v34 }
  0xbb   :  { %v445_v47 = vadd.f32 %v668_v40, %v425_v39 }
  0xbe   :  { %v403_v37 = vpop.f32.mrf.mxu2  ;;  %v360_v43 = vpop.f32.mrf.mxu0 }
  0xbf   :  { %v426_v38 = vpop.f32.mrf.mxu3  ;;  %v404_v41 = vadd.f32 %v403_v37, %v381_v36  ;;  %v383_v44 = vpop.f32.mrf.mxu1  ;;  %v361_v45 = vadd.f32 %v682_v2, %v360_v43 }
  0xc1   :  { %v427_v46 = vadd.f32 %v426_v38, %v404_v41  ;;  %v384_v49 = vadd.f32 %v383_v44, %v361_v45 }
  0xc3   :  { %v446_v48 = vadd.f32 %v669_v42, %v427_v46 }
  0xc5   :  { %v678_v51 = vpack.c.bf16 %v446_v48, %v445_v47 }
  0xc6   :  { %v406_v52 = vpop.f32.mrf.mxu2  ;;  %v362_v56 = vpop.f32.mrf.mxu0 }
  0xc7   :  { %v429_v53 = vpop.f32.mrf.mxu3  ;;  %681 = vst [vmem:[%s883_s4 + $0x8] sm:$0xff] %v678_v51   ;;  %v407_v54 = vadd.f32 %v406_v52, %v384_v49  ;;  %v385_v57 = vpop.f32.mrf.mxu1 }
  0xc9   :  { %v430_v58 = vadd.f32 %v429_v53, %v407_v54 }
  0xcb   :  { %v447_v59 = vadd.f32 %v442_v55, %v430_v58 }
  0xcd   :  { %v452_v60 = vpack.c.bf16 %v447_v59, %v447_v59 }
  0xce   :  { %v408_v61 = vpop.f32.mrf.mxu2 }
  0xcf   :  { %v431_v62 = vpop.f32.mrf.mxu3  ;;  %457 = vst [vmem:[%s883_s4 + $0x10] sm:$0xf] %v452_v60 }

// kernel: _lambda_.40
= control target key start
LH: loop header
LB: loop body
LE: loop exit
PB: predicated region body
PF: predicated region fallthrough
CT: control target
= control target key end

     0   :  { %v66_v2 = vmov 128.0   ;;  %s99_s0 = inlined_call_operand.vmem [shape: bf16[8,128], index: 0, kind: input, shape index: {}]   ;;  %s100_s1 = inlined_call_operand.vmem [shape: f32[1,128], index: 1, kind: input, shape index: {}]   ;;  %s101_s2 = inlined_call_operand.vmem [shape: f32[1,128], index: 2, kind: input, shape index: {}]   ;;  %s102_s3 = inlined_call_operand.vmem [shape: bf16[8,128], index: 3, kind: output, shape index: {}]  }
   0x1   :  { %v14_v0 = vld [vmem:[%s99_s0] sm:$0xf]  ;;  %62 = vrcp.f32 %v66_v2 }
   0x2   :  { %v15_v1 = vunpack.c.l.bf16 %v14_v0  ;;  %v60_v22 = vld [vmem:[%s100_s1] ss:$0 sm:$0xff] }
   0x3   :  { %v61_v24 = vld [vmem:[%s101_s2] ss:$0 sm:$0xff] }
   0x4   :  { %16 = vadd.xlane.f32.xlu0 %v15_v1 }
   0x7   :  { %v63_v3 = vpop.eup %62 }
   0x8   :  { %v19_v4 = vmul.f32 128.0, %v63_v3  ;;  %vm23_vm0 = vweird.f32 %v63_v3 }
   0xa   :  { %v20_v5 = vsub.f32 1.0, %v19_v4 }
   0xc   :  { %v21_v6 = vmul.f32 %v63_v3, %v20_v5 }
   0xe   :  { %v22_v7 = vadd.f32 %v63_v3, %v21_v6 }
  0x10   :  { %v24_v8 = vsel %vm23_vm0, %v63_v3, %v22_v7 }
  0x77   :  { %v17_v9 = vpop.xlane.xlu0 %16 }
  0x78   :  { %v25_v10 = vmul.f32 %v24_v8, %v17_v9 }
  0x7a   :  { %v26_v11 = vsub.f32 %v15_v1, %v25_v10 }
  0x7c   :  { %v27_v12 = vmul.f32 %v26_v11, %v26_v11 }
  0x7e   :  { %28 = vadd.xlane.f32.xlu0 %v27_v12 }
  0xf1   :  { %v29_v13 = vpop.xlane.xlu0 %28 }
  0xf2   :  { %v30_v14 = vmul.f32 %v29_v13, %v24_v8 }
  0xf4   :  { %v31_v15 = vadd.f32 1e-05, %v30_v14 }
  0xf6   :  { %64 = vrsqrt.f32 %v31_v15  ;;  %vm38_vm2 = vweird.f32 %v31_v15 }
  0xfc   :  { %v65_v16 = vpop.eup %64 }
  0xfd   :  { %v33_v17 = vmul.f32 %v65_v16, %v31_v15  ;;  %vm39_vm1 = vweird.f32 %v65_v16 }
  0xfe   :  { %vm40_vm3 = vmor %vm38_vm2, %vm39_vm1 }
  0xff   :  { %v34_v18 = vmul.f32 %v65_v16, %v33_v17 }
 0x101   :  { %v35_v19 = vmul.f32 0.5, %v34_v18 }
 0x103   :  { %v36_v20 = vsub.f32 1.5, %v35_v19 }
 0x105   :  { %v37_v21 = vmul.f32 %v65_v16, %v36_v20 }
 0x107   :  { %v41_v23 = vsel %vm40_vm3, %v65_v16, %v37_v21 }
 0x108   :  { %v42_v25 = vmul.f32 %v41_v23, %v26_v11 }
 0x10a   :  { %v47_v26 = vmul.f32 %v60_v22, %v42_v25 }
 0x10c   :  { %v52_v27 = vadd.f32 %v61_v24, %v47_v26 }
 0x10e   :  { %v53_v28 = vpack.c.bf16 %v52_v27, %v52_v27 }
 0x110   :  { %54 = vst [vmem:[%s102_s3] sm:$0xf] %v53_v28 }

// kernel: _lambda_.41
= control target key start
LH: loop header
LB: loop body
LE: loop exit
PB: predicated region body
PF: predicated region fallthrough
CT: control target
= control target key end

     0   :  { %vm89_vm0 = vcmask 523264   ;;  %s180_s1 = inlined_call_operand.vmem [shape: bf16[128,64], index: 1, kind: input, shape index: {}]   ;;  %s181_s0 = inlined_call_operand.vmem [shape: bf16[8,128], index: 0, kind: input, shape index: {}]   ;;  %s182_s2 = inlined_call_operand.vmem [shape: f32[8,64], index: 2, kind: output, shape index: {}]  }
   0x1   :  { %v134_v0 = vld [vmem:[%s180_s1 + $0x38] sm:$0xff]  ;;  %v133_v1 = vld [vmem:[%s180_s1 + $0x30] sm:$0xff]  ;;  %v132_v2 = vld [vmem:[%s180_s1 + $0x28] sm:$0xff] }
   0x2   :  { %76 = vmatpush.bf16.msra.mxu0 %v134_v0  ;;  %v131_v3 = vld [vmem:[%s180_s1 + $0x20] sm:$0xff]  ;;  %v130_v4 = vld [vmem:[%s180_s1 + $0x18] sm:$0xff]  ;;  %v129_v5 = vld [vmem:[%s180_s1 + $0x10] sm:$0xff] }
   0x3   :  { %v128_v6 = vld [vmem:[%s180_s1 + $0x8] sm:$0xff]  ;;  %v127_v7 = vld [vmem:[%s180_s1] sm:$0xff] }
   0x4   :  { %v11_v8 = vld [vmem:[%s181_s0] sm:$0xf] }
   0x6   :  { %77 = vmatpush.bf16.msra.mxu0 %v133_v1 }
   0xa   :  { %78 = vmatpush.bf16.msra.mxu0 %v132_v2 }
   0xe   :  { %79 = vmatpush.bf16.msra.mxu0 %v131_v3 }
  0x12   :  { %80 = vmatpush.bf16.msra.mxu0 %v130_v4 }
  0x16   :  { %81 = vmatpush.bf16.msra.mxu0 %v129_v5 }
  0x1a   :  { %82 = vmatpush.bf16.msra.mxu0 %v128_v6 }
  0x1e   :  { %83 = vmatpush.bf16.msra.mxu0 %v127_v7 }
  0x21   :  { %84 = vmatmul.bf16.vlgmr.msra.gmra.mxu0 %v11_v8 }
  0x9e   :  { %v85_v9 = vpop.f32.mrf.mxu0 }
  0x9f   :  { %90 = vst.msk [vmem:[%s182_s2] sm:$0xff] %vm89_vm0, %v85_v9 }
  0xa6   :  { %v87_v10 = vpop.f32.mrf.mxu0 }

// kernel: _lambda_.44
= control target key start
LH: loop header
LB: loop body
LE: loop exit
PB: predicated region body
PF: predicated region fallthrough
CT: control target
= control target key end

     0   :  { %s875_s12 = smov 0   ;;  %s877_s13 = smov 0   ;;  %s986_s0 = inlined_call_operand.vmem [shape: bf16[2,16,384], index: 0, kind: input, shape index: {}, may-alias: {0,1,2}]   ;;  %s987_s1 = inlined_call_operand.vmem [shape: bf16[2,16,384], index: 1, kind: input, shape index: {}, may-alias: {0,1,2}]   ;;  %s988_s2 = inlined_call_operand.vmem [shape: bf16[2,16,384], index: 2, kind: input, shape index: {}, may-alias: {0,1,2}]   ;;  %s989_s3 = inlined_call_operand.vmem [shape: bf16[2,16,128], index: 3, kind: output, shape index: {}]  }
   0x1   :  { %s879_s14 = smov 0   ;;  %s881_s15 = smov 0  }
   0x2   :  { %s883_s16 = smov 0  }
   0x3 LB: > { %s25_s17 = sadd.s32 1, %s847_s15  ;;  %p41_p1 = scmp.ne.s32.totalorder %s839_s13, %s835_s12  ;;  %s851_s16 = sphi %s883_s16, %s13_s16   ;;  %s847_s15 = sphi %s881_s15, %s994_s15   ;;  %s843_s14 = sphi %s879_s14, %s993_s14   ;;  %s839_s13 = sphi %s877_s13, %s992_s13   ;;  %s835_s12 = sphi %s875_s12, %s991_s12  }
   0x4   : > { %p27_p0 = scmp.ge.s32.totalorder %s25_s17, 2  ;;  %p42_p2 = scmp.eq.s32.totalorder %s851_s16, 0 }
   0x5   : > { %s34_s20 = sadd.s32 1, %s839_s13  ;;  %p705_p5 = scmp.ge.s32.totalorder %s851_s16, 2 }
   0x6   : > { %s996_s17 = smov (%p27_p0, %s25_s17), 0  ;;  %p906_p3 = por %p42_p2, %p41_p1 }
   0x7   : > { %s29_s19 = ssub.s32 %s847_s15, %s996_s17  ;;  %155 = sbr.rel (%p705_p5) target bundleno = 33 (0x21), region = 16 }
   0x8   : > { %p32_p4 = scmp.eq.s32.totalorder %s29_s19, 0 }
   0xa   : > { %s914_s21 = scalar_select %p32_p4, %s839_s13, %s34_s20  }
   0xc   : > { %158 = sbr.rel (!%p906_p3) target bundleno = 19 (0x13), region = 20  ;;  %s160_s22 = sand.u32 (%p906_p3), 1, %s839_s13  }
   0xd   : > { %s749_s23 = smul.u32 (%p906_p3), 24, %s847_s15  ;;  %s706_s24 = sshll.u32 (%p906_p3), %s160_s22, 3 }
   0xe   : > { %s162_s28 = scalar_lea.vmem (%p906_p3), [#allocation2], %s706_s24 }
   0xf   : > { %s166_s27 = scalar_lea.vmem (%p906_p3), %s986_s0, %s749_s23 }
  0x10   : > { %v183_v0 = vld [vmem:[%s166_s27] sm:$0xf] (%p906_p3)  ;;  %v185_v1 = vld [vmem:[%s166_s27 + $0xc] sm:$0xf] (%p906_p3) }
  0x11   : > { %184 = vst [vmem:[%s162_s28] sm:$0xf] %v183_v0 }
  0x12   : > { %186 = vst [vmem:[%s162_s28 + $0x4] sm:$0xf] %v185_v1 }
  0x13 PF: > { %214 = sbr.rel (!%p906_p3) target bundleno = 26 (0x1a), region = 61  ;;  %s216_s29 = sand.u32 (%p906_p3), 1, %s839_s13  }
  0x14   : > { %s709_s30 = smul.u32 (%p906_p3), 24, %s847_s15  ;;  %s708_s4 = sshll.u32 (%p906_p3), %s216_s29, 3 }
  0x15   : > { %s218_s8 = scalar_lea.vmem (%p906_p3), [#allocation3], %s708_s4 }
  0x16   : > { %s613_s7 = scalar_lea.vmem (%p906_p3), %s987_s1, %s709_s30 }
  0x17   : > { %v710_v2 = vld [vmem:[%s613_s7 + $0x4] sm:$0xf] (%p906_p3)  ;;  %v711_v3 = vld [vmem:[%s613_s7 + $0x10] sm:$0xf] (%p906_p3) }
  0x18   : > { %241 = vst [vmem:[%s218_s8] sm:$0xf] %v710_v2 }
  0x19   : > { %243 = vst [vmem:[%s218_s8 + $0x4] sm:$0xf] %v711_v3 }
  0x1a PF: > { %271 = sbr.rel (!%p906_p3) target bundleno = 33 (0x21), region = 102  ;;  %s273_s9 = sand.u32 (%p906_p3), 1, %s839_s13  }
  0x1b   : > { %s713_s10 = smul.u32 (%p906_p3), 24, %s847_s15  ;;  %s712_s11 = sshll.u32 (%p906_p3), %s273_s9, 3 }
  0x1c   : > { %s275_s23 = scalar_lea.vmem (%p906_p3), [#allocation4], %s712_s11 }
  0x1d   : > { %s620_s22 = scalar_lea.vmem (%p906_p3), %s988_s2, %s713_s10 }
  0x1e   : > { %v714_v4 = vld [vmem:[%s620_s22 + $0x8] sm:$0xf] (%p906_p3)  ;;  %v715_v5 = vld [vmem:[%s620_s22 + $0x14] sm:$0xf] (%p906_p3) }
  0x1f   : > { %298 = vst [vmem:[%s275_s23] sm:$0xf] %v714_v4 }
  0x20   : > { %300 = vst [vmem:[%s275_s23 + $0x4] sm:$0xf] %v715_v5 }
  0x21 PF: > { %p716_p6 = scmp.ge.s32.totalorder %s851_s16, 1  ;;  %p327_p7 = scmp.lt.s32.totalorder %s851_s16, 3 }
  0x23   : > { %p328_p8 = pnand %p716_p6, %p327_p7 }
  0x24   : > { %s334_s18 = sand.u32 (!%p328_p8), 1, %s835_s12   ;;  %s853_s26 = smov (!%p328_p8), 64  }
  0x25   : > { %331 = sbr.rel (%p328_p8) target bundleno = 829 (0x33d), region = 143  ;;  %s941_s24 = sshll.u32 (!%p328_p8), %s334_s18, 3 }
  0x26   : > { %s343_s25 = scalar_lea.vmem (!%p328_p8), [#allocation3], %s941_s24  ;;  %s336_s27 = scalar_lea.vmem (!%p328_p8), [#allocation2], %s941_s24 }
  0x27   : > { %s350_s12 = scalar_lea.vmem (!%p328_p8), [#allocation4], %s941_s24  ;;  %p384_p9 = scmp.lt.s32.totalorder (!%p328_p8), %s843_s14, 1 }
  0x2a   : > { %v742_v6 = vld [vmem:[%s343_s25] sm:$0xff]  ;;  %v741_v7 = vld [vmem:[%s336_s27] sm:$0xff]  ;;  %vm418_vm0 = vcmask 523264   ;;  %v393_v13 = vlaneseq  ;;  %v854_v17 = vmov -1e+30   ;;  %vm443_vm2 = vcmask 130048  }
  0x2b   : > { %492 = vrot.lane.b32.xlu0 %v742_v6, %s853_s26  ;;  %v423_v8 = vsel %vm418_vm0, %v742_v6, 0  ;;  %v743_v38 = vld [vmem:[%s350_s12] sm:$0xff]  ;;  %s998_s14 = smov (!%p384_p9, %s843_s14), 1 }
  0x2c   : > { %432 = vmatpush.bf16.xpose.msra.mxu0 %v423_v8  ;;  %v394_v15 = vshrl.u32 %v393_v13, 7  ;;  %v397_v16 = vand.u32 127, %v393_v13  ;;  %483 = vmatpush.bf16.msra.mxu1 %v743_v38  ;;  %s740_s28 = sshll.u32 %s998_s14, 3 }
  0x2d   : > { %s391_s4 = scalar_lea.vmem %s989_s3, %s740_s28 }
  0x2e   : > { %vm398_vm1 = vcmp.le.s32.totalorder %v397_v16, %v394_v15  ;;  %v395_v21 = vadd.s32 8, %v394_v15 }
  0x2f   : > { %v400_v18 = vsel %vm398_vm1, 0.0, %v854_v17 }
  0x30   : > { %vm399_vm3 = vcmp.le.s32.totalorder %v397_v16, %v395_v21 }
  0x31   : > { %v401_v24 = vsel %vm399_vm3, 0.0, %v854_v17 }
  0x33   : > { %490 = vrot.lane.b32.xlu0 %v741_v7, %s853_s26  ;;  %730 = vmatmul.msk.bf16.vlgmr.msra.gmra.mxu0 %vm418_vm0, %v741_v7 }
  0x9d   : > { %v493_v9 = vpop.permute.xlu0 %492 }
  0x9e   : > { %v498_v10 = vsel %vm418_vm0, %v493_v9, 0 }
  0x9f   : > { %507 = vmatpush.bf16.xpose.msra.mxu2 %v498_v10 }
  0xa5   : > { %v491_v11 = vpop.permute.xlu0 %490 }
  0xa6   : > { %736 = vmatmul.msk.bf16.vlgmr.msra.gmra.mxu2 %vm418_vm0, %v491_v11 }
  0xb0   : > { %v434_v12 = vpop.f32.mrf.mxu0 }
  0xb1   : > { %v439_v14 = vmul.f32 0.125, %v434_v12 }
  0xb3   : > { %v441_v19 = vadd.f32 %v439_v14, %v400_v18 }
  0xb5   : > { %v444_v20 = vsel %vm443_vm2, %v441_v19, -inf }
  0xb6   : > { %445 = vmax.xlane.f32.xlu2 %v444_v20 }
  0xb8   : > { %v436_v22 = vpop.f32.mrf.mxu0 }
  0xb9   : > { %v440_v23 = vmul.f32 0.125, %v436_v22 }
  0xbb   : > { %v442_v25 = vadd.f32 %v440_v23, %v401_v24 }
  0xbd   : > { %v447_v26 = vsel %vm443_vm2, %v442_v25, -inf }
  0xbe   : > { %448 = vmax.xlane.f32.xlu2 %v447_v26 }
  0xd6   : > { %541 = vrot.lane.b32.xlu2 %v743_v38, %s853_s26 }
 0x129   : > { %v509_v27 = vpop.f32.mrf.mxu2  ;;  %v446_v39 = vpop.xlane.xlu2 %445 }
 0x12a   : > { %v514_v28 = vmul.f32 0.125, %v509_v27  ;;  %v450_v43 = vsub.f32 %v441_v19, %v446_v39 }
 0x12c   : > { %v516_v29 = vadd.f32 %v514_v28, %v400_v18  ;;  %v452_v46 = vmul.f32 1.442695, %v450_v43 }
 0x12e   : > { %v518_v30 = vsel %vm443_vm2, %v516_v29, -inf }
 0x12f   : > { %519 = vmax.xlane.f32.xlu1 %v518_v30 }
 0x131   : > { %v511_v31 = vpop.f32.mrf.mxu2  ;;  %v449_v47 = vpop.xlane.xlu2 %448 }
 0x132   : > { %v515_v32 = vmul.f32 0.125, %v511_v31  ;;  %v451_v49 = vsub.f32 %v442_v25, %v449_v47 }
 0x134   : > { %v517_v33 = vadd.f32 %v515_v32, %v401_v24  ;;  %v454_v51 = vmul.f32 1.442695, %v451_v49 }
 0x136   : > { %v521_v34 = vsel %vm443_vm2, %v517_v33, -inf }
 0x137   : > { %522 = vmax.xlane.f32.xlu1 %v521_v34 }
 0x139   : > { %v542_v56 = vpop.permute.xlu2 %541 }
 0x13a   : > { %554 = vmatpush.bf16.msra.mxu3 %v542_v56 }
 0x1a2   : > { %v520_v35 = vpop.xlane.xlu1 %519 }
 0x1a3   : > { %v524_v36 = vsub.f32 %v516_v29, %v520_v35 }
 0x1a5   : > { %v526_v37 = vmul.f32 1.442695, %v524_v36 }
 0x1a7   : > { %797 = vpow2.f32 %v526_v37 }
 0x1aa   : > { %v523_v40 = vpop.xlane.xlu1 %522 }
 0x1ab   : > { %v525_v41 = vsub.f32 %v517_v33, %v523_v40 }
 0x1ad   : > { %v798_v42 = vpop.eup %797  ;;  %v528_v44 = vmul.f32 1.442695, %v525_v41 }
 0x1ae   : > { %v530_v45 = vsel %vm443_vm2, %v798_v42, 0.0 }
 0x1af   : > { %799 = vpow2.f32 %v528_v44  ;;  %531 = vadd.xlane.f32.xlu0 %v530_v45 }
 0x1b0   : > { %801 = vpow2.f32 %v452_v46 }
 0x1b1   : > { %803 = vpow2.f32 %v454_v51 }
 0x1b5   : > { %v800_v48 = vpop.eup %799 }
 0x1b6   : > { %v533_v50 = vsel %vm443_vm2, %v800_v48, 0.0  ;;  %v802_v52 = vpop.eup %801 }
 0x1b7   : > { %534 = vadd.xlane.f32.xlu1 %v533_v50  ;;  %v456_v53 = vsel %vm443_vm2, %v802_v52, 0.0  ;;  %v804_v54 = vpop.eup %803 }
 0x1b8   : > { %v459_v55 = vsel %vm443_vm2, %v804_v54, 0.0 }
 0x1bf   : > { %457 = vadd.xlane.f32.xlu1 %v456_v53 }
 0x1c7   : > { %460 = vadd.xlane.f32.xlu1 %v459_v55 }
 0x222   : > { %v532_v57 = vpop.xlane.xlu0 %531 }
 0x223   : > { %805 = vrcp.f32 %v532_v57 }
 0x229   : > { %v806_v59 = vpop.eup %805 }
 0x22a   : > { %v535_v58 = vpop.xlane.xlu1 %534  ;;  %v538_v62 = vmul.f32 %v806_v59, %v798_v42 }
 0x22b   : > { %807 = vrcp.f32 %v535_v58 }
 0x231   : > { %v808_v60 = vpop.eup %807 }
 0x232   : > { %v458_v61 = vpop.xlane.xlu1 %457  ;;  %v539_v63 = vmul.f32 %v808_v60, %v800_v48 }
 0x233   : > { %809 = vrcp.f32 %v458_v61 }
 0x234   : > { %v540_v0 = vpack.c.bf16 %v539_v63, %v538_v62 }
 0x236   : > { %737 = vmatmul.msk.bf16.vlgmr.msra.gmra.mxu3 %vm443_vm2, %v540_v0 }
 0x239   : > { %v810_v2 = vpop.eup %809 }
 0x23a   : > { %v461_v1 = vpop.xlane.xlu1 %460  ;;  %v464_v4 = vmul.f32 %v810_v2, %v802_v52 }
 0x23b   : > { %811 = vrcp.f32 %v461_v1 }
 0x241   : > { %v812_v3 = vpop.eup %811 }
 0x242   : > { %v465_v5 = vmul.f32 %v812_v3, %v804_v54 }
 0x244   : > { %v466_v6 = vpack.c.bf16 %v465_v5, %v464_v4 }
 0x246   : > { %735 = vmatmul.msk.bf16.vlgmr.msra.gmra.mxu1 %vm443_vm2, %v466_v6 }
 0x2b9   : > { %v556_v7 = vpop.f32.mrf.mxu3 }
 0x2c1   : > { %v558_v8 = vpop.f32.mrf.mxu3 }
 0x2c2   : > { %v792_v9 = vpack.i.bf16 %v558_v8, %v556_v7 }
 0x2c3   : > { %v485_v10 = vpop.f32.mrf.mxu1 }
 0x2c4   : > { %793 = vrot.lane.b32.xlu1 %v792_v9, %s853_s26 }
 0x2cb   : > { %v487_v14 = vpop.f32.mrf.mxu1 }
 0x336   : > { %v794_v11 = vpop.permute.xlu1 %793 }
 0x337   : > { %v796_v12 = vunpack.i.h.bf16 %v794_v11  ;;  %v795_v13 = vunpack.i.l.bf16 %v794_v11 }
 0x339   : > { %v570_v15 = vsel %vm418_vm0, %v487_v14, %v796_v12  ;;  %v569_v16 = vsel %vm418_vm0, %v485_v10, %v795_v13 }
 0x33a   : > { %v747_v17 = vpack.c.bf16 %v570_v15, %v569_v16 }
 0x33c   : > { %748 = vst [vmem:[%s391_s4] sm:$0xff] %v747_v17  }
 0x33d PF: > { %s13_s16 = sadd.s32 1, %s851_s16   ;;  %s991_s12 = smov %s839_s13 }
 0x33e   : > { %p10_p10 = scmp.ge.s32.totalorder %s13_s16, 4   ;;  %s992_s13 = smov %s914_s21 }
 0x33f   : > { %s993_s14 = smov %s847_s15  ;;  %s994_s15 = smov %s996_s17 }
 0x340   :  { %12 = sbr.rel (!%p10_p10) target bundleno = 3 (0x3), region = 206 }

// kernel: _lambda_.45
= control target key start
LH: loop header
LB: loop body
LE: loop exit
PB: predicated region body
PF: predicated region fallthrough
CT: control target
= control target key end

     0   :  { %s293_s1 = inlined_call_operand.vmem [shape: bf16[128,128], index: 1, kind: input, shape index: {}]   ;;  %s294_s2 = inlined_call_operand.vmem [shape: f32[1,128], index: 2, kind: input, shape index: {}]   ;;  %s295_s0 = inlined_call_operand.vmem [shape: bf16[32,128], index: 0, kind: input, shape index: {}]   ;;  %s296_s3 = inlined_call_operand.vmem [shape: bf16[32,128], index: 3, kind: input, shape index: {}]   ;;  %s297_s4 = inlined_call_operand.vmem [shape: bf16[32,128], index: 4, kind: output, shape index: {}]  }
   0x1   :  { %v193_v0 = vld [vmem:[%s293_s1 + $0x38] sm:$0xff]  ;;  %v192_v1 = vld [vmem:[%s293_s1 + $0x30] sm:$0xff]  ;;  %v191_v2 = vld [vmem:[%s293_s1 + $0x28] sm:$0xff] }
   0x2   :  { %101 = vmatpush.bf16.msra.mxu0 %v193_v0  ;;  %214 = vmatpush.bf16.msra.mxu1 %v193_v0  ;;  %v190_v3 = vld [vmem:[%s293_s1 + $0x20] sm:$0xff]  ;;  %v189_v4 = vld [vmem:[%s293_s1 + $0x18] sm:$0xff]  ;;  %v188_v5 = vld [vmem:[%s293_s1 + $0x10] sm:$0xff] }
   0x3   :  { %v187_v6 = vld [vmem:[%s293_s1 + $0x8] sm:$0xff]  ;;  %v186_v7 = vld [vmem:[%s293_s1] sm:$0xff] }
   0x4   :  { %v184_v8 = vld [vmem:[%s295_s0] sm:$0xff]  ;;  %v185_v9 = vld [vmem:[%s295_s0 + $0x8] sm:$0xff] }
   0x5   :  { %v222_v12 = vld [vmem:[%s294_s2] ss:$0 sm:$0xff]  ;;  %v212_v14 = vld [vmem:[%s296_s3 + $0x8] sm:$0xff]  }
   0x6   :  { %102 = vmatpush.bf16.msra.mxu0 %v192_v1  ;;  %215 = vmatpush.bf16.msra.mxu1 %v192_v1  ;;  %v195_v13 = vld [vmem:[%s296_s3] sm:$0xff]   ;;  %v200_v16 = vunpack.c.l.bf16 %v212_v14  ;;  %v201_v20 = vunpack.c.h.bf16 %v212_v14 }
   0x7   :  { %v196_v15 = vunpack.c.l.bf16 %v195_v13  ;;  %v197_v19 = vunpack.c.h.bf16 %v195_v13 }
   0xa   :  { %103 = vmatpush.bf16.msra.mxu0 %v191_v2  ;;  %216 = vmatpush.bf16.msra.mxu1 %v191_v2 }
   0xe   :  { %104 = vmatpush.bf16.msra.mxu0 %v190_v3  ;;  %217 = vmatpush.bf16.msra.mxu1 %v190_v3 }
  0x12   :  { %105 = vmatpush.bf16.msra.mxu0 %v189_v4  ;;  %218 = vmatpush.bf16.msra.mxu1 %v189_v4 }
  0x16   :  { %106 = vmatpush.bf16.msra.mxu0 %v188_v5  ;;  %219 = vmatpush.bf16.msra.mxu1 %v188_v5 }
  0x1a   :  { %107 = vmatpush.bf16.msra.mxu0 %v187_v6  ;;  %220 = vmatpush.bf16.msra.mxu1 %v187_v6 }
  0x1e   :  { %108 = vmatpush.bf16.msra.mxu0 %v186_v7  ;;  %221 = vmatpush.bf16.msra.mxu1 %v186_v7 }
  0x21   :  { %109 = vmatmul.bf16.vlgmr.msra.gmra.mxu0 %v184_v8  ;;  %114 = vmatmul.bf16.vlgmr.msra.gmra.mxu1 %v185_v9 }
  0x9e   :  { %v110_v10 = vpop.f32.mrf.mxu0  ;;  %v115_v11 = vpop.f32.mrf.mxu1 }
  0x9f   :  { %v111_v17 = vadd.f32 %v222_v12, %v110_v10  ;;  %v116_v18 = vadd.f32 %v222_v12, %v115_v11 }
  0xa1   :  { %v128_v25 = vadd.f32 %v196_v15, %v111_v17  ;;  %v130_v26 = vadd.f32 %v200_v16, %v116_v18 }
  0xa6   :  { %v112_v21 = vpop.f32.mrf.mxu0  ;;  %v117_v22 = vpop.f32.mrf.mxu1 }
  0xa7   :  { %v113_v23 = vadd.f32 %v222_v12, %v112_v21  ;;  %v118_v24 = vadd.f32 %v222_v12, %v117_v22 }
  0xa9   :  { %v129_v27 = vadd.f32 %v197_v19, %v113_v23  ;;  %v131_v28 = vadd.f32 %v201_v20, %v118_v24 }
  0xab   :  { %v205_v29 = vpack.c.bf16 %v129_v27, %v128_v25  ;;  %v210_v30 = vpack.c.bf16 %v131_v28, %v130_v26 }
  0xad   :  { %206 = vst [vmem:[%s297_s4] sm:$0xff] %v205_v29  }
  0xae   :  { %213 = vst [vmem:[%s297_s4 + $0x8] sm:$0xff] %v210_v30  }

// kernel: _lambda_.43
= control target key start
LH: loop header
LB: loop body
LE: loop exit
PB: predicated region body
PF: predicated region fallthrough
CT: control target
= control target key end

     0   :  { %v575_v6 = vmov 128.0   ;;  %s829_s0 = inlined_call_operand.vmem [shape: bf16[32,128], index: 0, kind: input, shape index: {}]   ;;  %s830_s1 = inlined_call_operand.vmem [shape: f32[1,128], index: 1, kind: input, shape index: {}]   ;;  %s831_s2 = inlined_call_operand.vmem [shape: f32[1,128], index: 2, kind: input, shape index: {}]   ;;  %s832_s3 = inlined_call_operand.vmem [shape: bf16[128,384], index: 3, kind: input, shape index: {}]   ;;  %s833_s4 = inlined_call_operand.vmem [shape: f32[1,384], index: 4, kind: input, shape index: {}]   ;;  %s834_s5 = inlined_call_operand.vmem [shape: bf16[32,384], index: 5, kind: output, shape index: {}]  }
   0x1   :  { %v552_v0 = vld [vmem:[%s829_s0 + $0x8] sm:$0xff]   ;;  %v535_v1 = vld [vmem:[%s829_s0] sm:$0xff]   ;;  %565 = vrcp.f32 %v575_v6  ;;  %v532_v30 = vld [vmem:[%s832_s3 + $0xb0] sm:$0xf0] }
   0x2   :  { %v540_v2 = vunpack.c.l.bf16 %v552_v0  ;;  %v536_v3 = vunpack.c.l.bf16 %v535_v1  ;;  %v541_v4 = vunpack.c.h.bf16 %v552_v0  ;;  %v537_v5 = vunpack.c.h.bf16 %v535_v1  ;;  %v498_v29 = vld [vmem:[%s832_s3 + $0xa8] sm:$0xf]  ;;  %v531_v31 = vld [vmem:[%s832_s3 + $0xac] sm:$0xf]  ;;  %v500_v33 = vld [vmem:[%s832_s3 + $0xb4] sm:$0xf0] }
   0x3   :  { %v499_v32 = vor.u32 %v532_v30, %v498_v29  ;;  %v506_v34 = vld [vmem:[%s832_s3 + $0xb0] sm:$0xf]  ;;  %v533_v35 = vld [vmem:[%s832_s3 + $0xb8] sm:$0xf0]  ;;  %v503_v36 = vor.u32 %v531_v31, %v500_v33  ;;  %v528_v40 = vld [vmem:[%s832_s3 + $0x94] sm:$0xf] }
   0x4   :  { %36 = vadd.xlane.f32.xlu1 %v540_v2  ;;  %32 = vadd.xlane.f32.xlu0 %v536_v3  ;;  %v507_v37 = vor.u32 %v533_v35, %v506_v34  ;;  %v486_v38 = vld [vmem:[%s832_s3 + $0x90] sm:$0xf]  ;;  %v529_v39 = vld [vmem:[%s832_s3 + $0x98] sm:$0xf0]  ;;  %v488_v42 = vld [vmem:[%s832_s3 + $0x9c] sm:$0xf0] }
   0x5   :  { %327 = vmatpush.bf16.msra.mxu0 %v499_v32  ;;  %554 = vmatpush.bf16.msra.mxu3 %v499_v32  ;;  %v487_v41 = vor.u32 %v529_v39, %v486_v38  ;;  %v494_v43 = vld [vmem:[%s832_s3 + $0x98] sm:$0xf]  ;;  %v530_v44 = vld [vmem:[%s832_s3 + $0xa0] sm:$0xf0]  ;;  %v491_v45 = vor.u32 %v528_v40, %v488_v42  ;;  %v525_v49 = vld [vmem:[%s832_s3 + $0x7c] sm:$0xf] }
   0x6   :  { %346 = vmatpush.bf16.msra.mxu1 %v503_v36  ;;  %365 = vmatpush.bf16.msra.mxu2 %v507_v37  ;;  %v495_v46 = vor.u32 %v530_v44, %v494_v43  ;;  %v474_v47 = vld [vmem:[%s832_s3 + $0x78] sm:$0xf]  ;;  %v526_v48 = vld [vmem:[%s832_s3 + $0x80] sm:$0xf0]  ;;  %v476_v51 = vld [vmem:[%s832_s3 + $0x84] sm:$0xf0] }
   0x7   :  { %v566_v7 = vpop.eup %565  ;;  %v475_v50 = vor.u32 %v526_v48, %v474_v47  ;;  %v482_v52 = vld [vmem:[%s832_s3 + $0x80] sm:$0xf]  ;;  %v527_v53 = vld [vmem:[%s832_s3 + $0x88] sm:$0xf0]  ;;  %v479_v54 = vor.u32 %v525_v49, %v476_v51  ;;  %v522_v58 = vld [vmem:[%s832_s3 + $0x64] sm:$0xf] }
   0x8   :  { %v41_v8 = vmul.f32 128.0, %v566_v7  ;;  %vm45_vm0 = vweird.f32 %v566_v7  ;;  %v483_v55 = vor.u32 %v527_v53, %v482_v52  ;;  %v462_v56 = vld [vmem:[%s832_s3 + $0x60] sm:$0xf]  ;;  %v523_v57 = vld [vmem:[%s832_s3 + $0x68] sm:$0xf0] }
   0x9   :  { %328 = vmatpush.bf16.msra.mxu0 %v487_v41  ;;  %555 = vmatpush.bf16.msra.mxu3 %v487_v41  ;;  %v463_v59 = vor.u32 %v523_v57, %v462_v56  ;;  %v464_v60 = vld [vmem:[%s832_s3 + $0x6c] sm:$0xf0]  ;;  %v470_v61 = vld [vmem:[%s832_s3 + $0x68] sm:$0xf]  ;;  %v524_v62 = vld [vmem:[%s832_s3 + $0x70] sm:$0xf0] }
   0xa   :  { %v42_v9 = vsub.f32 1.0, %v41_v8  ;;  %347 = vmatpush.bf16.msra.mxu1 %v491_v45  ;;  %366 = vmatpush.bf16.msra.mxu2 %v495_v46  ;;  %v467_v63 = vor.u32 %v522_v58, %v464_v60  ;;  %v471_v0 = vor.u32 %v524_v62, %v470_v61  ;;  %v450_v1 = vld [vmem:[%s832_s3 + $0x48] sm:$0xf]  ;;  %v458_v8 = vld [vmem:[%s832_s3 + $0x50] sm:$0xf] }
   0xb   :  { %v426_v30 = vld [vmem:[%s832_s3 + $0x18] sm:$0xf]  ;;  %v514_v31 = vld [vmem:[%s832_s3 + $0x20] sm:$0xf0]  ;;  %v513_v32 = vld [vmem:[%s832_s3 + $0x1c] sm:$0xf] }
   0xc   :  { %38 = vadd.xlane.f32.xlu1 %v541_v4  ;;  %34 = vadd.xlane.f32.xlu0 %v537_v5  ;;  %v43_v10 = vmul.f32 %v566_v7, %v42_v9  ;;  %v521_v9 = vld [vmem:[%s832_s3 + $0x58] sm:$0xf0]  ;;  %v427_v35 = vor.u32 %v514_v31, %v426_v30  ;;  %v428_v36 = vld [vmem:[%s832_s3 + $0x24] sm:$0xf0]  ;;  %v434_v37 = vld [vmem:[%s832_s3 + $0x20] sm:$0xf] }
   0xd   :  { %329 = vmatpush.bf16.msra.mxu0 %v475_v50  ;;  %556 = vmatpush.bf16.msra.mxu3 %v475_v50  ;;  %v515_v38 = vld [vmem:[%s832_s3 + $0x28] sm:$0xf0]  ;;  %v431_v41 = vor.u32 %v513_v32, %v428_v36  ;;  %v414_v43 = vld [vmem:[%s832_s3] sm:$0xf]  ;;  %v510_v45 = vld [vmem:[%s832_s3 + $0x4] sm:$0xf] }
   0xe   :  { %v44_v11 = vadd.f32 %v566_v7, %v43_v10  ;;  %348 = vmatpush.bf16.msra.mxu1 %v479_v54  ;;  %367 = vmatpush.bf16.msra.mxu2 %v483_v55  ;;  %v435_v42 = vor.u32 %v515_v38, %v434_v37  ;;  %v511_v44 = vld [vmem:[%s832_s3 + $0x8] sm:$0xf0]  ;;  %v416_v46 = vld [vmem:[%s832_s3 + $0xc] sm:$0xf0]  ;;  %v512_v47 = vld [vmem:[%s832_s3 + $0x10] sm:$0xf0] }
   0xf   :  { %v415_v51 = vor.u32 %v511_v44, %v414_v43  ;;  %v419_v54 = vor.u32 %v510_v45, %v416_v46 }
  0x10   :  { %v612_v12 = vsel %vm45_vm0, %v566_v7, %v44_v11  ;;  %v452_v7 = vld [vmem:[%s832_s3 + $0x54] sm:$0xf0] }
  0x11   :  { %330 = vmatpush.bf16.msra.mxu0 %v463_v59  ;;  %557 = vmatpush.bf16.msra.mxu3 %v463_v59 }
  0x12   :  { %349 = vmatpush.bf16.msra.mxu1 %v467_v63  ;;  %368 = vmatpush.bf16.msra.mxu2 %v471_v0 }
  0x77   :  { %v37_v13 = vpop.xlane.xlu1 %36  ;;  %v33_v14 = vpop.xlane.xlu0 %32 }
  0x78   :  { %v49_v15 = vmul.f32 %v612_v12, %v37_v13  ;;  %v47_v16 = vmul.f32 %v612_v12, %v33_v14  ;;  %v459_v14 = vor.u32 %v521_v9, %v458_v8 }
  0x7a   :  { %v616_v17 = vsub.f32 %v540_v2, %v49_v15  ;;  %v618_v18 = vsub.f32 %v536_v3, %v47_v16  ;;  %v520_v2 = vld [vmem:[%s832_s3 + $0x50] sm:$0xf0]  ;;  %v519_v3 = vld [vmem:[%s832_s3 + $0x4c] sm:$0xf]  ;;  %369 = vmatpush.bf16.msra.mxu2 %v459_v14 }
  0x7b   :  { %v451_v6 = vor.u32 %v520_v2, %v450_v1  ;;  %v455_v13 = vor.u32 %v519_v3, %v452_v7 }
  0x7c   :  { %v57_v19 = vmul.f32 %v616_v17, %v616_v17  ;;  %v55_v20 = vmul.f32 %v618_v18, %v618_v18 }
  0x7d   :  { %331 = vmatpush.bf16.msra.mxu0 %v451_v6  ;;  %558 = vmatpush.bf16.msra.mxu3 %v451_v6 }
  0x7e   :  { %63 = vadd.xlane.f32.xlu0 %v57_v19  ;;  %59 = vadd.xlane.f32.xlu2 %v55_v20  ;;  %v438_v19 = vld [vmem:[%s832_s3 + $0x30] sm:$0xf]  ;;  %v517_v20 = vld [vmem:[%s832_s3 + $0x38] sm:$0xf0] }
  0x7f   :  { %v39_v21 = vpop.xlane.xlu1 %38  ;;  %v35_v22 = vpop.xlane.xlu0 %34  ;;  %350 = vmatpush.bf16.msra.mxu1 %v455_v13  ;;  %v563_v13 = vld [vmem:[%s830_s1] ss:$0 sm:$0xff] }
  0x80   :  { %v50_v23 = vmul.f32 %v612_v12, %v39_v21  ;;  %v48_v24 = vmul.f32 %v612_v12, %v35_v22  ;;  %v516_v21 = vld [vmem:[%s832_s3 + $0x34] sm:$0xf]  ;;  %v440_v22 = vld [vmem:[%s832_s3 + $0x3c] sm:$0xf0] }
  0x82   :  { %v626_v25 = vsub.f32 %v541_v4, %v50_v23  ;;  %v628_v26 = vsub.f32 %v537_v5, %v48_v24  ;;  %v439_v23 = vor.u32 %v517_v20, %v438_v19  ;;  %v446_v24 = vld [vmem:[%s832_s3 + $0x38] sm:$0xf] }
  0x84   :  { %v58_v27 = vmul.f32 %v626_v25, %v626_v25  ;;  %v56_v28 = vmul.f32 %v628_v26, %v628_v26  ;;  %332 = vmatpush.bf16.msra.mxu0 %v439_v23  ;;  %559 = vmatpush.bf16.msra.mxu3 %v439_v23 }
  0x86   :  { %65 = vadd.xlane.f32.xlu1 %v58_v27  ;;  %61 = vadd.xlane.f32.xlu2 %v56_v28  ;;  %v518_v27 = vld [vmem:[%s832_s3 + $0x40] sm:$0xf0]  ;;  %v443_v28 = vor.u32 %v516_v21, %v440_v22  ;;  %v564_v22 = vld [vmem:[%s831_s2] ss:$0 sm:$0xff] }
  0x87   :  { %v447_v29 = vor.u32 %v518_v27, %v446_v24 }
  0x88   :  { %351 = vmatpush.bf16.msra.mxu1 %v443_v28  ;;  %333 = vmatpush.bf16.msra.mxu0 %v427_v35 }
  0x89   :  { %370 = vmatpush.bf16.msra.mxu2 %v447_v29  ;;  %560 = vmatpush.bf16.msra.mxu3 %v427_v35 }
  0x8c   :  { %352 = vmatpush.bf16.msra.mxu1 %v431_v41  ;;  %334 = vmatpush.bf16.msra.mxu0 %v415_v51 }
  0x8d   :  { %371 = vmatpush.bf16.msra.mxu2 %v435_v42  ;;  %561 = vmatpush.bf16.msra.mxu3 %v415_v51 }
  0x90   :  { %353 = vmatpush.bf16.msra.mxu1 %v419_v54 }
  0xf1   :  { %v60_v4 = vpop.xlane.xlu2 %59  ;;  %v64_v5 = vpop.xlane.xlu0 %63 }
  0xf2   :  { %v67_v10 = vmul.f32 %v60_v4, %v612_v12  ;;  %v69_v11 = vmul.f32 %v64_v5, %v612_v12 }
  0xf4   :  { %v726_v15 = vadd.f32 1e-05, %v67_v10  ;;  %v728_v16 = vadd.f32 1e-05, %v69_v11 }
  0xf6   :  { %567 = vrsqrt.f32 %v726_v15  ;;  %vm101_vm1 = vweird.f32 %v728_v16  ;;  %vm81_vm5 = vweird.f32 %v726_v15 }
  0xf7   :  { %569 = vrsqrt.f32 %v728_v16 }
  0xf9   :  { %v66_v33 = vpop.xlane.xlu1 %65  ;;  %v62_v34 = vpop.xlane.xlu2 %61 }
  0xfa   :  { %v70_v39 = vmul.f32 %v66_v33, %v612_v12  ;;  %v68_v40 = vmul.f32 %v62_v34, %v612_v12  ;;  %v422_v12 = vld [vmem:[%s832_s3 + $0x8] sm:$0xf] }
  0xfb   :  { %v423_v55 = vor.u32 %v512_v47, %v422_v12 }
  0xfc   :  { %v568_v48 = vpop.eup %567  ;;  %v74_v49 = vadd.f32 1e-05, %v70_v39  ;;  %v72_v50 = vadd.f32 1e-05, %v68_v40 }
  0xfd   :  { %v570_v52 = vpop.eup %569  ;;  %v76_v53 = vmul.f32 %v568_v48, %v726_v15  ;;  %372 = vmatpush.bf16.msra.mxu2 %v423_v55  ;;  %vm82_vm3 = vweird.f32 %v568_v48 }
  0xfe   :  { %v96_v56 = vmul.f32 %v570_v52, %v728_v16  ;;  %571 = vrsqrt.f32 %v74_v49  ;;  %vm102_vm2 = vweird.f32 %v570_v52  ;;  %vm83_vm6 = vmor %vm81_vm5, %vm82_vm3  ;;  %vm111_vm7 = vweird.f32 %v74_v49 }
  0xff   :  { %v77_v57 = vmul.f32 %v568_v48, %v76_v53  ;;  %573 = vrsqrt.f32 %v72_v50  ;;  %vm103_vm4 = vmor %vm101_vm1, %vm102_vm2  ;;  %vm91_vm11 = vweird.f32 %v72_v50 }
 0x100   :  { %v97_v58 = vmul.f32 %v570_v52, %v96_v56 }
 0x101   :  { %v78_v59 = vmul.f32 0.5, %v77_v57 }
 0x102   :  { %v98_v60 = vmul.f32 0.5, %v97_v58 }
 0x103   :  { %v79_v61 = vsub.f32 1.5, %v78_v59 }
 0x104   :  { %v572_v62 = vpop.eup %571  ;;  %v99_v63 = vsub.f32 1.5, %v98_v60 }
 0x105   :  { %v574_v0 = vpop.eup %573  ;;  %v106_v1 = vmul.f32 %v572_v62, %v74_v49  ;;  %v80_v2 = vmul.f32 %v568_v48, %v79_v61  ;;  %vm112_vm8 = vweird.f32 %v572_v62 }
 0x106   :  { %v100_v3 = vmul.f32 %v570_v52, %v99_v63  ;;  %v86_v4 = vmul.f32 %v574_v0, %v72_v50  ;;  %vm113_vm9 = vmor %vm111_vm7, %vm112_vm8  ;;  %vm92_vm10 = vweird.f32 %v574_v0 }
 0x107   :  { %v107_v5 = vmul.f32 %v572_v62, %v106_v1  ;;  %v84_v9 = vsel %vm83_vm6, %v568_v48, %v80_v2  ;;  %vm93_vm12 = vmor %vm91_vm11, %vm92_vm10 }
 0x108   :  { %v87_v6 = vmul.f32 %v574_v0, %v86_v4  ;;  %v104_v7 = vsel %vm103_vm4, %v570_v52, %v100_v3  ;;  %v115_v15 = vmul.f32 %v84_v9, %v618_v18 }
 0x109   :  { %v108_v8 = vmul.f32 0.5, %v107_v5  ;;  %v117_v14 = vmul.f32 %v104_v7, %v616_v17 }
 0x10a   :  { %v88_v10 = vmul.f32 0.5, %v87_v6  ;;  %v123_v28 = vmul.f32 %v563_v13, %v115_v15 }
 0x10b   :  { %v109_v11 = vsub.f32 1.5, %v108_v8  ;;  %v125_v23 = vmul.f32 %v563_v13, %v117_v14 }
 0x10c   :  { %v89_v16 = vsub.f32 1.5, %v88_v10  ;;  %v131_v32 = vadd.f32 %v564_v22, %v123_v28 }
 0x10d   :  { %v110_v19 = vmul.f32 %v572_v62, %v109_v11  ;;  %v133_v31 = vadd.f32 %v564_v22, %v125_v23 }
 0x10e   :  { %v90_v20 = vmul.f32 %v574_v0, %v89_v16 }
 0x10f   :  { %v114_v21 = vsel %vm113_vm9, %v572_v62, %v110_v19 }
 0x110   :  { %v118_v24 = vmul.f32 %v114_v21, %v626_v25  ;;  %v94_v27 = vsel %vm93_vm12, %v574_v0, %v90_v20  ;;  %v179_v25 = vld [vmem:[%s833_s4] sm:$0x7] }
 0x111   :  { %v116_v17 = vmul.f32 %v94_v27, %v628_v26  ;;  %v181_v26 = vperm.slane %v179_v25, 0  ;;  %v182_v38 = vperm.slane %v179_v25, 1  ;;  %v183_v44 = vperm.slane %v179_v25, 2 }
 0x112   :  { %v126_v29 = vmul.f32 %v563_v13, %v118_v24 }
 0x113   :  { %v124_v30 = vmul.f32 %v563_v13, %v116_v17 }
 0x114   :  { %v134_v18 = vadd.f32 %v564_v22, %v126_v29 }
 0x115   :  { %v132_v33 = vadd.f32 %v564_v22, %v124_v30 }
 0x116   :  { %v550_v34 = vpack.c.bf16 %v134_v18, %v133_v31 }
 0x117   :  { %v545_v35 = vpack.c.bf16 %v132_v33, %v131_v32 }
 0x118   :  { %553 = vst [vmem:[#allocation2 + $0x8] sm:$0xff] %v550_v34  }
 0x119   :  { %546 = vst [vmem:[#allocation2] sm:$0xff] %v545_v35  }
 0x11f   :  { %v509_v36 = vld [vmem:[#allocation2 + $0x8] sm:$0xff] }
 0x120   :  { %v508_v37 = vld [vmem:[#allocation2] sm:$0xff]  ;;  %340 = vmatmul.bf16.vlgmr.msra.gmra.mxu3 %v509_v36 }
 0x121   :  { %335 = vmatmul.bf16.vlgmr.msra.gmra.mxu0 %v508_v37  ;;  %354 = vmatmul.bf16.vlgmr.msra.gmra.mxu1 %v508_v37 }
 0x122   :  { %373 = vmatmul.bf16.vlgmr.msra.gmra.mxu2 %v508_v37 }
 0x131   :  { %359 = vmatmul.bf16.gmra.mxu1 %v509_v36 }
 0x132   :  { %378 = vmatmul.bf16.gmra.mxu2 %v509_v36 }
 0x19e   :  { %v336_v39 = vpop.f32.mrf.mxu0  ;;  %v355_v40 = vpop.f32.mrf.mxu1 }
 0x19f   :  { %v337_v41 = vadd.f32 %v336_v39, %v181_v26  ;;  %v356_v42 = vadd.f32 %v355_v40, %v182_v38 }
 0x1a1   :  { %v384_v43 = vpack.c.bf16 %v356_v42, %v337_v41 }
 0x1a3   :  { %392 = vst [vmem:[%s834_s5] sm:$0xff] %v384_v43  ;;  %v341_v52 = vpop.f32.mrf.mxu3 }
 0x1a4   :  { %v342_v56 = vadd.f32 %v341_v52, %v181_v26 }
 0x1a5   :  { %v374_v45 = vpop.f32.mrf.mxu2 }
 0x1a6   :  { %v375_v46 = vadd.f32 %v374_v45, %v183_v44  ;;  %v338_v12 = vpop.f32.mrf.mxu0  ;;  %v357_v47 = vpop.f32.mrf.mxu1 }
 0x1a7   :  { %v339_v48 = vadd.f32 %v338_v12, %v181_v26  ;;  %v358_v49 = vadd.f32 %v357_v47, %v182_v38 }
 0x1a8   :  { %v385_v50 = vpack.c.bf16 %v375_v46, %v375_v46 }
 0x1a9   :  { %v386_v51 = vpack.c.bf16 %v358_v49, %v339_v48 }
 0x1aa   :  { %393 = vst [vmem:[%s834_s5 + $0x8] sm:$0xf] %v385_v50 }
 0x1ab   :  { %394 = vst [vmem:[%s834_s5 + $0xc] sm:$0xff] %v386_v51  ;;  %v343_v60 = vpop.f32.mrf.mxu3 }
 0x1ac   :  { %v344_v0 = vadd.f32 %v343_v60, %v181_v26 }
 0x1ad   :  { %v376_v53 = vpop.f32.mrf.mxu2 }
 0x1ae   :  { %v377_v54 = vadd.f32 %v376_v53, %v183_v44  ;;  %v360_v55 = vpop.f32.mrf.mxu1 }
 0x1af   :  { %v361_v57 = vadd.f32 %v360_v55, %v182_v38 }
 0x1b0   :  { %v387_v58 = vpack.c.bf16 %v377_v54, %v377_v54 }
 0x1b1   :  { %v388_v59 = vpack.c.bf16 %v361_v57, %v342_v56 }
 0x1b2   :  { %395 = vst [vmem:[%s834_s5 + $0x14] sm:$0xf] %v387_v58 }
 0x1b3   :  { %396 = vst [vmem:[%s834_s5 + $0x18] sm:$0xff] %v388_v59 }
 0x1b5   :  { %v379_v61 = vpop.f32.mrf.mxu2 }
 0x1b6   :  { %v380_v62 = vadd.f32 %v379_v61, %v183_v44  ;;  %v362_v63 = vpop.f32.mrf.mxu1 }
 0x1b7   :  { %v363_v1 = vadd.f32 %v362_v63, %v182_v38 }
 0x1b8   :  { %v389_v2 = vpack.c.bf16 %v380_v62, %v380_v62 }
 0x1b9   :  { %v390_v3 = vpack.c.bf16 %v363_v1, %v344_v0 }
 0x1ba   :  { %397 = vst [vmem:[%s834_s5 + $0x20] sm:$0xf] %v389_v2 }
 0x1bb   :  { %398 = vst [vmem:[%s834_s5 + $0x24] sm:$0xff] %v390_v3 }
 0x1bd   :  { %v381_v4 = vpop.f32.mrf.mxu2 }
 0x1be   :  { %v382_v5 = vadd.f32 %v381_v4, %v183_v44 }
 0x1c0   :  { %v391_v6 = vpack.c.bf16 %v382_v5, %v382_v5 }
 0x1c2   :  { %399 = vst [vmem:[%s834_s5 + $0x2c] sm:$0xf] %v391_v6 }

// kernel: _lambda_.53
= control target key start
LH: loop header
LB: loop body
LE: loop exit
PB: predicated region body
PF: predicated region fallthrough
CT: control target
= control target key end

     0   :  { %v170_v6 = vmov 128.0   ;;  %s229_s0 = inlined_call_operand.vmem [shape: bf16[32,128], index: 0, kind: input, shape index: {}]   ;;  %s230_s1 = inlined_call_operand.vmem [shape: f32[1,128], index: 1, kind: input, shape index: {}]   ;;  %s231_s2 = inlined_call_operand.vmem [shape: f32[1,128], index: 2, kind: input, shape index: {}]   ;;  %s232_s3 = inlined_call_operand.vmem [shape: bf16[32,128], index: 3, kind: output, shape index: {}]  }
   0x1   :  { %v155_v0 = vld [vmem:[%s229_s0 + $0x8] sm:$0xff]   ;;  %v138_v1 = vld [vmem:[%s229_s0] sm:$0xff]   ;;  %160 = vrcp.f32 %v170_v6 }
   0x2   :  { %v143_v2 = vunpack.c.l.bf16 %v155_v0  ;;  %v139_v3 = vunpack.c.l.bf16 %v138_v1  ;;  %v144_v4 = vunpack.c.h.bf16 %v155_v0  ;;  %v140_v5 = vunpack.c.h.bf16 %v138_v1  ;;  %v158_v0 = vld [vmem:[%s230_s1] ss:$0 sm:$0xff] }
   0x4   :  { %26 = vadd.xlane.f32.xlu1 %v143_v2  ;;  %22 = vadd.xlane.f32.xlu0 %v139_v3 }
   0x7   :  { %v161_v7 = vpop.eup %160 }
   0x8   :  { %v31_v8 = vmul.f32 128.0, %v161_v7  ;;  %vm35_vm0 = vweird.f32 %v161_v7 }
   0xa   :  { %v32_v9 = vsub.f32 1.0, %v31_v8 }
   0xc   :  { %28 = vadd.xlane.f32.xlu1 %v144_v4  ;;  %24 = vadd.xlane.f32.xlu0 %v140_v5  ;;  %v33_v10 = vmul.f32 %v161_v7, %v32_v9 }
   0xe   :  { %v34_v11 = vadd.f32 %v161_v7, %v33_v10 }
  0x10   :  { %v36_v12 = vsel %vm35_vm0, %v161_v7, %v34_v11  ;;  %v159_v7 = vld [vmem:[%s231_s2] ss:$0 sm:$0xff] }
  0x77   :  { %v27_v13 = vpop.xlane.xlu1 %26  ;;  %v23_v14 = vpop.xlane.xlu0 %22 }
  0x78   :  { %v39_v15 = vmul.f32 %v36_v12, %v27_v13  ;;  %v37_v16 = vmul.f32 %v36_v12, %v23_v14 }
  0x7a   :  { %v197_v17 = vsub.f32 %v143_v2, %v39_v15  ;;  %v199_v18 = vsub.f32 %v139_v3, %v37_v16 }
  0x7c   :  { %v47_v19 = vmul.f32 %v197_v17, %v197_v17  ;;  %v45_v20 = vmul.f32 %v199_v18, %v199_v18 }
  0x7e   :  { %53 = vadd.xlane.f32.xlu0 %v47_v19  ;;  %49 = vadd.xlane.f32.xlu2 %v45_v20 }
  0x7f   :  { %v29_v21 = vpop.xlane.xlu1 %28  ;;  %v25_v22 = vpop.xlane.xlu0 %24 }
  0x80   :  { %v40_v23 = vmul.f32 %v36_v12, %v29_v21  ;;  %v38_v24 = vmul.f32 %v36_v12, %v25_v22 }
  0x82   :  { %v205_v25 = vsub.f32 %v144_v4, %v40_v23  ;;  %v207_v26 = vsub.f32 %v140_v5, %v38_v24 }
  0x84   :  { %v48_v27 = vmul.f32 %v205_v25, %v205_v25  ;;  %v46_v28 = vmul.f32 %v207_v26, %v207_v26 }
  0x86   :  { %55 = vadd.xlane.f32.xlu1 %v48_v27  ;;  %51 = vadd.xlane.f32.xlu2 %v46_v28 }
  0xf1   :  { %v50_v29 = vpop.xlane.xlu2 %49  ;;  %v54_v30 = vpop.xlane.xlu0 %53 }
  0xf2   :  { %v57_v31 = vmul.f32 %v50_v29, %v36_v12  ;;  %v59_v32 = vmul.f32 %v54_v30, %v36_v12 }
  0xf4   :  { %v61_v33 = vadd.f32 1e-05, %v57_v31  ;;  %v63_v34 = vadd.f32 1e-05, %v59_v32 }
  0xf6   :  { %162 = vrsqrt.f32 %v61_v33  ;;  %vm91_vm3 = vweird.f32 %v63_v34  ;;  %vm71_vm4 = vweird.f32 %v61_v33 }
  0xf7   :  { %164 = vrsqrt.f32 %v63_v34 }
  0xf9   :  { %v56_v35 = vpop.xlane.xlu1 %55  ;;  %v52_v36 = vpop.xlane.xlu2 %51 }
  0xfa   :  { %v60_v37 = vmul.f32 %v56_v35, %v36_v12  ;;  %v58_v38 = vmul.f32 %v52_v36, %v36_v12 }
  0xfc   :  { %v163_v39 = vpop.eup %162  ;;  %v64_v40 = vadd.f32 1e-05, %v60_v37  ;;  %v62_v41 = vadd.f32 1e-05, %v58_v38 }
  0xfd   :  { %v165_v42 = vpop.eup %164  ;;  %v66_v43 = vmul.f32 %v163_v39, %v61_v33  ;;  %vm72_vm2 = vweird.f32 %v163_v39 }
  0xfe   :  { %v86_v44 = vmul.f32 %v165_v42, %v63_v34  ;;  %166 = vrsqrt.f32 %v64_v40  ;;  %vm92_vm1 = vweird.f32 %v165_v42  ;;  %vm73_vm6 = vmor %vm71_vm4, %vm72_vm2  ;;  %vm101_vm9 = vweird.f32 %v64_v40 }
  0xff   :  { %v67_v45 = vmul.f32 %v163_v39, %v66_v43  ;;  %168 = vrsqrt.f32 %v62_v41  ;;  %vm93_vm5 = vmor %vm91_vm3, %vm92_vm1  ;;  %vm81_vm11 = vweird.f32 %v62_v41 }
 0x100   :  { %v87_v46 = vmul.f32 %v165_v42, %v86_v44 }
 0x101   :  { %v68_v47 = vmul.f32 0.5, %v67_v45 }
 0x102   :  { %v88_v48 = vmul.f32 0.5, %v87_v46 }
 0x103   :  { %v69_v49 = vsub.f32 1.5, %v68_v47 }
 0x104   :  { %v167_v50 = vpop.eup %166  ;;  %v89_v51 = vsub.f32 1.5, %v88_v48 }
 0x105   :  { %v169_v52 = vpop.eup %168  ;;  %v96_v53 = vmul.f32 %v167_v50, %v64_v40  ;;  %v70_v54 = vmul.f32 %v163_v39, %v69_v49  ;;  %vm102_vm7 = vweird.f32 %v167_v50 }
 0x106   :  { %v90_v55 = vmul.f32 %v165_v42, %v89_v51  ;;  %v76_v56 = vmul.f32 %v169_v52, %v62_v41  ;;  %vm82_vm8 = vweird.f32 %v169_v52  ;;  %vm103_vm10 = vmor %vm101_vm9, %vm102_vm7 }
 0x107   :  { %v97_v57 = vmul.f32 %v167_v50, %v96_v53  ;;  %v74_v61 = vsel %vm73_vm6, %v163_v39, %v70_v54  ;;  %vm83_vm12 = vmor %vm81_vm11, %vm82_vm8 }
 0x108   :  { %v77_v58 = vmul.f32 %v169_v52, %v76_v56  ;;  %v94_v59 = vsel %vm93_vm5, %v165_v42, %v90_v55  ;;  %v105_v3 = vmul.f32 %v74_v61, %v199_v18 }
 0x109   :  { %v98_v60 = vmul.f32 0.5, %v97_v57  ;;  %v107_v1 = vmul.f32 %v94_v59, %v197_v17 }
 0x10a   :  { %v78_v62 = vmul.f32 0.5, %v77_v58  ;;  %v113_v11 = vmul.f32 %v158_v0, %v105_v3 }
 0x10b   :  { %v99_v63 = vsub.f32 1.5, %v98_v60  ;;  %v115_v8 = vmul.f32 %v158_v0, %v107_v1 }
 0x10c   :  { %v79_v2 = vsub.f32 1.5, %v78_v62  ;;  %v121_v17 = vadd.f32 %v159_v7, %v113_v11 }
 0x10d   :  { %v100_v4 = vmul.f32 %v167_v50, %v99_v63  ;;  %v123_v15 = vadd.f32 %v159_v7, %v115_v8 }
 0x10e   :  { %v80_v5 = vmul.f32 %v169_v52, %v79_v2 }
 0x10f   :  { %v104_v6 = vsel %vm103_vm10, %v167_v50, %v100_v4 }
 0x110   :  { %v108_v9 = vmul.f32 %v104_v6, %v205_v25  ;;  %v84_v10 = vsel %vm83_vm12, %v169_v52, %v80_v5 }
 0x111   :  { %v106_v12 = vmul.f32 %v84_v10, %v207_v26 }
 0x112   :  { %v116_v13 = vmul.f32 %v158_v0, %v108_v9 }
 0x113   :  { %v114_v14 = vmul.f32 %v158_v0, %v106_v12 }
 0x114   :  { %v124_v16 = vadd.f32 %v159_v7, %v116_v13 }
 0x115   :  { %v122_v18 = vadd.f32 %v159_v7, %v114_v14 }
 0x116   :  { %v153_v19 = vpack.c.bf16 %v124_v16, %v123_v15 }
 0x117   :  { %v148_v20 = vpack.c.bf16 %v122_v18, %v121_v17 }
 0x118   :  { %156 = vst [vmem:[%s232_s3 + $0x8] sm:$0xff] %v153_v19  }
 0x119   :  { %149 = vst [vmem:[%s232_s3] sm:$0xff] %v148_v20  }

// kernel: _lambda_.46
= control target key start
LH: loop header
LB: loop body
LE: loop exit
PB: predicated region body
PF: predicated region fallthrough
CT: control target
= control target key end

     0   :  { %v836_v6 = vmov 128.0   ;;  %s1239_s0 = inlined_call_operand.vmem [shape: bf16[32,128], index: 0, kind: input, shape index: {}]   ;;  %s1240_s1 = inlined_call_operand.vmem [shape: f32[1,128], index: 1, kind: input, shape index: {}]   ;;  %s1241_s2 = inlined_call_operand.vmem [shape: f32[1,128], index: 2, kind: input, shape index: {}]   ;;  %s1242_s3 = inlined_call_operand.vmem [shape: bf16[128,512], index: 3, kind: input, shape index: {}]   ;;  %s1243_s4 = inlined_call_operand.vmem [shape: f32[1,512], index: 4, kind: input, shape index: {}]   ;;  %s1244_s5 = inlined_call_operand.vmem [shape: bf16[32,512], index: 5, kind: output, shape index: {}]  }
   0x1   :  { %v789_v0 = vld [vmem:[%s1239_s0 + $0x8] sm:$0xff]   ;;  %v772_v1 = vld [vmem:[%s1239_s0] sm:$0xff]   ;;  %794 = vrcp.f32 %v836_v6  ;;  %v769_v30 = vld [vmem:[%s1242_s3 + $0xec] sm:$0xf0] }
   0x2   :  { %v777_v2 = vunpack.c.l.bf16 %v789_v0  ;;  %v773_v3 = vunpack.c.l.bf16 %v772_v1  ;;  %v778_v4 = vunpack.c.h.bf16 %v789_v0  ;;  %v774_v5 = vunpack.c.h.bf16 %v772_v1  ;;  %v723_v29 = vld [vmem:[%s1242_s3 + $0xe0] sm:$0xf]  ;;  %v767_v31 = vld [vmem:[%s1242_s3 + $0xe4] sm:$0xf]  ;;  %v725_v33 = vld [vmem:[%s1242_s3 + $0xf0] sm:$0xf0] }
   0x3   :  { %v724_v32 = vor.u32 %v769_v30, %v723_v29  ;;  %v731_v34 = vld [vmem:[%s1242_s3 + $0xe8] sm:$0xf]  ;;  %v770_v35 = vld [vmem:[%s1242_s3 + $0xf4] sm:$0xf0]  ;;  %v728_v36 = vor.u32 %v767_v31, %v725_v33  ;;  %v768_v38 = vld [vmem:[%s1242_s3 + $0xec] sm:$0xf] }
   0x4   :  { %36 = vadd.xlane.f32.xlu1 %v777_v2  ;;  %32 = vadd.xlane.f32.xlu0 %v773_v3  ;;  %v732_v37 = vor.u32 %v770_v35, %v731_v34  ;;  %v733_v39 = vld [vmem:[%s1242_s3 + $0xf8] sm:$0xf0]  ;;  %v707_v41 = vld [vmem:[%s1242_s3 + $0xc0] sm:$0xf]  ;;  %v765_v42 = vld [vmem:[%s1242_s3 + $0xcc] sm:$0xf0] }
   0x5   :  { %361 = vmatpush.bf16.msra.mxu0 %v724_v32  ;;  %v736_v40 = vor.u32 %v768_v38, %v733_v39  ;;  %380 = vmatpush.bf16.msra.mxu1 %v728_v36  ;;  %v763_v43 = vld [vmem:[%s1242_s3 + $0xc4] sm:$0xf]  ;;  %v708_v44 = vor.u32 %v765_v42, %v707_v41  ;;  %v709_v45 = vld [vmem:[%s1242_s3 + $0xd0] sm:$0xf0]  ;;  %v715_v46 = vld [vmem:[%s1242_s3 + $0xc8] sm:$0xf] }
   0x6   :  { %399 = vmatpush.bf16.msra.mxu2 %v732_v37  ;;  %v766_v47 = vld [vmem:[%s1242_s3 + $0xd4] sm:$0xf0]  ;;  %v712_v48 = vor.u32 %v763_v43, %v709_v45  ;;  %v764_v50 = vld [vmem:[%s1242_s3 + $0xcc] sm:$0xf]  ;;  %v717_v51 = vld [vmem:[%s1242_s3 + $0xd8] sm:$0xf0] }
   0x7   :  { %v795_v7 = vpop.eup %794  ;;  %418 = vmatpush.bf16.msra.mxu3 %v736_v40  ;;  %v716_v49 = vor.u32 %v766_v47, %v715_v46  ;;  %v720_v52 = vor.u32 %v764_v50, %v717_v51  ;;  %v691_v53 = vld [vmem:[%s1242_s3 + $0xa0] sm:$0xf]  ;;  %v761_v54 = vld [vmem:[%s1242_s3 + $0xac] sm:$0xf0]  ;;  %v759_v55 = vld [vmem:[%s1242_s3 + $0xa4] sm:$0xf] }
   0x8   :  { %v41_v8 = vmul.f32 128.0, %v795_v7  ;;  %vm45_vm0 = vweird.f32 %v795_v7  ;;  %v692_v56 = vor.u32 %v761_v54, %v691_v53  ;;  %v693_v57 = vld [vmem:[%s1242_s3 + $0xb0] sm:$0xf0]  ;;  %v699_v58 = vld [vmem:[%s1242_s3 + $0xa8] sm:$0xf] }
   0x9   :  { %362 = vmatpush.bf16.msra.mxu0 %v708_v44  ;;  %381 = vmatpush.bf16.msra.mxu1 %v712_v48  ;;  %v762_v59 = vld [vmem:[%s1242_s3 + $0xb4] sm:$0xf0]  ;;  %v696_v60 = vor.u32 %v759_v55, %v693_v57  ;;  %v760_v62 = vld [vmem:[%s1242_s3 + $0xac] sm:$0xf]  ;;  %v701_v63 = vld [vmem:[%s1242_s3 + $0xb8] sm:$0xf0] }
   0xa   :  { %v42_v9 = vsub.f32 1.0, %v41_v8  ;;  %400 = vmatpush.bf16.msra.mxu2 %v716_v49  ;;  %v700_v61 = vor.u32 %v762_v59, %v699_v58  ;;  %v704_v0 = vor.u32 %v760_v62, %v701_v63  ;;  %v675_v1 = vld [vmem:[%s1242_s3 + $0x80] sm:$0xf]  ;;  %v683_v6 = vld [vmem:[%s1242_s3 + $0x88] sm:$0xf] }
   0xb   :  { %419 = vmatpush.bf16.msra.mxu3 %v720_v52  ;;  %v752_v31 = vld [vmem:[%s1242_s3 + $0x6c] sm:$0xf]  ;;  %v669_v32 = vld [vmem:[%s1242_s3 + $0x78] sm:$0xf0]  ;;  %v643_v36 = vld [vmem:[%s1242_s3 + $0x40] sm:$0xf] }
   0xc   :  { %38 = vadd.xlane.f32.xlu1 %v778_v4  ;;  %34 = vadd.xlane.f32.xlu0 %v774_v5  ;;  %v43_v10 = vmul.f32 %v795_v7, %v42_v9  ;;  %v672_v33 = vor.u32 %v752_v31, %v669_v32  ;;  %v749_v37 = vld [vmem:[%s1242_s3 + $0x4c] sm:$0xf0]  ;;  %v747_v38 = vld [vmem:[%s1242_s3 + $0x44] sm:$0xf]  ;;  %v645_v39 = vld [vmem:[%s1242_s3 + $0x50] sm:$0xf0] }
   0xd   :  { %363 = vmatpush.bf16.msra.mxu0 %v692_v56  ;;  %382 = vmatpush.bf16.msra.mxu1 %v696_v60  ;;  %v644_v40 = vor.u32 %v749_v37, %v643_v36  ;;  %v651_v41 = vld [vmem:[%s1242_s3 + $0x48] sm:$0xf]  ;;  %v750_v42 = vld [vmem:[%s1242_s3 + $0x54] sm:$0xf0]  ;;  %v748_v43 = vld [vmem:[%s1242_s3 + $0x4c] sm:$0xf]  ;;  %v648_v44 = vor.u32 %v747_v38, %v645_v39 }
   0xe   :  { %v44_v11 = vadd.f32 %v795_v7, %v43_v10  ;;  %401 = vmatpush.bf16.msra.mxu2 %v700_v61  ;;  %v756_v10 = vld [vmem:[%s1242_s3 + $0x8c] sm:$0xf]  ;;  %v652_v45 = vor.u32 %v750_v42, %v651_v41  ;;  %v653_v46 = vld [vmem:[%s1242_s3 + $0x58] sm:$0xf0]  ;;  %v627_v48 = vld [vmem:[%s1242_s3 + $0x20] sm:$0xf] }
   0xf   :  { %420 = vmatpush.bf16.msra.mxu3 %v704_v0  ;;  %v656_v47 = vor.u32 %v748_v43, %v653_v46  ;;  %v745_v49 = vld [vmem:[%s1242_s3 + $0x2c] sm:$0xf0]  ;;  %v743_v50 = vld [vmem:[%s1242_s3 + $0x24] sm:$0xf]  ;;  %v629_v54 = vld [vmem:[%s1242_s3 + $0x30] sm:$0xf0] }
  0x10   :  { %v873_v12 = vsel %vm45_vm0, %v795_v7, %v44_v11  ;;  %v758_v7 = vld [vmem:[%s1242_s3 + $0x94] sm:$0xf0]  ;;  %v685_v11 = vld [vmem:[%s1242_s3 + $0x98] sm:$0xf0]  ;;  %v628_v53 = vor.u32 %v745_v49, %v627_v48  ;;  %v635_v55 = vld [vmem:[%s1242_s3 + $0x28] sm:$0xf]  ;;  %v632_v59 = vor.u32 %v743_v50, %v629_v54 }
  0x11   :  { %v684_v9 = vor.u32 %v758_v7, %v683_v6  ;;  %v746_v56 = vld [vmem:[%s1242_s3 + $0x34] sm:$0xf0]  ;;  %v744_v61 = vld [vmem:[%s1242_s3 + $0x2c] sm:$0xf]  ;;  %v637_v62 = vld [vmem:[%s1242_s3 + $0x38] sm:$0xf0] }
  0x12   :  { %v636_v60 = vor.u32 %v746_v56, %v635_v55  ;;  %v611_v63 = vld [vmem:[%s1242_s3] sm:$0xf]  ;;  %v640_v0 = vor.u32 %v744_v61, %v637_v62  ;;  %v619_v7 = vld [vmem:[%s1242_s3 + $0x8] sm:$0xf] }
  0x13   :  { %402 = vmatpush.bf16.msra.mxu2 %v684_v9  ;;  %v792_v42 = vld [vmem:[%s1240_s1] ss:$0 sm:$0xff] }
  0x14   :  { %v793_v48 = vld [vmem:[%s1241_s2] ss:$0 sm:$0xff] }
  0x77   :  { %v37_v13 = vpop.xlane.xlu1 %36  ;;  %v33_v14 = vpop.xlane.xlu0 %32 }
  0x78   :  { %v49_v15 = vmul.f32 %v873_v12, %v37_v13  ;;  %v47_v16 = vmul.f32 %v873_v12, %v33_v14  ;;  %v688_v13 = vor.u32 %v756_v10, %v685_v11  ;;  %v659_v14 = vld [vmem:[%s1242_s3 + $0x60] sm:$0xf]  ;;  %v742_v11 = vld [vmem:[%s1242_s3 + $0x14] sm:$0xf0] }
  0x7a   :  { %v877_v17 = vsub.f32 %v777_v2, %v49_v15  ;;  %v879_v18 = vsub.f32 %v773_v3, %v47_v16  ;;  %v757_v2 = vld [vmem:[%s1242_s3 + $0x8c] sm:$0xf0]  ;;  %v755_v3 = vld [vmem:[%s1242_s3 + $0x84] sm:$0xf]  ;;  %421 = vmatpush.bf16.msra.mxu3 %v688_v13  ;;  %v740_v13 = vld [vmem:[%s1242_s3 + $0xc] sm:$0xf] }
  0x7b   :  { %v753_v15 = vld [vmem:[%s1242_s3 + $0x6c] sm:$0xf0]  ;;  %v751_v16 = vld [vmem:[%s1242_s3 + $0x64] sm:$0xf] }
  0x7c   :  { %v57_v19 = vmul.f32 %v877_v17, %v877_v17  ;;  %v55_v20 = vmul.f32 %v879_v18, %v879_v18 }
  0x7e   :  { %63 = vadd.xlane.f32.xlu0 %v57_v19  ;;  %59 = vadd.xlane.f32.xlu2 %v55_v20 }
  0x7f   :  { %v39_v21 = vpop.xlane.xlu1 %38  ;;  %v35_v22 = vpop.xlane.xlu0 %34  ;;  %422 = vmatpush.bf16.msra.mxu3 %v672_v33 }
  0x80   :  { %v50_v23 = vmul.f32 %v873_v12, %v39_v21  ;;  %v48_v24 = vmul.f32 %v873_v12, %v35_v22  ;;  %v660_v21 = vor.u32 %v753_v15, %v659_v14  ;;  %v661_v22 = vld [vmem:[%s1242_s3 + $0x70] sm:$0xf0]  ;;  %v621_v14 = vld [vmem:[%s1242_s3 + $0x18] sm:$0xf0] }
  0x81   :  { %v664_v29 = vor.u32 %v751_v16, %v661_v22 }
  0x82   :  { %v887_v25 = vsub.f32 %v778_v4, %v50_v23  ;;  %v889_v26 = vsub.f32 %v774_v5, %v48_v24  ;;  %v676_v4 = vor.u32 %v757_v2, %v675_v1  ;;  %v677_v5 = vld [vmem:[%s1242_s3 + $0x90] sm:$0xf0]  ;;  %v667_v23 = vld [vmem:[%s1242_s3 + $0x68] sm:$0xf]  ;;  %v754_v24 = vld [vmem:[%s1242_s3 + $0x74] sm:$0xf0] }
  0x83   :  { %v680_v8 = vor.u32 %v755_v3, %v677_v5  ;;  %v668_v30 = vor.u32 %v754_v24, %v667_v23  ;;  %423 = vmatpush.bf16.msra.mxu3 %v656_v47  ;;  %v739_v1 = vld [vmem:[%s1242_s3 + $0x4] sm:$0xf]  ;;  %v613_v2 = vld [vmem:[%s1242_s3 + $0x10] sm:$0xf0] }
  0x84   :  { %v58_v27 = vmul.f32 %v887_v25, %v887_v25  ;;  %v56_v28 = vmul.f32 %v889_v26, %v889_v26  ;;  %364 = vmatpush.bf16.msra.mxu0 %v676_v4  ;;  %v616_v10 = vor.u32 %v739_v1, %v613_v2 }
  0x85   :  { %383 = vmatpush.bf16.msra.mxu1 %v680_v8  ;;  %403 = vmatpush.bf16.msra.mxu2 %v668_v30 }
  0x86   :  { %65 = vadd.xlane.f32.xlu1 %v58_v27  ;;  %61 = vadd.xlane.f32.xlu2 %v56_v28 }
  0x87   :  { %424 = vmatpush.bf16.msra.mxu3 %v640_v0 }
  0x88   :  { %365 = vmatpush.bf16.msra.mxu0 %v660_v21  ;;  %v624_v21 = vor.u32 %v740_v13, %v621_v14 }
  0x89   :  { %384 = vmatpush.bf16.msra.mxu1 %v664_v29  ;;  %404 = vmatpush.bf16.msra.mxu2 %v652_v45 }
  0x8b   :  { %425 = vmatpush.bf16.msra.mxu3 %v624_v21 }
  0x8c   :  { %366 = vmatpush.bf16.msra.mxu0 %v644_v40 }
  0x8d   :  { %385 = vmatpush.bf16.msra.mxu1 %v648_v44  ;;  %405 = vmatpush.bf16.msra.mxu2 %v636_v60 }
  0x90   :  { %367 = vmatpush.bf16.msra.mxu0 %v628_v53 }
  0x91   :  { %386 = vmatpush.bf16.msra.mxu1 %v632_v59 }
  0x95   :  { %387 = vmatpush.bf16.msra.mxu1 %v616_v10 }
  0xf1   :  { %v60_v19 = vpop.xlane.xlu2 %59  ;;  %v64_v20 = vpop.xlane.xlu0 %63 }
  0xf2   :  { %v67_v27 = vmul.f32 %v60_v19, %v873_v12  ;;  %v69_v28 = vmul.f32 %v64_v20, %v873_v12  ;;  %v620_v19 = vor.u32 %v742_v11, %v619_v7 }
  0xf4   :  { %v1017_v34 = vadd.f32 1e-05, %v67_v27  ;;  %v1019_v35 = vadd.f32 1e-05, %v69_v28  ;;  %406 = vmatpush.bf16.msra.mxu2 %v620_v19 }
  0xf6   :  { %796 = vrsqrt.f32 %v1017_v34  ;;  %vm101_vm1 = vweird.f32 %v1019_v35  ;;  %vm81_vm5 = vweird.f32 %v1017_v34 }
  0xf7   :  { %798 = vrsqrt.f32 %v1019_v35 }
  0xf9   :  { %v66_v51 = vpop.xlane.xlu1 %65  ;;  %v62_v52 = vpop.xlane.xlu2 %61 }
  0xfa   :  { %v70_v57 = vmul.f32 %v66_v51, %v873_v12  ;;  %v68_v58 = vmul.f32 %v62_v52, %v873_v12  ;;  %v741_v12 = vld [vmem:[%s1242_s3 + $0xc] sm:$0xf0] }
  0xfb   :  { %v612_v6 = vor.u32 %v741_v12, %v611_v63 }
  0xfc   :  { %v797_v3 = vpop.eup %796  ;;  %v74_v4 = vadd.f32 1e-05, %v70_v57  ;;  %v72_v5 = vadd.f32 1e-05, %v68_v58 }
  0xfd   :  { %v799_v8 = vpop.eup %798  ;;  %v76_v9 = vmul.f32 %v797_v3, %v1017_v34  ;;  %368 = vmatpush.bf16.msra.mxu0 %v612_v6  ;;  %vm82_vm3 = vweird.f32 %v797_v3 }
  0xfe   :  { %v96_v15 = vmul.f32 %v799_v8, %v1019_v35  ;;  %800 = vrsqrt.f32 %v74_v4  ;;  %vm102_vm2 = vweird.f32 %v799_v8  ;;  %vm83_vm6 = vmor %vm81_vm5, %vm82_vm3  ;;  %vm111_vm7 = vweird.f32 %v74_v4 }
  0xff   :  { %v77_v16 = vmul.f32 %v797_v3, %v76_v9  ;;  %802 = vrsqrt.f32 %v72_v5  ;;  %vm103_vm4 = vmor %vm101_vm1, %vm102_vm2  ;;  %vm91_vm11 = vweird.f32 %v72_v5 }
 0x100   :  { %v97_v20 = vmul.f32 %v799_v8, %v96_v15 }
 0x101   :  { %v78_v22 = vmul.f32 0.5, %v77_v16 }
 0x102   :  { %v98_v23 = vmul.f32 0.5, %v97_v20 }
 0x103   :  { %v79_v24 = vsub.f32 1.5, %v78_v22 }
 0x104   :  { %v801_v27 = vpop.eup %800  ;;  %v99_v28 = vsub.f32 1.5, %v98_v23 }
 0x105   :  { %v803_v29 = vpop.eup %802  ;;  %v106_v30 = vmul.f32 %v801_v27, %v74_v4  ;;  %v80_v31 = vmul.f32 %v797_v3, %v79_v24  ;;  %vm112_vm8 = vweird.f32 %v801_v27 }
 0x106   :  { %v100_v32 = vmul.f32 %v799_v8, %v99_v28  ;;  %v86_v33 = vmul.f32 %v803_v29, %v72_v5  ;;  %vm113_vm9 = vmor %vm111_vm7, %vm112_vm8  ;;  %vm92_vm10 = vweird.f32 %v803_v29 }
 0x107   :  { %v107_v36 = vmul.f32 %v801_v27, %v106_v30  ;;  %v84_v35 = vsel %vm83_vm6, %v797_v3, %v80_v31  ;;  %vm93_vm12 = vmor %vm91_vm11, %vm92_vm10 }
 0x108   :  { %v87_v37 = vmul.f32 %v803_v29, %v86_v33  ;;  %v104_v38 = vsel %vm103_vm4, %v799_v8, %v100_v32  ;;  %v115_v34 = vmul.f32 %v84_v35, %v879_v18 }
 0x109   :  { %v108_v39 = vmul.f32 0.5, %v107_v36  ;;  %v117_v43 = vmul.f32 %v104_v38, %v877_v17 }
 0x10a   :  { %v88_v40 = vmul.f32 0.5, %v87_v37  ;;  %v123_v52 = vmul.f32 %v792_v42, %v115_v34 }
 0x10b   :  { %v109_v41 = vsub.f32 1.5, %v108_v39  ;;  %v125_v49 = vmul.f32 %v792_v42, %v117_v43 }
 0x10c   :  { %v89_v44 = vsub.f32 1.5, %v88_v40  ;;  %v131_v56 = vadd.f32 %v793_v48, %v123_v52 }
 0x10d   :  { %v110_v45 = vmul.f32 %v801_v27, %v109_v41  ;;  %v133_v55 = vadd.f32 %v793_v48, %v125_v49 }
 0x10e   :  { %v90_v46 = vmul.f32 %v803_v29, %v89_v44 }
 0x10f   :  { %v114_v47 = vsel %vm113_vm9, %v801_v27, %v110_v45 }
 0x110   :  { %v118_v50 = vmul.f32 %v114_v47, %v887_v25  ;;  %v94_v51 = vsel %vm93_vm12, %v803_v29, %v90_v46 }
 0x111   :  { %v116_v17 = vmul.f32 %v94_v51, %v889_v26  ;;  %v179_v26 = vld [vmem:[%s1243_s4] sm:$0xf] }
 0x112   :  { %v126_v53 = vmul.f32 %v792_v42, %v118_v50  ;;  %v1114_v61 = vperm.slane %v179_v26, 0  ;;  %v1116_v62 = vperm.slane %v179_v26, 1  ;;  %v1120_v4 = vperm.slane %v179_v26, 2 }
 0x113   :  { %v124_v54 = vmul.f32 %v792_v42, %v116_v17  ;;  %v1122_v5 = vperm.slane %v179_v26, 3 }
 0x114   :  { %v134_v18 = vadd.f32 %v793_v48, %v126_v53 }
 0x115   :  { %v132_v57 = vadd.f32 %v793_v48, %v124_v54 }
 0x116   :  { %v787_v58 = vpack.c.bf16 %v134_v18, %v133_v55 }
 0x117   :  { %v782_v59 = vpack.c.bf16 %v132_v57, %v131_v56 }
 0x118   :  { %790 = vst [vmem:[#allocation2 + $0x8] sm:$0xff] %v787_v58  }
 0x119   :  { %783 = vst [vmem:[#allocation2] sm:$0xff] %v782_v59  }
 0x11f   :  { %v738_v25 = vld [vmem:[#allocation2 + $0x8] sm:$0xff] }
 0x120   :  { %v737_v60 = vld [vmem:[#allocation2] sm:$0xff] }
 0x121   :  { %369 = vmatmul.bf16.vlgmr.msra.gmra.mxu0 %v737_v60  ;;  %388 = vmatmul.bf16.vlgmr.msra.gmra.mxu1 %v737_v60 }
 0x122   :  { %407 = vmatmul.bf16.vlgmr.msra.gmra.mxu2 %v737_v60  ;;  %426 = vmatmul.bf16.vlgmr.msra.gmra.mxu3 %v737_v60 }
 0x131   :  { %374 = vmatmul.bf16.gmra.mxu0 %v738_v25  ;;  %393 = vmatmul.bf16.gmra.mxu1 %v738_v25 }
 0x132   :  { %412 = vmatmul.bf16.gmra.mxu2 %v738_v25  ;;  %431 = vmatmul.bf16.gmra.mxu3 %v738_v25 }
 0x19e   :  { %v370_v63 = vpop.f32.mrf.mxu0  ;;  %v389_v0 = vpop.f32.mrf.mxu1 }
 0x19f   :  { %v371_v12 = vadd.f32 %v370_v63, %v1114_v61  ;;  %v390_v1 = vadd.f32 %v389_v0, %v1116_v62 }
 0x1a1   :  { %v453_v2 = vmul.f32 %v371_v12, %v371_v12  ;;  %v454_v3 = vmul.f32 %v390_v1, %v390_v1  ;;  %v437_v45 = vmul.f32 0.5, %v371_v12  ;;  %v438_v46 = vmul.f32 0.5, %v390_v1 }
 0x1a3   :  { %v469_v6 = vmul.f32 %v453_v2, %v371_v12  ;;  %v470_v7 = vmul.f32 %v454_v3, %v390_v1 }
 0x1a5   :  { %v485_v8 = vmul.f32 0.044715, %v469_v6  ;;  %v486_v9 = vmul.f32 0.044715, %v470_v7  ;;  %v408_v10 = vpop.f32.mrf.mxu2  ;;  %v427_v11 = vpop.f32.mrf.mxu3 }
 0x1a6   :  { %v409_v13 = vadd.f32 %v408_v10, %v1120_v4  ;;  %v428_v14 = vadd.f32 %v427_v11, %v1122_v5  ;;  %v372_v15 = vpop.f32.mrf.mxu0  ;;  %v391_v16 = vpop.f32.mrf.mxu1 }
 0x1a7   :  { %v501_v19 = vadd.f32 %v485_v8, %v371_v12  ;;  %v502_v20 = vadd.f32 %v486_v9, %v390_v1  ;;  %v373_v21 = vadd.f32 %v372_v15, %v1114_v61  ;;  %v1128_v22 = vadd.f32 %v391_v16, %v1116_v62 }
 0x1a8   :  { %v455_v23 = vmul.f32 %v409_v13, %v409_v13  ;;  %v456_v24 = vmul.f32 %v428_v14, %v428_v14  ;;  %v439_v54 = vmul.f32 0.5, %v409_v13  ;;  %v440_v12 = vmul.f32 0.5, %v428_v14 }
 0x1a9   :  { %v517_v27 = vmul.f32 0.7978846, %v501_v19  ;;  %v518_v28 = vmul.f32 0.7978846, %v502_v20  ;;  %v457_v29 = vmul.f32 %v373_v21, %v373_v21  ;;  %v458_v32 = vmul.f32 %v1128_v22, %v1128_v22 }
 0x1aa   :  { %v471_v30 = vmul.f32 %v455_v23, %v409_v13  ;;  %v472_v31 = vmul.f32 %v456_v24, %v428_v14  ;;  %v441_v9 = vmul.f32 0.5, %v373_v21 }
 0x1ab   :  { %804 = vtanh.f32 %v517_v27  ;;  %v473_v33 = vmul.f32 %v457_v29, %v373_v21  ;;  %v474_v38 = vmul.f32 %v458_v32, %v1128_v22 }
 0x1ac   :  { %806 = vtanh.f32 %v518_v28  ;;  %v487_v36 = vmul.f32 0.044715, %v471_v30  ;;  %v488_v37 = vmul.f32 0.044715, %v472_v31 }
 0x1ad   :  { %v489_v39 = vmul.f32 0.044715, %v473_v33  ;;  %v410_v35 = vpop.f32.mrf.mxu2  ;;  %v429_v40 = vpop.f32.mrf.mxu3  ;;  %v490_v43 = vmul.f32 0.044715, %v474_v38 }
 0x1ae   :  { %v503_v41 = vadd.f32 %v487_v36, %v409_v13  ;;  %v504_v42 = vadd.f32 %v488_v37, %v428_v14  ;;  %v1134_v44 = vadd.f32 %v410_v35, %v1120_v4  ;;  %v375_v34 = vpop.f32.mrf.mxu0  ;;  %v1137_v48 = vadd.f32 %v429_v40, %v1122_v5  ;;  %v394_v49 = vpop.f32.mrf.mxu1 }
 0x1af   :  { %v505_v47 = vadd.f32 %v489_v39, %v373_v21  ;;  %v506_v52 = vadd.f32 %v490_v43, %v1128_v22  ;;  %v1141_v17 = vadd.f32 %v375_v34, %v1114_v61  ;;  %v1148_v60 = vadd.f32 %v394_v49, %v1116_v62 }
 0x1b0   :  { %v519_v50 = vmul.f32 0.7978846, %v503_v41  ;;  %v520_v51 = vmul.f32 0.7978846, %v504_v42  ;;  %v459_v18 = vmul.f32 %v1134_v44, %v1134_v44  ;;  %v460_v56 = vmul.f32 %v1137_v48, %v1137_v48 }
 0x1b1   :  { %v805_v53 = vpop.eup %804  ;;  %v521_v55 = vmul.f32 0.7978846, %v505_v47  ;;  %v522_v59 = vmul.f32 0.7978846, %v506_v52  ;;  %v461_v1 = vmul.f32 %v1141_v17, %v1141_v17  ;;  %v462_v11 = vmul.f32 %v1148_v60, %v1148_v60 }
 0x1b2   :  { %v807_v57 = vpop.eup %806  ;;  %v549_v58 = vadd.f32 1.0, %v805_v53  ;;  %808 = vtanh.f32 %v519_v50  ;;  %v475_v26 = vmul.f32 %v459_v18, %v1134_v44  ;;  %v476_v63 = vmul.f32 %v460_v56, %v1137_v48 }
 0x1b3   :  { %v550_v25 = vadd.f32 1.0, %v807_v57  ;;  %810 = vtanh.f32 %v520_v51  ;;  %v477_v10 = vmul.f32 %v461_v1, %v1141_v17  ;;  %v442_v21 = vmul.f32 0.5, %v1128_v22 }
 0x1b4   :  { %v565_v0 = vmul.f32 %v549_v58, %v437_v45  ;;  %812 = vtanh.f32 %v521_v55  ;;  %v491_v3 = vmul.f32 0.044715, %v475_v26  ;;  %v492_v6 = vmul.f32 0.044715, %v476_v63 }
 0x1b5   :  { %v566_v2 = vmul.f32 %v550_v25, %v438_v46  ;;  %814 = vtanh.f32 %v522_v59  ;;  %v413_v7 = vpop.f32.mrf.mxu2  ;;  %v432_v8 = vpop.f32.mrf.mxu3  ;;  %v493_v24 = vmul.f32 0.044715, %v477_v10  ;;  %v478_v27 = vmul.f32 %v462_v11, %v1148_v60 }
 0x1b6   :  { %v1158_v13 = vadd.f32 %v413_v7, %v1120_v4  ;;  %v377_v14 = vpop.f32.mrf.mxu0  ;;  %v507_v16 = vadd.f32 %v491_v3, %v1134_v44  ;;  %v508_v19 = vadd.f32 %v492_v6, %v1137_v48  ;;  %v1163_v20 = vadd.f32 %v432_v8, %v1122_v5  ;;  %v396_v50 = vpop.f32.mrf.mxu1 }
 0x1b7   :  { %v581_v15 = vpack.c.bf16 %v566_v2, %v565_v0  ;;  %v1173_v33 = vadd.f32 %v377_v14, %v1114_v61  ;;  %v509_v22 = vadd.f32 %v493_v24, %v1141_v17  ;;  %v494_v38 = vmul.f32 0.044715, %v478_v27 }
 0x1b8   :  { %v809_v23 = vpop.eup %808  ;;  %v463_v28 = vmul.f32 %v1158_v13, %v1158_v13  ;;  %v523_v31 = vmul.f32 0.7978846, %v507_v16  ;;  %v524_v32 = vmul.f32 0.7978846, %v508_v19  ;;  %v464_v42 = vmul.f32 %v1163_v20, %v1163_v20 }
 0x1b9   :  { %v811_v29 = vpop.eup %810  ;;  %589 = vst [vmem:[%s1244_s5] sm:$0xff] %v581_v15  ;;  %v551_v30 = vadd.f32 1.0, %v809_v23  ;;  %v525_v45 = vmul.f32 0.7978846, %v509_v22  ;;  %v510_v46 = vadd.f32 %v494_v38, %v1148_v60  ;;  %v465_v56 = vmul.f32 %v1173_v33, %v1173_v33 }
 0x1ba   :  { %v813_v36 = vpop.eup %812  ;;  %v552_v37 = vadd.f32 1.0, %v811_v29  ;;  %v479_v39 = vmul.f32 %v463_v28, %v1158_v13  ;;  %816 = vtanh.f32 %v523_v31  ;;  %v480_v49 = vmul.f32 %v464_v42, %v1163_v20 }
 0x1bb   :  { %v815_v35 = vpop.eup %814  ;;  %v567_v40 = vmul.f32 %v551_v30, %v439_v54  ;;  %v553_v41 = vadd.f32 1.0, %v813_v36  ;;  %818 = vtanh.f32 %v524_v32  ;;  %v526_v54 = vmul.f32 0.7978846, %v510_v46 }
 0x1bc   :  { %v568_v43 = vmul.f32 %v552_v37, %v440_v12  ;;  %v554_v34 = vadd.f32 1.0, %v815_v35  ;;  %v495_v47 = vmul.f32 0.044715, %v479_v39  ;;  %820 = vtanh.f32 %v525_v45 }
 0x1bd   :  { %v569_v61 = vmul.f32 %v553_v41, %v441_v9  ;;  %v415_v51 = vpop.f32.mrf.mxu2  ;;  %v496_v18 = vmul.f32 0.044715, %v480_v49  ;;  %v434_v57 = vpop.f32.mrf.mxu3  ;;  %v443_v59 = vmul.f32 0.5, %v1134_v44  ;;  %v1189_v25 = vadd.f32 %v396_v50, %v1116_v62 }
 0x1be   :  { %v582_v52 = vpack.c.bf16 %v568_v43, %v567_v40  ;;  %v570_v53 = vmul.f32 %v554_v34, %v442_v21  ;;  %v511_v55 = vadd.f32 %v495_v47, %v1158_v13  ;;  %v1192_v26 = vadd.f32 %v415_v51, %v1120_v4 }
 0x1bf   :  { %822 = vtanh.f32 %v526_v54  ;;  %v512_v12 = vadd.f32 %v496_v18, %v1163_v20  ;;  %v481_v1 = vmul.f32 %v465_v56, %v1173_v33  ;;  %v444_v44 = vmul.f32 0.5, %v1137_v48 }
 0x1c0   :  { %590 = vst [vmem:[%s1244_s5 + $0x8] sm:$0xff] %v582_v52  ;;  %v583_v58 = vpack.c.bf16 %v570_v53, %v569_v61  ;;  %v817_v63 = vpop.eup %816  ;;  %v527_v0 = vmul.f32 0.7978846, %v511_v55  ;;  %v466_v62 = vmul.f32 %v1189_v25, %v1189_v25  ;;  %v1203_v4 = vadd.f32 %v434_v57, %v1122_v5 }
 0x1c1   :  { %v819_v2 = vpop.eup %818  ;;  %v555_v3 = vadd.f32 1.0, %v817_v63  ;;  %v528_v7 = vmul.f32 0.7978846, %v512_v12  ;;  %v497_v8 = vmul.f32 0.044715, %v481_v1  ;;  %v445_v11 = vmul.f32 0.5, %v1141_v17 }
 0x1c2   :  { %591 = vst [vmem:[%s1244_s5 + $0x10] sm:$0xff] %v583_v58  ;;  %v556_v6 = vadd.f32 1.0, %v819_v2  ;;  %824 = vtanh.f32 %v527_v0  ;;  %v821_v9 = vpop.eup %820  ;;  %v482_v14 = vmul.f32 %v466_v62, %v1189_v25  ;;  %v467_v15 = vmul.f32 %v1192_v26, %v1192_v26 }
 0x1c3   :  { %v571_v10 = vmul.f32 %v555_v3, %v443_v59  ;;  %v557_v16 = vadd.f32 1.0, %v821_v9  ;;  %826 = vtanh.f32 %v528_v7  ;;  %v513_v19 = vadd.f32 %v497_v8, %v1173_v33 }
 0x1c4   :  { %v572_v48 = vmul.f32 %v556_v6, %v444_v44  ;;  %v498_v5 = vmul.f32 0.044715, %v482_v14  ;;  %v483_v23 = vmul.f32 %v467_v15, %v1192_v26  ;;  %v468_v21 = vmul.f32 %v1203_v4, %v1203_v4 }
 0x1c5   :  { %v823_v24 = vpop.eup %822  ;;  %v573_v28 = vmul.f32 %v557_v16, %v445_v11  ;;  %v446_v17 = vmul.f32 0.5, %v1148_v60  ;;  %v529_v29 = vmul.f32 0.7978846, %v513_v19  ;;  %v447_v22 = vmul.f32 0.5, %v1158_v13 }
 0x1c6   :  { %v584_v27 = vpack.c.bf16 %v572_v48, %v571_v10  ;;  %v558_v30 = vadd.f32 1.0, %v823_v24  ;;  %v514_v31 = vadd.f32 %v498_v5, %v1189_v25  ;;  %v499_v32 = vmul.f32 0.044715, %v483_v23 }
 0x1c7   :  { %v484_v36 = vmul.f32 %v468_v21, %v1203_v4  ;;  %828 = vtanh.f32 %v529_v29  ;;  %v448_v41 = vmul.f32 0.5, %v1163_v20  ;;  %v449_v20 = vmul.f32 0.5, %v1173_v33 }
 0x1c8   :  { %v825_v37 = vpop.eup %824  ;;  %592 = vst [vmem:[%s1244_s5 + $0x18] sm:$0xff] %v584_v27  ;;  %v574_v38 = vmul.f32 %v558_v30, %v446_v17  ;;  %v530_v35 = vmul.f32 0.7978846, %v514_v31  ;;  %v515_v60 = vadd.f32 %v499_v32, %v1192_v26  ;;  %v450_v54 = vmul.f32 0.5, %v1189_v25 }
 0x1c9   :  { %v559_v39 = vadd.f32 1.0, %v825_v37  ;;  %v827_v40 = vpop.eup %826  ;;  %v500_v42 = vmul.f32 0.044715, %v484_v36  ;;  %v451_v57 = vmul.f32 0.5, %v1192_v26  ;;  %v452_v33 = vmul.f32 0.5, %v1203_v4 }
 0x1ca   :  { %v585_v43 = vpack.c.bf16 %v574_v38, %v573_v28  ;;  %v560_v45 = vadd.f32 1.0, %v827_v40  ;;  %830 = vtanh.f32 %v530_v35  ;;  %v531_v61 = vmul.f32 0.7978846, %v515_v60 }
 0x1cb   :  { %v575_v34 = vmul.f32 %v559_v39, %v447_v22  ;;  %v516_v46 = vadd.f32 %v500_v42, %v1203_v4 }
 0x1cc   :  { %593 = vst [vmem:[%s1244_s5 + $0x20] sm:$0xff] %v585_v43  ;;  %v576_v13 = vmul.f32 %v560_v45, %v448_v41  ;;  %832 = vtanh.f32 %v531_v61 }
 0x1cd   :  { %v829_v47 = vpop.eup %828  ;;  %v532_v49 = vmul.f32 0.7978846, %v516_v46 }
 0x1ce   :  { %v586_v50 = vpack.c.bf16 %v576_v13, %v575_v34  ;;  %v561_v51 = vadd.f32 1.0, %v829_v47 }
 0x1cf   :  { %834 = vtanh.f32 %v532_v49 }
 0x1d0   :  { %v831_v52 = vpop.eup %830  ;;  %594 = vst [vmem:[%s1244_s5 + $0x28] sm:$0xff] %v586_v50  ;;  %v577_v53 = vmul.f32 %v561_v51, %v449_v20 }
 0x1d1   :  { %v562_v55 = vadd.f32 1.0, %v831_v52 }
 0x1d2   :  { %v833_v18 = vpop.eup %832 }
 0x1d3   :  { %v578_v56 = vmul.f32 %v562_v55, %v450_v54  ;;  %v563_v58 = vadd.f32 1.0, %v833_v18 }
 0x1d5   :  { %v835_v59 = vpop.eup %834  ;;  %v587_v63 = vpack.c.bf16 %v578_v56, %v577_v53  ;;  %v579_v0 = vmul.f32 %v563_v58, %v451_v57 }
 0x1d6   :  { %v564_v12 = vadd.f32 1.0, %v835_v59 }
 0x1d7   :  { %595 = vst [vmem:[%s1244_s5 + $0x30] sm:$0xff] %v587_v63 }
 0x1d8   :  { %v580_v1 = vmul.f32 %v564_v12, %v452_v33 }
 0x1da   :  { %v588_v2 = vpack.c.bf16 %v580_v1, %v579_v0 }
 0x1dc   :  { %596 = vst [vmem:[%s1244_s5 + $0x38] sm:$0xff] %v588_v2 }

// kernel: _lambda_.47
= control target key start
LH: loop header
LB: loop body
LE: loop exit
PB: predicated region body
PF: predicated region fallthrough
CT: control target
= control target key end

     0   :  { %s830_s1 = inlined_call_operand.vmem [shape: bf16[512,128], index: 1, kind: input, shape index: {}]   ;;  %s831_s2 = inlined_call_operand.vmem [shape: f32[1,128], index: 2, kind: input, shape index: {}]   ;;  %s832_s0 = inlined_call_operand.vmem [shape: bf16[32,512], index: 0, kind: input, shape index: {}]   ;;  %s833_s3 = inlined_call_operand.vmem [shape: bf16[32,128], index: 3, kind: input, shape index: {}]   ;;  %s834_s4 = inlined_call_operand.vmem [shape: bf16[32,128], index: 4, kind: output, shape index: {}]  }
   0x1   :  { %v600_v0 = vld [vmem:[%s830_s1 + $0x38] sm:$0xff]  ;;  %v599_v4 = vld [vmem:[%s830_s1 + $0x30] sm:$0xff]  ;;  %v598_v8 = vld [vmem:[%s830_s1 + $0x28] sm:$0xff] }
   0x2   :  { %v608_v1 = vld [vmem:[%s830_s1 + $0x78] sm:$0xff]  ;;  %325 = vmatpush.bf16.msra.mxu0 %v600_v0  ;;  %v607_v5 = vld [vmem:[%s830_s1 + $0x70] sm:$0xff]  ;;  %v606_v9 = vld [vmem:[%s830_s1 + $0x68] sm:$0xff] }
   0x3   :  { %v616_v2 = vld [vmem:[%s830_s1 + $0xb8] sm:$0xff]  ;;  %344 = vmatpush.bf16.msra.mxu1 %v608_v1  ;;  %v615_v6 = vld [vmem:[%s830_s1 + $0xb0] sm:$0xff]  ;;  %v614_v10 = vld [vmem:[%s830_s1 + $0xa8] sm:$0xff] }
   0x4   :  { %v624_v3 = vld [vmem:[%s830_s1 + $0xf8] sm:$0xff]  ;;  %363 = vmatpush.bf16.msra.mxu2 %v616_v2  ;;  %v623_v7 = vld [vmem:[%s830_s1 + $0xf0] sm:$0xff]  ;;  %v622_v11 = vld [vmem:[%s830_s1 + $0xe8] sm:$0xff] }
   0x5   :  { %382 = vmatpush.bf16.msra.mxu3 %v624_v3  ;;  %v597_v12 = vld [vmem:[%s830_s1 + $0x20] sm:$0xff]  ;;  %v596_v16 = vld [vmem:[%s830_s1 + $0x18] sm:$0xff]  ;;  %v595_v20 = vld [vmem:[%s830_s1 + $0x10] sm:$0xff] }
   0x6   :  { %326 = vmatpush.bf16.msra.mxu0 %v599_v4  ;;  %v605_v13 = vld [vmem:[%s830_s1 + $0x60] sm:$0xff]  ;;  %v604_v17 = vld [vmem:[%s830_s1 + $0x58] sm:$0xff]  ;;  %v603_v21 = vld [vmem:[%s830_s1 + $0x50] sm:$0xff] }
   0x7   :  { %345 = vmatpush.bf16.msra.mxu1 %v607_v5  ;;  %v613_v14 = vld [vmem:[%s830_s1 + $0xa0] sm:$0xff]  ;;  %v612_v18 = vld [vmem:[%s830_s1 + $0x98] sm:$0xff]  ;;  %v611_v22 = vld [vmem:[%s830_s1 + $0x90] sm:$0xff] }
   0x8   :  { %364 = vmatpush.bf16.msra.mxu2 %v615_v6  ;;  %v621_v15 = vld [vmem:[%s830_s1 + $0xe0] sm:$0xff]  ;;  %v620_v19 = vld [vmem:[%s830_s1 + $0xd8] sm:$0xff]  ;;  %v619_v23 = vld [vmem:[%s830_s1 + $0xd0] sm:$0xff] }
   0x9   :  { %383 = vmatpush.bf16.msra.mxu3 %v623_v7  ;;  %v594_v24 = vld [vmem:[%s830_s1 + $0x8] sm:$0xff]  ;;  %v593_v28 = vld [vmem:[%s830_s1] sm:$0xff]  ;;  %v587_v33 = vld [vmem:[%s832_s0 + $0xc] sm:$0xf0] }
   0xa   :  { %327 = vmatpush.bf16.msra.mxu0 %v598_v8  ;;  %v602_v25 = vld [vmem:[%s830_s1 + $0x48] sm:$0xff]  ;;  %v601_v29 = vld [vmem:[%s830_s1 + $0x40] sm:$0xff]  ;;  %v429_v35 = vld [vmem:[%s832_s0 + $0x10] sm:$0xf0] }
   0xb   :  { %346 = vmatpush.bf16.msra.mxu1 %v606_v9  ;;  %v610_v26 = vld [vmem:[%s830_s1 + $0x88] sm:$0xff]  ;;  %v609_v30 = vld [vmem:[%s830_s1 + $0x80] sm:$0xff]  ;;  %v588_v37 = vld [vmem:[%s832_s0 + $0x14] sm:$0xf0] }
   0xc   :  { %365 = vmatpush.bf16.msra.mxu2 %v614_v10  ;;  %v618_v27 = vld [vmem:[%s830_s1 + $0xc8] sm:$0xff]  ;;  %v617_v31 = vld [vmem:[%s830_s1 + $0xc0] sm:$0xff]  ;;  %v437_v39 = vld [vmem:[%s832_s0 + $0x18] sm:$0xf0] }
   0xd   :  { %384 = vmatpush.bf16.msra.mxu3 %v622_v11  ;;  %v427_v32 = vld [vmem:[%s832_s0] sm:$0xf]  ;;  %v585_v34 = vld [vmem:[%s832_s0 + $0x4] sm:$0xf]  ;;  %v435_v36 = vld [vmem:[%s832_s0 + $0x8] sm:$0xf] }
   0xe   :  { %328 = vmatpush.bf16.msra.mxu0 %v597_v12  ;;  %v586_v38 = vld [vmem:[%s832_s0 + $0xc] sm:$0xf]  ;;  %v428_v40 = vor.u32 %v587_v33, %v427_v32  ;;  %v432_v41 = vor.u32 %v585_v34, %v429_v35  ;;  %v436_v42 = vor.u32 %v588_v37, %v435_v36  ;;  %v443_v44 = vld [vmem:[%s832_s0 + $0x20] sm:$0xf]  ;;  %v591_v45 = vld [vmem:[%s832_s0 + $0x2c] sm:$0xf0] }
   0xf   :  { %347 = vmatpush.bf16.msra.mxu1 %v605_v13  ;;  %v440_v43 = vor.u32 %v586_v38, %v437_v39  ;;  %v589_v46 = vld [vmem:[%s832_s0 + $0x24] sm:$0xf]  ;;  %v445_v47 = vld [vmem:[%s832_s0 + $0x30] sm:$0xf0]  ;;  %v451_v48 = vld [vmem:[%s832_s0 + $0x28] sm:$0xf]  ;;  %v444_v52 = vor.u32 %v591_v45, %v443_v44 }
  0x10   :  { %366 = vmatpush.bf16.msra.mxu2 %v613_v14  ;;  %v592_v49 = vld [vmem:[%s832_s0 + $0x34] sm:$0xf0]  ;;  %v590_v50 = vld [vmem:[%s832_s0 + $0x2c] sm:$0xf]  ;;  %v453_v51 = vld [vmem:[%s832_s0 + $0x38] sm:$0xf0]  ;;  %v448_v53 = vor.u32 %v589_v46, %v445_v47 }
  0x11   :  { %385 = vmatpush.bf16.msra.mxu3 %v621_v15  ;;  %v452_v54 = vor.u32 %v592_v49, %v451_v48  ;;  %v456_v55 = vor.u32 %v590_v50, %v453_v51  ;;  %v645_v56 = vld [vmem:[%s831_s2] ss:$0 sm:$0xff] }
  0x12   :  { %329 = vmatpush.bf16.msra.mxu0 %v596_v16  ;;  %v626_v3 = vld [vmem:[%s833_s3] sm:$0xff]  }
  0x13   :  { %348 = vmatpush.bf16.msra.mxu1 %v604_v17  ;;  %v627_v8 = vunpack.c.l.bf16 %v626_v3  ;;  %v628_v10 = vunpack.c.h.bf16 %v626_v3 }
  0x14   :  { %367 = vmatpush.bf16.msra.mxu2 %v612_v18 }
  0x15   :  { %386 = vmatpush.bf16.msra.mxu3 %v620_v19 }
  0x16   :  { %330 = vmatpush.bf16.msra.mxu0 %v595_v20 }
  0x17   :  { %349 = vmatpush.bf16.msra.mxu1 %v603_v21 }
  0x18   :  { %368 = vmatpush.bf16.msra.mxu2 %v611_v22 }
  0x19   :  { %387 = vmatpush.bf16.msra.mxu3 %v619_v23 }
  0x1a   :  { %331 = vmatpush.bf16.msra.mxu0 %v594_v24  ;;  %v643_v24 = vld [vmem:[%s833_s3 + $0x8] sm:$0xff]  }
  0x1b   :  { %350 = vmatpush.bf16.msra.mxu1 %v602_v25 }
  0x1c   :  { %369 = vmatpush.bf16.msra.mxu2 %v610_v26 }
  0x1d   :  { %388 = vmatpush.bf16.msra.mxu3 %v618_v27 }
  0x1e   :  { %332 = vmatpush.bf16.msra.mxu0 %v593_v28 }
  0x1f   :  { %351 = vmatpush.bf16.msra.mxu1 %v601_v29  ;;  %v631_v29 = vunpack.c.l.bf16 %v643_v24 }
  0x20   :  { %370 = vmatpush.bf16.msra.mxu2 %v609_v30 }
  0x21   :  { %389 = vmatpush.bf16.msra.mxu3 %v617_v31  ;;  %333 = vmatmul.bf16.vlgmr.msra.gmra.mxu0 %v428_v40  ;;  %v632_v31 = vunpack.c.h.bf16 %v643_v24 }
  0x22   :  { %352 = vmatmul.bf16.vlgmr.msra.gmra.mxu1 %v432_v41 }
  0x23   :  { %371 = vmatmul.bf16.vlgmr.msra.gmra.mxu2 %v436_v42 }
  0x24   :  { %390 = vmatmul.bf16.vlgmr.msra.gmra.mxu3 %v440_v43 }
  0x31   :  { %338 = vmatmul.bf16.gmra.mxu0 %v444_v52 }
  0x32   :  { %357 = vmatmul.bf16.gmra.mxu1 %v448_v53 }
  0x33   :  { %376 = vmatmul.bf16.gmra.mxu2 %v452_v54 }
  0x34   :  { %395 = vmatmul.bf16.gmra.mxu3 %v456_v55 }
  0x9e   :  { %v334_v57 = vpop.f32.mrf.mxu0 }
  0x9f   :  { %v353_v58 = vpop.f32.mrf.mxu1  ;;  %v335_v59 = vadd.f32 %v645_v56, %v334_v57 }
  0xa1   :  { %v354_v62 = vadd.f32 %v353_v58, %v335_v59 }
  0xa6   :  { %v372_v60 = vpop.f32.mrf.mxu2  ;;  %v336_v63 = vpop.f32.mrf.mxu0 }
  0xa7   :  { %v391_v61 = vpop.f32.mrf.mxu3  ;;  %v355_v0 = vpop.f32.mrf.mxu1  ;;  %v337_v1 = vadd.f32 %v645_v56, %v336_v63  ;;  %v373_v2 = vadd.f32 %v372_v60, %v354_v62 }
  0xa9   :  { %v356_v4 = vadd.f32 %v355_v0, %v337_v1  ;;  %v392_v7 = vadd.f32 %v391_v61, %v373_v2 }
  0xab   :  { %v409_v14 = vadd.f32 %v627_v8, %v392_v7 }
  0xae   :  { %v374_v5 = vpop.f32.mrf.mxu2  ;;  %v339_v11 = vpop.f32.mrf.mxu0 }
  0xaf   :  { %v393_v6 = vpop.f32.mrf.mxu3  ;;  %v375_v9 = vadd.f32 %v374_v5, %v356_v4  ;;  %v358_v13 = vpop.f32.mrf.mxu1  ;;  %v340_v16 = vadd.f32 %v645_v56, %v339_v11 }
  0xb1   :  { %v394_v12 = vadd.f32 %v393_v6, %v375_v9  ;;  %v359_v20 = vadd.f32 %v358_v13, %v340_v16 }
  0xb3   :  { %v410_v15 = vadd.f32 %v628_v10, %v394_v12 }
  0xb5   :  { %v636_v17 = vpack.c.bf16 %v410_v15, %v409_v14 }
  0xb6   :  { %v377_v18 = vpop.f32.mrf.mxu2  ;;  %v341_v21 = vpop.f32.mrf.mxu0 }
  0xb7   :  { %v396_v19 = vpop.f32.mrf.mxu3  ;;  %637 = vst [vmem:[%s834_s4] sm:$0xff] %v636_v17   ;;  %v342_v22 = vadd.f32 %v645_v56, %v341_v21  ;;  %v378_v23 = vadd.f32 %v377_v18, %v359_v20  ;;  %v360_v25 = vpop.f32.mrf.mxu1 }
  0xb9   :  { %v361_v26 = vadd.f32 %v360_v25, %v342_v22  ;;  %v397_v28 = vadd.f32 %v396_v19, %v378_v23 }
  0xbb   :  { %v411_v34 = vadd.f32 %v631_v29, %v397_v28 }
  0xbe   :  { %v379_v27 = vpop.f32.mrf.mxu2 }
  0xbf   :  { %v380_v30 = vadd.f32 %v379_v27, %v361_v26  ;;  %v398_v32 = vpop.f32.mrf.mxu3 }
  0xc1   :  { %v399_v33 = vadd.f32 %v398_v32, %v380_v30 }
  0xc3   :  { %v412_v35 = vadd.f32 %v632_v31, %v399_v33 }
  0xc5   :  { %v641_v36 = vpack.c.bf16 %v412_v35, %v411_v34 }
  0xc7   :  { %644 = vst [vmem:[%s834_s4 + $0x8] sm:$0xff] %v641_v36  }

// kernel: _lambda_.42
= control target key start
LH: loop header
LB: loop body
LE: loop exit
PB: predicated region body
PF: predicated region fallthrough
CT: control target
= control target key end

     0   :  { %vm10_vm0 = vcmask 523264   ;;  %s51_s0 = inlined_call_operand.vmem [shape: f32[8,64], index: 0, kind: input, shape index: {}]   ;;  %s52_s1 = inlined_call_operand.vmem [shape: f32[8,64], index: 1, kind: output, shape index: {}]  }
   0x1   :  { %v8_v0 = vld [vmem:[%s51_s0] sm:$0xff] }
   0x2   :  { %v9_v1 = vmul.f32 %v8_v0, %v8_v0 }
   0x4   :  { %v11_v2 = vsel %vm10_vm0, %v9_v1, 0.0 }
   0x5   :  { %12 = vadd.xlane.f32.xlu0 %v11_v2 }
  0x78   :  { %v13_v3 = vpop.xlane.xlu0 %12 }
  0x79   :  { %v14_v4 = vmax.f32 %v13_v3, 1e-24 }
  0x7b   :  { %31 = vrsqrt.f32 %v14_v4  ;;  %vm21_vm2 = vweird.f32 %v14_v4 }
  0x81   :  { %v32_v5 = vpop.eup %31 }
  0x82   :  { %v16_v6 = vmul.f32 %v32_v5, %v14_v4  ;;  %vm22_vm1 = vweird.f32 %v32_v5 }
  0x83   :  { %vm23_vm3 = vmor %vm21_vm2, %vm22_vm1 }
  0x84   :  { %v17_v7 = vmul.f32 %v32_v5, %v16_v6 }
  0x86   :  { %v18_v8 = vmul.f32 0.5, %v17_v7 }
  0x88   :  { %v19_v9 = vsub.f32 1.5, %v18_v8 }
  0x8a   :  { %v20_v10 = vmul.f32 %v32_v5, %v19_v9 }
  0x8c   :  { %v24_v11 = vsel %vm23_vm3, %v32_v5, %v20_v10 }
  0x8d   :  { %v25_v12 = vmul.f32 %v24_v11, %v8_v0 }
  0x8f   :  { %26 = vst.msk [vmem:[%s52_s1] sm:$0xff] %vm10_vm0, %v25_v12 }

</bundles_post_ra>
